<compile_context>
chip_gen: v7x
topology: tpu7x:2x2x1
jax: 0.10.0
libtpu: 0.0.40
codegen_flags: <defaults>
</compile_context>

<pallas_src>
import jax
import jax.numpy as jnp
from jax.experimental import pallas as pl
from jax.experimental.pallas import tpu as pltpu


def _make_tcn_kernel(C_out, C_pad, eps=1e-5):
    def kernel(xcol_ref, w_ref, b_ref, g_ref, beta_ref, s_ref, st_ref, o_ref):
        # xcol_ref: (R, BL)         im2col input block, R = (K+1)*C_in
        # w_ref:    (2*C_pad, R)    [conv taps | 0] stacked over [0 | downsample]
        # b_ref:    (2*C_pad, 1)    [conv bias ; downsample bias] (zero padded)
        # g_ref:    (1, BL)         LayerNorm gamma tiled per sample
        # beta_ref: (1, BL)         LayerNorm beta  tiled per sample
        # s_ref:    (BL, B)         per-sample mean-pooling matrix (1/L entries)
        # st_ref:   (B, BL)         per-sample broadcast-back matrix (0/1)
        # o_ref:    (C_out, BL)
        acc = jnp.dot(w_ref[...], xcol_ref[...],
                      preferred_element_type=jnp.float32)        # (2*C_pad, BL)
        acc = acc + b_ref[...]
        conv = acc[:C_out]                                       # pre-norm conv
        res = acc[C_pad:C_pad + C_out]                           # residual branch

        # LayerNorm over each length-L segment of the lane axis (MXU pooling).
        mean_seg = jnp.dot(conv, s_ref[...],
                           preferred_element_type=jnp.float32)   # (C_out, B)
        mean = jnp.dot(mean_seg, st_ref[...],
                       preferred_element_type=jnp.float32)       # (C_out, BL)
        centered = conv - mean
        var_seg = jnp.dot(centered * centered, s_ref[...],
                          preferred_element_type=jnp.float32)    # (C_out, B)
        rstd_seg = jax.lax.rsqrt(var_seg + eps)
        rstd = jnp.dot(rstd_seg, st_ref[...],
                       preferred_element_type=jnp.float32)       # (C_out, BL)
        y = centered * rstd * g_ref[...] + beta_ref[...]
        y = jnp.maximum(y, 0.0)                                  # ReLU

        o_ref[...] = (y + res).astype(o_ref.dtype)

    return kernel


def tcn_block_pallas(x, w_eff, b, gamma, beta, w_ds, b_ds, *,
                     kernel_size, dilation, block_batch=64, eps=1e-5):
    """x: (N, C_in, L) f32.  w_eff: (C_out, C_in, K) effective (weight-normed)
    conv weight.  w_ds/b_ds: 1x1 downsample weight/bias (pass identity / zeros
    when in_channels == out_channels).  Returns (N, C_out, L) f32."""
    N, C_in, L = x.shape
    C_out, _, K = w_eff.shape
    assert K == kernel_size
    assert gamma.shape[0] == L and beta.shape[0] == L
    # The module hard-codes LayerNorm(30) + length-L residual add, which
    # requires a 'same'-length conv:
    assert (kernel_size - 1) * dilation % 2 == 0, \
        "TCNBlock requires (kernel_size - 1) * dilation to be even"
    pad = dilation * (kernel_size - 1) // 2

    # ---- per-step batch block (batch folded into the lane axis) ----------
    if N <= block_batch:
        B = N                                  # single block == full array
    else:
        B = block_batch
        assert (B * L) % 128 == 0, \
            "pick block_batch so block_batch * L is a multiple of 128"
    G = pl.cdiv(N, B)
    N_pad = G * B
    if N_pad != N:
        x = jnp.pad(x, ((0, N_pad - N), (0, 0), (0, 0)))

    # ---- host-side im2col: K dilated taps + residual slice ---------------
    x_p = jnp.pad(x, ((0, 0), (0, 0), (pad, pad)))      # (N_pad, C_in, L+2*pad)
    taps = [x_p[:, :, k * dilation: k * dilation + L] for k in range(K)]
    taps.append(x)                                       # residual = unpadded x
    xcol = jnp.stack(taps, axis=0)                       # (K+1, N_pad, C_in, L)
    xcol = xcol.transpose(0, 2, 1, 3).reshape((K + 1) * C_in, N_pad * L)
    R = (K + 1) * C_in

    # ---- packed weight: conv rows on top, downsample rows below ----------
    C_pad_rows = ((C_out + 7) // 8) * 8                  # 8-aligned split point
    w_pack = w_eff.transpose(0, 2, 1).reshape(C_out, K * C_in)  # [o, k*C_in + c]
    w_top = jnp.zeros((C_pad_rows, R), jnp.float32).at[:C_out, :K * C_in].set(w_pack)
    w_bot = jnp.zeros((C_pad_rows, R), jnp.float32).at[:C_out, K * C_in:].set(w_ds)
    w_big = jnp.concatenate([w_top, w_bot], axis=0)      # (2*C_pad_rows, R)
    b_big = (jnp.zeros((2 * C_pad_rows,), jnp.float32)
             .at[:C_out].set(b)
             .at[C_pad_rows:C_pad_rows + C_out].set(b_ds)
             .reshape(2 * C_pad_rows, 1))

    # ---- LayerNorm params tiled per sample; segment pool/broadcast mats ---
    g_t = jnp.tile(gamma, B).reshape(1, B * L)
    beta_t = jnp.tile(beta, B).reshape(1, B * L)
    seg = jnp.arange(B * L) // L
    onehot = (seg[:, None] == jnp.arange(B)[None, :]).astype(jnp.float32)
    s_mat = onehot * (1.0 / L)                           # (B*L, B) mean pooling
    st_mat = onehot.T                                    # (B, B*L) broadcast back

    kernel = _make_tcn_kernel(C_out, C_pad_rows, eps=eps)

    out_flat = pl.pallas_call(
        kernel,
        out_shape=jax.ShapeDtypeStruct((C_out, N_pad * L), jnp.float32),
        grid=(G,),
        in_specs=[
            pl.BlockSpec((R, B * L), lambda n: (0, n)),
            pl.BlockSpec((2 * C_pad_rows, R), lambda n: (0, 0)),
            pl.BlockSpec((2 * C_pad_rows, 1), lambda n: (0, 0)),
            pl.BlockSpec((1, B * L), lambda n: (0, 0)),
            pl.BlockSpec((1, B * L), lambda n: (0, 0)),
            pl.BlockSpec((B * L, B), lambda n: (0, 0)),
            pl.BlockSpec((B, B * L), lambda n: (0, 0)),
        ],
        out_specs=pl.BlockSpec((C_out, B * L), lambda n: (0, n)),
        compiler_params=pltpu.CompilerParams(
            dimension_semantics=("parallel",)),
    )(xcol, w_big, b_big, g_t, beta_t, s_mat, st_mat)

    # (C_out, N_pad*L) -> (N, C_out, L): wrapper-side layout plumbing only.
    out = out_flat.reshape(C_out, N_pad, L).transpose(1, 0, 2)
    return out[:N]


def _reference(x, w_eff, b, gamma, beta, w_ds, b_ds, *, dilation, eps=1e-5):
    """Plain-JAX reference mirroring the PyTorch forward."""
    K = w_eff.shape[-1]
    pad = dilation * (K - 1) // 2
    conv = jax.lax.conv_general_dilated(
        x, w_eff, window_strides=(1,), padding=[(pad, pad)],
        rhs_dilation=(dilation,), dimension_numbers=("NCH", "OIH", "NCH"))
    conv = conv + b[None, :, None]
    mean = jnp.mean(conv, axis=-1, keepdims=True)
    var = jnp.mean((conv - mean) ** 2, axis=-1, keepdims=True)
    ln = (conv - mean) / jnp.sqrt(var + eps) * gamma[None, None, :] + beta[None, None, :]
    out = jnp.maximum(ln, 0.0)
    res = jnp.einsum("oc,ncl->nol", w_ds, x) + b_ds[None, :, None]
    return out + res


if __name__ == "__main__":
    L = 30  # nn.LayerNorm(30)

    def run_case(key, N, C_in, C_out, K, dilation, identity_residual):
        ks = jax.random.split(key, 8)
        # weight_norm(Conv1d): w = g * v / ||v|| (norm over dims (1,2), per out ch)
        v = jax.random.normal(ks[0], (C_out, C_in, K), jnp.float32) * 0.3
        g = 1.0 + 0.1 * jax.random.normal(ks[1], (C_out, 1, 1), jnp.float32)
        v_norm = jnp.sqrt(jnp.sum(v * v, axis=(1, 2), keepdims=True))
        w_eff = g * v / v_norm
        b = 0.1 * jax.random.normal(ks[2], (C_out,), jnp.float32)
        gamma = 1.0 + 0.05 * jax.random.normal(ks[3], (L,), jnp.float32)
        beta = 0.05 * jax.random.normal(ks[4], (L,), jnp.float32)
        if identity_residual:
            assert C_in == C_out
            w_ds = jnp.eye(C_out, dtype=jnp.float32)      # residual = x
            b_ds = jnp.zeros((C_out,), jnp.float32)
        else:
            w_ds = jax.random.normal(ks[5], (C_out, C_in), jnp.float32) * 0.3
            b_ds = 0.1 * jax.random.normal(ks[6], (C_out,), jnp.float32)
        x = jax.random.normal(ks[7], (N, C_in, L), jnp.float32)

        out = tcn_block_pallas(x, w_eff, b, gamma, beta, w_ds, b_ds,
                               kernel_size=K, dilation=dilation)
        out = jax.block_until_ready(out)
        ref = _reference(x, w_eff, b, gamma, beta, w_ds, b_ds, dilation=dilation)
        assert out.shape == (N, C_out, L)
        assert jnp.allclose(out, ref, rtol=1e-4, atol=1e-4), "mismatch vs reference"

    key = jax.random.PRNGKey(0)
    k1, k2 = jax.random.split(key)
    # Downsample path (C_in != C_out), multi-block grid (N > block_batch=64).
    run_case(k1, N=100, C_in=4, C_out=8, K=3, dilation=1, identity_residual=False)
    # Identity-residual path (C_in == C_out), dilated conv, single block.
    run_case(k2, N=16, C_in=6, C_out=6, K=3, dilation=2, identity_residual=True)

    print("KERNEL_OK")
</pallas_src>

<mosaic_0001>
module attributes {stable_mosaic.version = 11 : i64} {
  func.func @kernel(%arg0: i32, %arg1: memref<16x1920xf32, #tpu.memory_space<vmem>>, %arg2: memref<16x16xf32, #tpu.memory_space<vmem>>, %arg3: memref<16x1xf32, #tpu.memory_space<vmem>>, %arg4: memref<1x1920xf32, #tpu.memory_space<vmem>>, %arg5: memref<1x1920xf32, #tpu.memory_space<vmem>>, %arg6: memref<1920x64xf32, #tpu.memory_space<vmem>>, %arg7: memref<64x1920xf32, #tpu.memory_space<vmem>>, %arg8: memref<8x1920xf32, #tpu.memory_space<vmem>>) attributes {dimension_semantics = [#tpu.dimension_semantics<parallel>], iteration_bounds = array<i64: 2>, scalar_prefetch = 0 : i64, scratch_operands = 0 : i64, tpu.core_type = #tpu.core_type<tc>, window_params = [{transform_indices = @transform_0, window_bounds = array<i64: 16, 1920>}, {pipeline_mode = #tpu.pipeline_mode<synchronous>, transform_indices = @transform_1, window_bounds = array<i64: 16, 16>}, {pipeline_mode = #tpu.pipeline_mode<synchronous>, transform_indices = @transform_2, window_bounds = array<i64: 16, 1>}, {pipeline_mode = #tpu.pipeline_mode<synchronous>, transform_indices = @transform_3, window_bounds = array<i64: 1, 1920>}, {pipeline_mode = #tpu.pipeline_mode<synchronous>, transform_indices = @transform_4, window_bounds = array<i64: 1, 1920>}, {pipeline_mode = #tpu.pipeline_mode<synchronous>, transform_indices = @transform_5, window_bounds = array<i64: 1920, 64>}, {pipeline_mode = #tpu.pipeline_mode<synchronous>, transform_indices = @transform_6, window_bounds = array<i64: 64, 1920>}, {transform_indices = @transform_7, window_bounds = array<i64: 8, 1920>}]} {
    %c0 = arith.constant 0 : index
    %c0_0 = arith.constant 0 : index
    %0 = vector.load %arg2[%c0, %c0_0] : memref<16x16xf32, #tpu.memory_space<vmem>>, vector<16x16xf32>
    %c0_1 = arith.constant 0 : index
    %c0_2 = arith.constant 0 : index
    %1 = vector.load %arg1[%c0_1, %c0_2] : memref<16x1920xf32, #tpu.memory_space<vmem>>, vector<16x1920xf32>
    %cst = arith.constant dense<0.000000e+00> : vector<16x1920xf32>
    %2 = tpu.matmul %0, %1, %cst {dimension_numbers = #tpu.dot_dimension_numbers<[1], [0], [0], [1], [0, 0, 1, 1], [], []>} : vector<16x16xf32>, vector<16x1920xf32>, vector<16x1920xf32> -> vector<16x1920xf32>
    %c0_3 = arith.constant 0 : index
    %c0_4 = arith.constant 0 : index
    %3 = vector.load %arg3[%c0_3, %c0_4] : memref<16x1xf32, #tpu.memory_space<vmem>>, vector<16x1xf32>
    %4 = vector.broadcast %3 : vector<16x1xf32> to vector<16x1920xf32>
    %5 = arith.addf %2, %4 : vector<16x1920xf32>
    %6 = vector.extract_strided_slice %5 {offsets = [0, 0], sizes = [8, 1920], strides = [1, 1]} : vector<16x1920xf32> to vector<8x1920xf32>
    %7 = vector.extract_strided_slice %5 {offsets = [8, 0], sizes = [8, 1920], strides = [1, 1]} : vector<16x1920xf32> to vector<8x1920xf32>
    %c0_5 = arith.constant 0 : index
    %c0_6 = arith.constant 0 : index
    %8 = vector.load %arg6[%c0_5, %c0_6] : memref<1920x64xf32, #tpu.memory_space<vmem>>, vector<1920x64xf32>
    %cst_7 = arith.constant dense<0.000000e+00> : vector<8x64xf32>
    %9 = tpu.matmul %6, %8, %cst_7 {dimension_numbers = #tpu.dot_dimension_numbers<[1], [0], [0], [1], [0, 0, 1, 1], [], []>} : vector<8x1920xf32>, vector<1920x64xf32>, vector<8x64xf32> -> vector<8x64xf32>
    %c0_8 = arith.constant 0 : index
    %c0_9 = arith.constant 0 : index
    %10 = vector.load %arg7[%c0_8, %c0_9] : memref<64x1920xf32, #tpu.memory_space<vmem>>, vector<64x1920xf32>
    %cst_10 = arith.constant dense<0.000000e+00> : vector<8x1920xf32>
    %11 = tpu.matmul %9, %10, %cst_10 {dimension_numbers = #tpu.dot_dimension_numbers<[1], [0], [0], [1], [0, 0, 1, 1], [], []>} : vector<8x64xf32>, vector<64x1920xf32>, vector<8x1920xf32> -> vector<8x1920xf32>
    %12 = arith.subf %6, %11 : vector<8x1920xf32>
    %13 = arith.mulf %12, %12 : vector<8x1920xf32>
    %c0_11 = arith.constant 0 : index
    %c0_12 = arith.constant 0 : index
    %14 = vector.load %arg6[%c0_11, %c0_12] : memref<1920x64xf32, #tpu.memory_space<vmem>>, vector<1920x64xf32>
    %cst_13 = arith.constant dense<0.000000e+00> : vector<8x64xf32>
    %15 = tpu.matmul %13, %14, %cst_13 {dimension_numbers = #tpu.dot_dimension_numbers<[1], [0], [0], [1], [0, 0, 1, 1], [], []>} : vector<8x1920xf32>, vector<1920x64xf32>, vector<8x64xf32> -> vector<8x64xf32>
    %cst_14 = arith.constant 9.99999974E-6 : f32
    %16 = vector.broadcast %cst_14 : f32 to vector<8x64xf32>
    %17 = arith.addf %15, %16 : vector<8x64xf32>
    %18 = math.rsqrt %17 : vector<8x64xf32>
    %c0_15 = arith.constant 0 : index
    %c0_16 = arith.constant 0 : index
    %19 = vector.load %arg7[%c0_15, %c0_16] : memref<64x1920xf32, #tpu.memory_space<vmem>>, vector<64x1920xf32>
    %cst_17 = arith.constant dense<0.000000e+00> : vector<8x1920xf32>
    %20 = tpu.matmul %18, %19, %cst_17 {dimension_numbers = #tpu.dot_dimension_numbers<[1], [0], [0], [1], [0, 0, 1, 1], [], []>} : vector<8x64xf32>, vector<64x1920xf32>, vector<8x1920xf32> -> vector<8x1920xf32>
    %21 = arith.mulf %12, %20 : vector<8x1920xf32>
    %c0_18 = arith.constant 0 : index
    %c0_19 = arith.constant 0 : index
    %22 = vector.load %arg4[%c0_18, %c0_19] : memref<1x1920xf32, #tpu.memory_space<vmem>>, vector<1x1920xf32>
    %23 = vector.broadcast %22 : vector<1x1920xf32> to vector<8x1920xf32>
    %24 = arith.mulf %21, %23 : vector<8x1920xf32>
    %c0_20 = arith.constant 0 : index
    %c0_21 = arith.constant 0 : index
    %25 = vector.load %arg5[%c0_20, %c0_21] : memref<1x1920xf32, #tpu.memory_space<vmem>>, vector<1x1920xf32>
    %26 = vector.broadcast %25 : vector<1x1920xf32> to vector<8x1920xf32>
    %27 = arith.addf %24, %26 : vector<8x1920xf32>
    %cst_22 = arith.constant 0.000000e+00 : f32
    %28 = vector.broadcast %cst_22 : f32 to vector<8x1920xf32>
    %29 = arith.maximumf %27, %28 : vector<8x1920xf32>
    %30 = arith.addf %29, %7 : vector<8x1920xf32>
    %c0_23 = arith.constant 0 : index
    %c0_24 = arith.constant 0 : index
    %31 = vector.load %arg8[%c0_23, %c0_24] : memref<8x1920xf32, #tpu.memory_space<vmem>>, vector<8x1920xf32>
    tpu.vector_store %arg8[%c0_23, %c0_24], %30 {strides = array<i32>} : memref<8x1920xf32, #tpu.memory_space<vmem>>, vector<8x1920xf32>,
    return
  }
  func.func @transform_0(%arg0: i32) -> (i32, i32) {
    %c0_i32 = arith.constant 0 : i32
    %c0_i32_0 = arith.constant 0 : i32
    return %c0_i32, %arg0 : i32, i32
  }
  func.func @transform_1(%arg0: i32) -> (i32, i32) {
    %c0_i32 = arith.constant 0 : i32
    %c0_i32_0 = arith.constant 0 : i32
    %c0_i32_1 = arith.constant 0 : i32
    return %c0_i32, %c0_i32_0 : i32, i32
  }
  func.func @transform_2(%arg0: i32) -> (i32, i32) {
    %c0_i32 = arith.constant 0 : i32
    %c0_i32_0 = arith.constant 0 : i32
    %c0_i32_1 = arith.constant 0 : i32
    return %c0_i32, %c0_i32_0 : i32, i32
  }
  func.func @transform_3(%arg0: i32) -> (i32, i32) {
    %c0_i32 = arith.constant 0 : i32
    %c0_i32_0 = arith.constant 0 : i32
    %c0_i32_1 = arith.constant 0 : i32
    return %c0_i32, %c0_i32_0 : i32, i32
  }
  func.func @transform_4(%arg0: i32) -> (i32, i32) {
    %c0_i32 = arith.constant 0 : i32
    %c0_i32_0 = arith.constant 0 : i32
    %c0_i32_1 = arith.constant 0 : i32
    return %c0_i32, %c0_i32_0 : i32, i32
  }
  func.func @transform_5(%arg0: i32) -> (i32, i32) {
    %c0_i32 = arith.constant 0 : i32
    %c0_i32_0 = arith.constant 0 : i32
    %c0_i32_1 = arith.constant 0 : i32
    return %c0_i32, %c0_i32_0 : i32, i32
  }
  func.func @transform_6(%arg0: i32) -> (i32, i32) {
    %c0_i32 = arith.constant 0 : i32
    %c0_i32_0 = arith.constant 0 : i32
    %c0_i32_1 = arith.constant 0 : i32
    return %c0_i32, %c0_i32_0 : i32, i32
  }
  func.func @transform_7(%arg0: i32) -> (i32, i32) {
    %c0_i32 = arith.constant 0 : i32
    %c0_i32_0 = arith.constant 0 : i32
    return %c0_i32, %arg0 : i32, i32
  }
}

</mosaic_0001>

<bundles_post_ra>
// kernel: tpu_custom_call.1
= control target key start
LH: loop header
LB: loop body
LE: loop exit
PB: predicated region body
PF: predicated region fallthrough
CT: control target
= control target key end

     0   :  { %12 = vsyncpa [#allocation4], 0  ;;  %s8128_s0 = inlined_call_operand.vmem [shape: f32[16,3840], index: 0, kind: input, shape index: {}]   ;;  %s8129_s1 = inlined_call_operand.vmem [shape: f32[16,16], index: 1, kind: input, shape index: {}]   ;;  %s8130_s2 = inlined_call_operand.vmem [shape: f32[16,1], index: 2, kind: input, shape index: {}]   ;;  %s8131_s3 = inlined_call_operand.vmem [shape: f32[1,1920], index: 3, kind: input, shape index: {}]   ;;  %s8132_s4 = inlined_call_operand.vmem [shape: f32[1,1920], index: 4, kind: input, shape index: {}]   ;;  %s8133_s5 = inlined_call_operand.vmem [shape: f32[1920,64], index: 5, kind: input, shape index: {}]   ;;  %s8134_s6 = inlined_call_operand.vmem [shape: f32[64,1920], index: 6, kind: input, shape index: {}]   ;;  %s8135_s7 = inlined_call_operand.hbm [shape: f32[8,3840], index: 7, kind: output, shape index: {}]  }
   0x1   :  { %14 = vsyncpa [#allocation4 + $0x1], 0  ;;  %s5639_s24 = smov 0   ;;  %s5641_s25 = smov 0  }
   0x2   :  { %s5643_s26 = smov 0   ;;  %s5645_s27 = smov 0  }
   0x3 LB: > { %s4001_s28 = sadd.s32 4294967295, %s5592_s27   ;;  %s4002_s29 = sadd.s32 4294967294, %s5592_s27   ;;  %s5592_s27 = sphi %s5645_s27, %s8597_s27   ;;  %s5588_s26 = sphi %s5643_s26, %s8596_s26   ;;  %s5584_s25 = sphi %s5641_s25, %s8595_s25   ;;  %s5580_s24 = sphi %s5639_s24, %s8594_s24  }
   0x4   : > { %s5662_s30 = sadd.s32 1, %s5592_s27   ;;  %s27_s8 = sadd.s32 1, %s5588_s26 }
   0x5   : > { %s24_s9 = ssub.s32 %s5592_s27, %s5662_s30  ;;  %p34_p0 = scmp.ne.s32.totalorder %s5588_s26, %s5584_s25 }
   0x6   : > { %p25_p1 = scmp.eq.s32.totalorder %s24_s9, 0  ;;  %p35_p2 = scmp.eq.s32.totalorder %s5592_s27, 0 }
   0x7   : > { %p190_p3 = scmp.eq.s32.totalorder %s4001_s28, 1  ;;  %p195_p4 = scmp.ne.s32.totalorder %s5584_s25, %s5580_s24 }
   0x8   : > { %s5675_s10 = scalar_select %p25_p1, %s5588_s26, %s27_s8  }
   0x9   : > { %p36_p5 = por %p35_p2, %p34_p0  ;;  %p5677_p6 = por %p190_p3, %p34_p0 }
   0xa   : > { %p196_p7 = scmp.eq.s32.totalorder %s4002_s29, 1  ;;  %p4004_p9 = scmp.ge.s32.totalorder %s5592_s27, 2 }
   0xc   : > { %p5681_p8 = por %p196_p7, %p195_p4  ;;  %230 = sbr.rel (%p4004_p9) target bundleno = 39 (0x27), region = 40 }
  0x13   : > { %233 = sbr.rel (!%p36_p5) target bundleno = 39 (0x27), region = 44  ;;  %s235_s13 = sand.u32 (%p36_p5), 1, %s5588_s26  }
  0x14   : > { %s4042_s14 = smul.u32 (%p36_p5), 120, %s5592_s27 }
  0x15   : > { %s5481_s15 = smul.u32 (%p36_p5), 240, %s235_s13 }
  0x16   : > { %s5693_s18 = scalar_lea.vmem (%p36_p5), %s8128_s0, %s4042_s14 }
  0x17   : > { %v253_v0 = vld [vmem:[%s5693_s18] sm:$0xff] (%p36_p5)  ;;  %v255_v1 = vld [vmem:[%s5693_s18 + $0x8] sm:$0xff] (%p36_p5)  ;;  %v257_v2 = vld [vmem:[%s5693_s18 + $0x10] sm:$0xff] (%p36_p5)  ;;  %s5698_s19 = scalar_lea.vmem (%p36_p5), [#allocation2], %s5481_s15 }
  0x18   : > { %254 = vst [vmem:[%s5698_s19] sm:$0xff] (%p36_p5), %v253_v0  ;;  %256 = vst [vmem:[%s5698_s19 + $0x8] sm:$0xff] (%p36_p5), %v255_v1  ;;  %v259_v3 = vld [vmem:[%s5693_s18 + $0x18] sm:$0xff] (%p36_p5)  ;;  %v261_v4 = vld [vmem:[%s5693_s18 + $0x20] sm:$0xff] (%p36_p5) }
  0x19   : > { %258 = vst [vmem:[%s5698_s19 + $0x10] sm:$0xff] (%p36_p5), %v257_v2  ;;  %v263_v5 = vld [vmem:[%s5693_s18 + $0x28] sm:$0xff] (%p36_p5)  ;;  %260 = vst [vmem:[%s5698_s19 + $0x18] sm:$0xff] (%p36_p5), %v259_v3  ;;  %v265_v6 = vld [vmem:[%s5693_s18 + $0x30] sm:$0xff] (%p36_p5) }
  0x1a   : > { %262 = vst [vmem:[%s5698_s19 + $0x20] sm:$0xff] %v261_v4  ;;  %264 = vst [vmem:[%s5698_s19 + $0x28] sm:$0xff] %v263_v5  ;;  %v267_v7 = vld [vmem:[%s5693_s18 + $0x38] sm:$0xff]  ;;  %v269_v8 = vld [vmem:[%s5693_s18 + $0x40] sm:$0xff] }
  0x1b   : > { %266 = vst [vmem:[%s5698_s19 + $0x30] sm:$0xff] %v265_v6  ;;  %268 = vst [vmem:[%s5698_s19 + $0x38] sm:$0xff] %v267_v7  ;;  %v271_v9 = vld [vmem:[%s5693_s18 + $0x48] sm:$0xff]  ;;  %v273_v10 = vld [vmem:[%s5693_s18 + $0x50] sm:$0xff] }
  0x1c   : > { %270 = vst [vmem:[%s5698_s19 + $0x40] sm:$0xff] %v269_v8  ;;  %v275_v11 = vld [vmem:[%s5693_s18 + $0x58] sm:$0xff]  ;;  %272 = vst [vmem:[%s5698_s19 + $0x48] sm:$0xff] %v271_v9  ;;  %v277_v12 = vld [vmem:[%s5693_s18 + $0x60] sm:$0xff] }
  0x1d   : > { %274 = vst [vmem:[%s5698_s19 + $0x50] sm:$0xff] %v273_v10  ;;  %276 = vst [vmem:[%s5698_s19 + $0x58] sm:$0xff] %v275_v11  ;;  %v279_v13 = vld [vmem:[%s5693_s18 + $0x68] sm:$0xff]  ;;  %v281_v14 = vld [vmem:[%s5693_s18 + $0x70] sm:$0xff] }
  0x1e   : > { %278 = vst [vmem:[%s5698_s19 + $0x60] sm:$0xff] %v277_v12  ;;  %280 = vst [vmem:[%s5698_s19 + $0x68] sm:$0xff] %v279_v13  ;;  %v283_v15 = vld [vmem:[%s5693_s18 + $0xf0] sm:$0xff]  ;;  %v285_v16 = vld [vmem:[%s5693_s18 + $0xf8] sm:$0xff] }
  0x1f   : > { %282 = vst [vmem:[%s5698_s19 + $0x70] sm:$0xff] %v281_v14  ;;  %v287_v17 = vld [vmem:[%s5693_s18 + $0x100] sm:$0xff]  ;;  %284 = vst [vmem:[%s5698_s19 + $0x78] sm:$0xff] %v283_v15  ;;  %v289_v18 = vld [vmem:[%s5693_s18 + $0x108] sm:$0xff] }
  0x20   : > { %286 = vst [vmem:[%s5698_s19 + $0x80] sm:$0xff] %v285_v16  ;;  %288 = vst [vmem:[%s5698_s19 + $0x88] sm:$0xff] %v287_v17  ;;  %v291_v19 = vld [vmem:[%s5693_s18 + $0x110] sm:$0xff]  ;;  %v293_v20 = vld [vmem:[%s5693_s18 + $0x118] sm:$0xff] }
  0x21   : > { %290 = vst [vmem:[%s5698_s19 + $0x90] sm:$0xff] %v289_v18  ;;  %292 = vst [vmem:[%s5698_s19 + $0x98] sm:$0xff] %v291_v19  ;;  %v295_v21 = vld [vmem:[%s5693_s18 + $0x120] sm:$0xff]  ;;  %v297_v22 = vld [vmem:[%s5693_s18 + $0x128] sm:$0xff] }
  0x22   : > { %294 = vst [vmem:[%s5698_s19 + $0xa0] sm:$0xff] %v293_v20  ;;  %v299_v23 = vld [vmem:[%s5693_s18 + $0x130] sm:$0xff]  ;;  %296 = vst [vmem:[%s5698_s19 + $0xa8] sm:$0xff] %v295_v21  ;;  %v301_v24 = vld [vmem:[%s5693_s18 + $0x138] sm:$0xff] }
  0x23   : > { %298 = vst [vmem:[%s5698_s19 + $0xb0] sm:$0xff] %v297_v22  ;;  %300 = vst [vmem:[%s5698_s19 + $0xb8] sm:$0xff] %v299_v23  ;;  %v303_v25 = vld [vmem:[%s5693_s18 + $0x140] sm:$0xff]  ;;  %v305_v26 = vld [vmem:[%s5693_s18 + $0x148] sm:$0xff] }
  0x24   : > { %302 = vst [vmem:[%s5698_s19 + $0xc0] sm:$0xff] %v301_v24  ;;  %304 = vst [vmem:[%s5698_s19 + $0xc8] sm:$0xff] %v303_v25  ;;  %v307_v27 = vld [vmem:[%s5693_s18 + $0x150] sm:$0xff]  ;;  %v309_v28 = vld [vmem:[%s5693_s18 + $0x158] sm:$0xff] }
  0x25   : > { %306 = vst [vmem:[%s5698_s19 + $0xd0] sm:$0xff] %v305_v26  ;;  %v311_v29 = vld [vmem:[%s5693_s18 + $0x160] sm:$0xff]  ;;  %308 = vst [vmem:[%s5698_s19 + $0xd8] sm:$0xff] %v307_v27 }
  0x26   : > { %310 = vst [vmem:[%s5698_s19 + $0xe0] sm:$0xff] %v309_v28  ;;  %312 = vst [vmem:[%s5698_s19 + $0xe8] sm:$0xff] %v311_v29 }
  0x27 PF: > { %p4006_p10 = scmp.ge.s32.totalorder %s5592_s27, 1  ;;  %p317_p11 = scmp.lt.s32.totalorder %s5592_s27, 3 }
  0x29   : > { %p318_p12 = pnand %p4006_p10, %p317_p11 }
  0x2b   : > { %321 = sbr.rel (%p318_p12) target bundleno = 1421 (0x58d), region = 67 }
  0x32   : > { %s5760_s20 = sand.u32 1, %s5584_s25   ;;  %v8136_v30 = vmov 0.0   ;;  %v389_v31 = vld [vmem:[%s8130_s2] sm:$0xff]  ;;  %v5595_v32 = vmov 0   ;;  %v390_v33 = vld [vmem:[%s8130_s2 + $0x8] sm:$0xff]  ;;  %vm401_vm0 = vcmask 130048  }
  0x33   : > { %s5482_s21 = smul.u32 240, %s5760_s20  ;;  %472 = vmatprep.mubr.f32.mxu0 %v8136_v30  ;;  %549 = vmatprep.mubr.f32.mxu1 %v8136_v30  ;;  %v5784_v45 = vld [vmem:[%s8129_s1] sm:$0xff]  ;;  %v5806_v1 = vld [vmem:[%s8129_s1 + $0x8] sm:$0xff]  ;;  %v1040_v27 = vld [vmem:[%s8133_s5 + $0x90] sm:$0xff]  ;;  %vm5597_vm1 = vmmov 0   ;;  %vm1942_vm2 = vcmask 523264  }
  0x34   : > { %5527 = vset.pattern.permute.xlu0 %v5595_v32  ;;  %v1038_v16 = vld [vmem:[%s8133_s5 + $0x80] sm:$0xff]  ;;  %v1039_v17 = vld [vmem:[%s8133_s5 + $0x88] sm:$0xff]  ;;  %v1041_v28 = vld [vmem:[%s8133_s5 + $0x98] sm:$0xff]  ;;  %s5483_s13 = smul.u32 120, %s5760_s20  ;;  %s3923_s29 = scalar_lea.sflag [#allocation4], %s5760_s20 }
  0x35   : > { %393 = vperm.xlu0 %5527, %v389_v31   ;;  %s5771_s9 = scalar_lea.vmem [#allocation2], %s5482_s21  ;;  %v1070_v18 = vld [vmem:[%s8133_s5 + $0x180] sm:$0xff]  ;;  %v1071_v19 = vld [vmem:[%s8133_s5 + $0x188] sm:$0xff]  ;;  %v5849_v21 = vpack.c.bf16 %v1039_v17, %v1038_v16  ;;  %v1072_v29 = vld [vmem:[%s8133_s5 + $0x190] sm:$0xff]  ;;  %s4043_s19 = smul.u32 1920, %s4001_s28 }
  0x36   : > { %v360_v34 = vld [vmem:[%s5771_s9 + $0x8] sm:$0xff]  ;;  %v375_v35 = vld [vmem:[%s5771_s9 + $0x80] sm:$0xff]  ;;  %v362_v36 = vld [vmem:[%s5771_s9 + $0x18] sm:$0xff]  ;;  %v5853_v22 = vpack.c.bf16 %v1071_v19, %v1070_v18  ;;  %s7984_s14 = scalar_lea.vmem [#allocation3], %s5483_s13 }
  0x37   : > { %v4705_v37 = vpack.c.bf16 %v375_v35, %v360_v34  ;;  %v377_v38 = vld [vmem:[%s5771_s9 + $0x90] sm:$0xff]  ;;  %v359_v39 = vld [vmem:[%s5771_s9] sm:$0xff]  ;;  %v374_v40 = vld [vmem:[%s5771_s9 + $0x78] sm:$0xff]  ;;  %s3937_s21 = sshll.u32 %s7984_s14, 4  ;;  %s8081_s23 = scalar_lea.hbm %s8135_s7, %s4043_s19  ;;  %s8083_s21 = int_to_ptr.vmem [resolvable:$true] %s3937_s21 }
  0x38   : > { %v4709_v41 = vpack.c.bf16 %v377_v38, %v362_v36  ;;  %v4707_v42 = vpack.c.bf16 %v374_v40, %v359_v39  ;;  %v361_v43 = vld [vmem:[%s5771_s9 + $0x10] sm:$0xff]  ;;  %v376_v44 = vld [vmem:[%s5771_s9 + $0x88] sm:$0xff]  ;;  %v379_v48 = vld [vmem:[%s5771_s9 + $0xa0] sm:$0xff]  ;;  %v5902_v36 = vpack.c.bf16 %v1041_v28, %v1040_v27  ;;  %s5530_s8 = scalar_lea.vmem %s8083_s21, 1920 }
  0x39   : > { %v364_v46 = vld [vmem:[%s5771_s9 + $0x28] sm:$0xff]  ;;  %4706 = vmatprep.subr.bf16.mxu0 %v4705_v37  ;;  %v4711_v47 = vpack.c.bf16 %v376_v44, %v361_v43  ;;  %v366_v49 = vld [vmem:[%s5771_s9 + $0x38] sm:$0xff]  ;;  %v381_v50 = vld [vmem:[%s5771_s9 + $0xb0] sm:$0xff]  ;;  %398 = vperm.xlu0 %5527, %v390_v33   ;;  %p5531_p13 = scmp.ne.s32.totalorder %s8083_s21, %s5530_s8 }
  0x3a   : > { %4710 = vmatprep.subr.bf16.mxu1 %v4709_v41  ;;  %4708 = vmatpush1.bf16.msra.mxu0 %v4707_v42  ;;  %v4713_v51 = vpack.c.bf16 %v379_v48, %v364_v46  ;;  %v4717_v52 = vpack.c.bf16 %v381_v50, %v366_v49  ;;  %v363_v53 = vld [vmem:[%s5771_s9 + $0x20] sm:$0xff]  ;;  %v378_v54 = vld [vmem:[%s5771_s9 + $0x98] sm:$0xff]  ;;  %v365_v55 = vld [vmem:[%s5771_s9 + $0x30] sm:$0xff] }
  0x3b   : > { %4712 = vmatpush1.bf16.msra.mxu1 %v4711_v47  ;;  %v4715_v56 = vpack.c.bf16 %v378_v54, %v363_v53  ;;  %v380_v57 = vld [vmem:[%s5771_s9 + $0xa8] sm:$0xff]  ;;  %v383_v59 = vld [vmem:[%s5771_s9 + $0xc0] sm:$0xff]  ;;  %v370_v62 = vld [vmem:[%s5771_s9 + $0x58] sm:$0xff]  ;;  %p5532_p0 = pnand %p5531_p13, %p5677_p6 }
  0x3c   : > { %v368_v58 = vld [vmem:[%s5771_s9 + $0x48] sm:$0xff]  ;;  %4714 = vmatprep.subr.bf16.mxu0 %v4713_v51  ;;  %4718 = vmatprep.subr.bf16.mxu1 %v4717_v52  ;;  %v4719_v60 = vpack.c.bf16 %v380_v57, %v365_v55  ;;  %v385_v63 = vld [vmem:[%s5771_s9 + $0xd0] sm:$0xff]  ;;  %v367_v2 = vld [vmem:[%s5771_s9 + $0x40] sm:$0xff] }
  0x3d   : > { %v4721_v61 = vpack.c.bf16 %v383_v59, %v368_v58  ;;  %4007 = vmatmul.mubr.msk.f32.vlgmr.msra.gmra.mrb[0].mxu0 %vm401_vm0, %v5784_v45  ;;  %v4725_v0 = vpack.c.bf16 %v385_v63, %v370_v62  ;;  %v382_v3 = vld [vmem:[%s5771_s9 + $0xb8] sm:$0xff]  ;;  %v369_v4 = vld [vmem:[%s5771_s9 + $0x50] sm:$0xff]  ;;  %v384_v5 = vld [vmem:[%s5771_s9 + $0xc8] sm:$0xff]  ;;  %p5533_p1 = pneg %p5532_p0 }
  0x3e   : > { %4009 = vmatmul.mubr.msk.f32.vlgmr.msra.gmra.mrb[0].mxu1 %vm401_vm0, %v5784_v45  ;;  %478 = vmatprep.mubr.f32.mxu0 %v8136_v30  ;;  %v372_v6 = vld [vmem:[%s5771_s9 + $0x68] sm:$0xff]  ;;  %v387_v7 = vld [vmem:[%s5771_s9 + $0xe0] sm:$0xff]  ;;  %v373_v8 = vld [vmem:[%s5771_s9 + $0x70] sm:$0xff]  ;;  %v4723_v10 = vpack.c.bf16 %v382_v3, %v367_v2  ;;  %v4727_v11 = vpack.c.bf16 %v384_v5, %v369_v4 }
  0x3f   : > { %555 = vmatprep.mubr.f32.mxu1 %v8136_v30  ;;  %4716 = vmatpush1.bf16.msra.mxu0 %v4715_v56  ;;  %v388_v9 = vld [vmem:[%s5771_s9 + $0xe8] sm:$0xff]  ;;  %v4729_v12 = vpack.c.bf16 %v387_v7, %v372_v6  ;;  %v371_v14 = vld [vmem:[%s5771_s9 + $0x60] sm:$0xff]  ;;  %v386_v15 = vld [vmem:[%s5771_s9 + $0xd8] sm:$0xff]  ;;  %s5598_s9 = smov [#allocation3]  }
  0x40   : > { %4720 = vmatpush1.bf16.msra.mxu1 %v4719_v60  ;;  %4722 = vmatprep.subr.bf16.mxu0 %v4721_v61  ;;  %v4733_v13 = vpack.c.bf16 %v388_v9, %v373_v8  ;;  %v4731_v20 = vpack.c.bf16 %v386_v15, %v371_v14  ;;  %v1022_v23 = vld [vmem:[%s8133_s5] sm:$0xff]  ;;  %v1023_v24 = vld [vmem:[%s8133_s5 + $0x8] sm:$0xff]  ;;  %v1073_v31 = vld [vmem:[%s8133_s5 + $0x198] sm:$0xff]  ;;  %s5534_s13 = sshll.u32 %s5598_s9, 4  ;;  %s5535_s13 = int_to_ptr.vmem [resolvable:$false] %s5534_s13 }
  0x41   : > { %4008 = vmatmul.mubr.msk.f32.gmra.mrb[2].mxu0 %vm401_vm0, %v5806_v1  ;;  %4726 = vmatprep.subr.bf16.mxu1 %v4725_v0  ;;  %v1054_v25 = vld [vmem:[%s8133_s5 + $0x100] sm:$0xff]  ;;  %v1055_v26 = vld [vmem:[%s8133_s5 + $0x108] sm:$0xff]  ;;  %v5892_v32 = vpack.c.bf16 %v1023_v24, %v1022_v23  ;;  %v1024_v34 = vld [vmem:[%s8133_s5 + $0x10] sm:$0xff]  ;;  %v5904_v37 = vpack.c.bf16 %v1073_v31, %v1072_v29  ;;  %s5536_s15 = scalar_lea.vmem %s5535_s13, 3840  ;;  %p5537_p2 = scmp.lt.s32.totalorder %s8083_s21, %s5535_s13 }
  0x42   : > { %4010 = vmatmul.mubr.msk.f32.gmra.mrb[2].mxu1 %vm401_vm0, %v5806_v1  ;;  %626 = vmatprep.mubr.f32.mxu0 %v8136_v30  ;;  %v5894_v33 = vpack.c.bf16 %v1055_v26, %v1054_v25  ;;  %v1025_v35 = vld [vmem:[%s8133_s5 + $0x18] sm:$0xff]  ;;  %v1056_v38 = vld [vmem:[%s8133_s5 + $0x110] sm:$0xff]  ;;  %v1042_v40 = vld [vmem:[%s8133_s5 + $0xa0] sm:$0xff]  ;;  %p5538_p3 = scmp.lt.s32.totalorder %s5536_s15, %s5530_s8 }
  0x43   : > { %703 = vmatprep.mubr.f32.mxu1 %v8136_v30  ;;  %v1057_v39 = vld [vmem:[%s8133_s5 + $0x118] sm:$0xff]  ;;  %v1043_v41 = vld [vmem:[%s8133_s5 + $0xa8] sm:$0xff]  ;;  %v1074_v42 = vld [vmem:[%s8133_s5 + $0x1a0] sm:$0xff]  ;;  %v5931_v44 = vpack.c.bf16 %v1025_v35, %v1024_v34 }
  0x44   : > { %v1075_v43 = vld [vmem:[%s8133_s5 + $0x1a8] sm:$0xff]  ;;  %v1026_v46 = vld [vmem:[%s8133_s5 + $0x20] sm:$0xff]  ;;  %v5943_v48 = vpack.c.bf16 %v1043_v41, %v1042_v40  ;;  %v1044_v52 = vld [vmem:[%s8133_s5 + $0xb0] sm:$0xff]  ;;  %p5539_p4 = por %p5538_p3, %p5537_p2 }
  0x45   : > { %4011 = vmatmul.mubr.msk.f32.vlgmr.msra.gmra.mrb[4].mxu0 %vm401_vm0, %v5784_v45  ;;  %v1027_v47 = vld [vmem:[%s8133_s5 + $0x28] sm:$0xff]  ;;  %v5945_v49 = vpack.c.bf16 %v1075_v43, %v1074_v42  ;;  %v1058_v50 = vld [vmem:[%s8133_s5 + $0x120] sm:$0xff]  ;;  %v1045_v53 = vld [vmem:[%s8133_s5 + $0xb8] sm:$0xff] }
  0x46   : > { %4013 = vmatmul.mubr.msk.f32.vlgmr.msra.gmra.mrb[4].mxu1 %vm401_vm0, %v5784_v45  ;;  %632 = vmatprep.mubr.f32.mxu0 %v8136_v30  ;;  %v1059_v51 = vld [vmem:[%s8133_s5 + $0x128] sm:$0xff]  ;;  %v1076_v54 = vld [vmem:[%s8133_s5 + $0x1b0] sm:$0xff]  ;;  %v1077_v55 = vld [vmem:[%s8133_s5 + $0x1b8] sm:$0xff]  ;;  %v5969_v56 = vpack.c.bf16 %v1027_v47, %v1026_v46  ;;  %v5981_v60 = vpack.c.bf16 %v1045_v53, %v1044_v52  ;;  %p5540_p5 = pnand %p5539_p4, %p5533_p1 }
  0x47   : > { %709 = vmatprep.mubr.f32.mxu1 %v8136_v30  ;;  %4724 = vmatpush1.bf16.msra.mxu0 %v4723_v10  ;;  %v5971_v57 = vpack.c.bf16 %v1059_v51, %v1058_v50  ;;  %v1028_v58 = vld [vmem:[%s8133_s5 + $0x30] sm:$0xff]  ;;  %v1029_v59 = vld [vmem:[%s8133_s5 + $0x38] sm:$0xff]  ;;  %v5983_v61 = vpack.c.bf16 %v1077_v55, %v1076_v54  ;;  %v1046_v0 = vld [vmem:[%s8133_s5 + $0xc0] sm:$0xff] }
  0x48   : > { %4728 = vmatpush1.bf16.msra.mxu1 %v4727_v11  ;;  %4730 = vmatprep.subr.bf16.mxu0 %v4729_v12  ;;  %v1060_v62 = vld [vmem:[%s8133_s5 + $0x130] sm:$0xff]  ;;  %v1061_v63 = vld [vmem:[%s8133_s5 + $0x138] sm:$0xff]  ;;  %v1078_v2 = vld [vmem:[%s8133_s5 + $0x1c0] sm:$0xff]  ;;  %v6005_v4 = vpack.c.bf16 %v1029_v59, %v1028_v58 }
  0x49   : > { %4012 = vmatmul.mubr.msk.f32.gmra.mrb[6].mxu0 %vm401_vm0, %v5806_v1  ;;  %4734 = vmatprep.subr.bf16.mxu1 %v4733_v13  ;;  %v1079_v3 = vld [vmem:[%s8133_s5 + $0x1c8] sm:$0xff]  ;;  %v6007_v5 = vpack.c.bf16 %v1061_v63, %v1060_v62  ;;  %v1030_v6 = vld [vmem:[%s8133_s5 + $0x40] sm:$0xff]  ;;  %v1048_v12 = vld [vmem:[%s8133_s5 + $0xd0] sm:$0xff] }
  0x4a   : > { %4014 = vmatmul.mubr.msk.f32.gmra.mrb[6].mxu1 %vm401_vm0, %v5806_v1  ;;  %780 = vmatprep.mubr.f32.mxu0 %v8136_v30  ;;  %v1031_v7 = vld [vmem:[%s8133_s5 + $0x48] sm:$0xff]  ;;  %v6019_v9 = vpack.c.bf16 %v1079_v3, %v1078_v2  ;;  %v1062_v10 = vld [vmem:[%s8133_s5 + $0x140] sm:$0xff]  ;;  %v1080_v14 = vld [vmem:[%s8133_s5 + $0x1d0] sm:$0xff] }
  0x4b   : > { %857 = vmatprep.mubr.f32.mxu1 %v8136_v30  ;;  %v1063_v11 = vld [vmem:[%s8133_s5 + $0x148] sm:$0xff]  ;;  %v1081_v15 = vld [vmem:[%s8133_s5 + $0x1d8] sm:$0xff]  ;;  %v6041_v16 = vpack.c.bf16 %v1031_v7, %v1030_v6  ;;  %v1032_v18 = vld [vmem:[%s8133_s5 + $0x50] sm:$0xff] }
  0x4c   : > { %v6043_v17 = vpack.c.bf16 %v1063_v11, %v1062_v10  ;;  %v1033_v19 = vld [vmem:[%s8133_s5 + $0x58] sm:$0xff]  ;;  %v6055_v23 = vpack.c.bf16 %v1081_v15, %v1080_v14  ;;  %v1064_v24 = vld [vmem:[%s8133_s5 + $0x150] sm:$0xff]  ;;  %v1050_v26 = vld [vmem:[%s8133_s5 + $0xe0] sm:$0xff] }
  0x4d   : > { %4015 = vmatmul.mubr.msk.f32.vlgmr.msra.gmra.mrb[8].mxu0 %vm401_vm0, %v5784_v45  ;;  %v1065_v25 = vld [vmem:[%s8133_s5 + $0x158] sm:$0xff]  ;;  %v1051_v27 = vld [vmem:[%s8133_s5 + $0xe8] sm:$0xff]  ;;  %v1082_v28 = vld [vmem:[%s8133_s5 + $0x1e0] sm:$0xff]  ;;  %v6077_v31 = vpack.c.bf16 %v1033_v19, %v1032_v18 }
  0x4e   : > { %4017 = vmatmul.mubr.msk.f32.vlgmr.msra.gmra.mrb[8].mxu1 %vm401_vm0, %v5784_v45  ;;  %786 = vmatprep.mubr.f32.mxu0 %v8136_v30  ;;  %v1083_v29 = vld [vmem:[%s8133_s5 + $0x1e8] sm:$0xff]  ;;  %v6079_v34 = vpack.c.bf16 %v1065_v25, %v1064_v24  ;;  %v1034_v35 = vld [vmem:[%s8133_s5 + $0x60] sm:$0xff]  ;;  %v1052_v47 = vld [vmem:[%s8133_s5 + $0xf0] sm:$0xff] }
  0x4f   : > { %863 = vmatprep.mubr.f32.mxu1 %v8136_v30  ;;  %4732 = vmatpush1.bf16.msra.mxu0 %v4731_v20  ;;  %v1035_v40 = vld [vmem:[%s8133_s5 + $0x68] sm:$0xff]  ;;  %v1066_v41 = vld [vmem:[%s8133_s5 + $0x160] sm:$0xff]  ;;  %v1053_v50 = vld [vmem:[%s8133_s5 + $0xf8] sm:$0xff] }
  0x50   : > { %4736 = vmatpush3.bf16.msra.mxu1 %v4733_v13  ;;  %4738 = vmatprep.subr.bf16.mxu0 %v5849_v21  ;;  %v1049_v13 = vld [vmem:[%s8133_s5 + $0xd8] sm:$0xff]  ;;  %v1067_v42 = vld [vmem:[%s8133_s5 + $0x168] sm:$0xff]  ;;  %v6101_v43 = vpack.c.bf16 %v1035_v40, %v1034_v35  ;;  %v1084_v51 = vld [vmem:[%s8133_s5 + $0x1f0] sm:$0xff]  ;;  %v6118_v52 = vpack.c.bf16 %v1053_v50, %v1052_v47 }
  0x51   : > { %4016 = vmatmul.mubr.msk.f32.gmra.mrb[10].mxu0 %vm401_vm0, %v5806_v1  ;;  %4770 = vmatprep.subr.bf16.mxu1 %v5853_v22  ;;  %v6053_v20 = vpack.c.bf16 %v1049_v13, %v1048_v12  ;;  %v6103_v46 = vpack.c.bf16 %v1067_v42, %v1066_v41  ;;  %v1085_v53 = vld [vmem:[%s8133_s5 + $0x1f8] sm:$0xff]  ;;  %v1036_v54 = vld [vmem:[%s8133_s5 + $0x70] sm:$0xff]  ;;  %v1103_v2 = vld [vmem:[%s8133_s5 + $0x288] sm:$0xff] }
  0x52   : > { %4018 = vmatmul.mubr.msk.f32.gmra.mrb[10].mxu1 %vm401_vm0, %v5806_v1  ;;  %934 = vmatprep.mubr.f32.mxu0 %v8136_v30  ;;  %v1037_v55 = vld [vmem:[%s8133_s5 + $0x78] sm:$0xff]  ;;  %v6129_v58 = vpack.c.bf16 %v1085_v53, %v1084_v51  ;;  %v1068_v62 = vld [vmem:[%s8133_s5 + $0x170] sm:$0xff]  ;;  %v1134_v3 = vld [vmem:[%s8133_s5 + $0x380] sm:$0xff] }
  0x53   : > { %4594 = vmatprep.mubr.msk.f32.mxu1 %vm401_vm0, %v5784_v45  ;;  %v6131_v59 = vpack.c.bf16 %v1037_v55, %v1036_v54  ;;  %v1069_v63 = vld [vmem:[%s8133_s5 + $0x178] sm:$0xff]  ;;  %v1135_v7 = vld [vmem:[%s8133_s5 + $0x388] sm:$0xff]  ;;  %v1086_v11 = vld [vmem:[%s8133_s5 + $0x200] sm:$0xff] }
  0x54   : > { %v6159_v10 = vpack.c.bf16 %v1135_v7, %v1134_v3  ;;  %v1087_v12 = vld [vmem:[%s8133_s5 + $0x208] sm:$0xff]  ;;  %v1118_v13 = vld [vmem:[%s8133_s5 + $0x300] sm:$0xff]  ;;  %v1104_v19 = vld [vmem:[%s8133_s5 + $0x290] sm:$0xff] }
  0x55   : > { %4019 = vmatmul.mubr.msk.f32.vlgmr.msra.gmra.mrb[12].mxu0 %vm401_vm0, %v5784_v45  ;;  %v5933_v45 = vpack.c.bf16 %v1057_v39, %v1056_v38  ;;  %v6086_v38 = vpack.c.bf16 %v1051_v27, %v1050_v26  ;;  %v6088_v39 = vpack.c.bf16 %v1083_v29, %v1082_v28  ;;  %v1119_v18 = vld [vmem:[%s8133_s5 + $0x308] sm:$0xff]  ;;  %v1105_v24 = vld [vmem:[%s8133_s5 + $0x298] sm:$0xff]  ;;  %v1136_v27 = vld [vmem:[%s8133_s5 + $0x390] sm:$0xff]  ;;  %v6195_v41 = vpack.c.bf16 %v1087_v12, %v1086_v11 }
  0x56   : > { %4595 = vmatmul.mubr.msk.f32.vlgmr.msra.gmra.mrb[12].mxu1 %vm401_vm0, %v5806_v1  ;;  %940 = vmatprep.mubr.f32.mxu0 %v8136_v30  ;;  %v1137_v28 = vld [vmem:[%s8133_s5 + $0x398] sm:$0xff]  ;;  %v6203_v50 = vpack.c.bf16 %v1119_v18, %v1118_v13  ;;  %v6205_v51 = vpack.c.bf16 %v1105_v24, %v1104_v19  ;;  %v1088_v53 = vld [vmem:[%s8133_s5 + $0x210] sm:$0xff]  ;;  %v1107_v3 = vld [vmem:[%s8133_s5 + $0x2a8] sm:$0xff] }
  0x57   : > { %4740 = vmatpush3.bf16.msra.mxu0 %v5892_v32  ;;  %4772 = vmatpush3.bf16.msra.mxu1 %v5894_v33  ;;  %8282 = vst [vmem:[#allocation6_spill] sm:$0xff] %v6195_v41  ;;  %v1089_v54 = vld [vmem:[%s8133_s5 + $0x218] sm:$0xff]  ;;  %v1120_v55 = vld [vmem:[%s8133_s5 + $0x310] sm:$0xff]  ;;  %v1138_v12 = vld [vmem:[%s8133_s5 + $0x3a0] sm:$0xff] }
  0x58   : > { %4742 = vmatprep.subr.bf16.mxu0 %v5902_v36  ;;  %4774 = vmatprep.subr.bf16.mxu1 %v5904_v37  ;;  %8284 = vst [vmem:[#allocation8_spill] sm:$0xff] %v6203_v50  ;;  %8285 = vst [vmem:[#allocation9_spill] sm:$0xff] %v6205_v51  ;;  %v1139_v13 = vld [vmem:[%s8133_s5 + $0x3a8] sm:$0xff]  ;;  %v6246_v18 = vpack.c.bf16 %v1089_v54, %v1088_v53  ;;  %v1108_v54 = vld [vmem:[%s8133_s5 + $0x2b0] sm:$0xff] }
  0x59   : > { %4020 = vmatmul.mubr.msk.f32.gmra.mrb[14].mxu0 %vm401_vm0, %v5806_v1  ;;  %v1047_v1 = vld [vmem:[%s8133_s5 + $0xc8] sm:$0xff] }
  0x5a   : > { %v6017_v8 = vpack.c.bf16 %v1047_v1, %v1046_v0  ;;  %v6140_v0 = vpack.c.bf16 %v1069_v63, %v1068_v62  ;;  %v1102_v1 = vld [vmem:[%s8133_s5 + $0x280] sm:$0xff]  ;;  %v6219_v63 = vpack.c.bf16 %v1137_v28, %v1136_v27  ;;  %8291 = vst [vmem:[#allocation15_spill] sm:$0xff] %v6246_v18  ;;  %v1123_v53 = vld [vmem:[%s8133_s5 + $0x328] sm:$0xff] }
  0x5b   : > { %4744 = vmatpush3.bf16.msra.mxu0 %v5931_v44  ;;  %4776 = vmatpush3.bf16.msra.mxu1 %v5933_v45  ;;  %v6154_v6 = vpack.c.bf16 %v1103_v2, %v1102_v1  ;;  %v1121_v1 = vld [vmem:[%s8133_s5 + $0x318] sm:$0xff]  ;;  %v1106_v2 = vld [vmem:[%s8133_s5 + $0x2a0] sm:$0xff] }
  0x5c   : > { %4746 = vmatprep.subr.bf16.mxu0 %v5943_v48  ;;  %4778 = vmatprep.subr.bf16.mxu1 %v5945_v49  ;;  %8287 = vst [vmem:[#allocation11_spill] sm:$0xff] %v6219_v63  ;;  %v6250_v19 = vpack.c.bf16 %v1121_v1, %v1120_v55  ;;  %v6252_v24 = vpack.c.bf16 %v1107_v3, %v1106_v2  ;;  %v1122_v27 = vld [vmem:[%s8133_s5 + $0x320] sm:$0xff]  ;;  %v1109_v55 = vld [vmem:[%s8133_s5 + $0x2b8] sm:$0xff]  ;;  %v1140_v3 = vld [vmem:[%s8133_s5 + $0x3b0] sm:$0xff] }
  0x5e   : > { %8292 = vst [vmem:[#allocation16_spill] sm:$0xff] %v6250_v19  ;;  %8293 = vst [vmem:[#allocation17_spill] sm:$0xff] %v6252_v24 }
  0x5f   : > { %4748 = vmatpush3.bf16.msra.mxu0 %v5969_v56  ;;  %4780 = vmatpush3.bf16.msra.mxu1 %v5971_v57 }
  0x60   : > { %4750 = vmatprep.subr.bf16.mxu0 %v5981_v60  ;;  %4782 = vmatprep.subr.bf16.mxu1 %v5983_v61 }
  0x63   : > { %4752 = vmatpush3.bf16.msra.mxu0 %v6005_v4  ;;  %4784 = vmatpush3.bf16.msra.mxu1 %v6007_v5 }
  0x64   : > { %4754 = vmatprep.subr.bf16.mxu0 %v6017_v8  ;;  %4786 = vmatprep.subr.bf16.mxu1 %v6019_v9 }
  0x67   : > { %4756 = vmatpush3.bf16.msra.mxu0 %v6041_v16  ;;  %4788 = vmatpush3.bf16.msra.mxu1 %v6043_v17 }
  0x68   : > { %4758 = vmatprep.subr.bf16.mxu0 %v6053_v20  ;;  %4790 = vmatprep.subr.bf16.mxu1 %v6055_v23 }
  0x6b   : > { %4760 = vmatpush3.bf16.msra.mxu0 %v6077_v31  ;;  %4792 = vmatpush3.bf16.msra.mxu1 %v6079_v34 }
  0x6c   : > { %4762 = vmatprep.subr.bf16.mxu0 %v6086_v38  ;;  %4794 = vmatprep.subr.bf16.mxu1 %v6088_v39 }
  0x6f   : > { %4764 = vmatpush3.bf16.msra.mxu0 %v6101_v43  ;;  %4796 = vmatpush3.bf16.msra.mxu1 %v6103_v46 }
  0x70   : > { %4766 = vmatprep.subr.bf16.mxu0 %v6118_v52  ;;  %4798 = vmatprep.subr.bf16.mxu1 %v6129_v58 }
  0x73   : > { %4768 = vmatpush3.bf16.msra.mxu0 %v6131_v59  ;;  %4800 = vmatpush3.bf16.msra.mxu1 %v6140_v0 }
  0x74   : > { %4802 = vmatprep.subr.bf16.mxu0 %v6154_v6  ;;  %4834 = vmatprep.subr.bf16.mxu1 %v6159_v10 }
  0xb4   : > { %v6172_v14 = vpop.permute.xlu0 %393 }
 0x110   : > { %v474_v15 = vpop.f32.mrb[0].mxu0 }
 0x111   : > { %v551_v25 = vpop.f32.mrb[0].mxu1  ;;  %v476_v26 = vpop.f32.mrb[1].mxu0  ;;  %v6198_v42 = vadd.f32 %v474_v15, %v6172_v14 }
 0x112   : > { %v6190_v29 = vadd.f32 %v551_v25, %v6172_v14  ;;  %v6193_v35 = vadd.f32 %v476_v26, %v6172_v14  ;;  %v553_v40 = vpop.f32.mrb[1].mxu1  ;;  %v1090_v25 = vld [vmem:[%s8133_s5 + $0x220] sm:$0xff]  ;;  %v1091_v26 = vld [vmem:[%s8133_s5 + $0x228] sm:$0xff] }
 0x113   : > { %v6201_v47 = vadd.f32 %v553_v40, %v6172_v14  ;;  %v6266_v40 = vpack.c.bf16 %v1139_v13, %v1138_v12  ;;  %v1141_v12 = vld [vmem:[%s8133_s5 + $0x3b8] sm:$0xff] }
 0x114   : > { %v6216_v62 = vpop.f32.mrb[2].mxu0  ;;  %1326 = vmatprep.mubr.f32.mxu0 %v6193_v35 }
 0x115   : > { %8283 = vst [vmem:[#allocation7_spill] sm:$0xff] %v6201_v47  ;;  %8286 = vst [vmem:[#allocation10_spill] sm:$0xff] %v6216_v62  ;;  %v6230_v7 = vpop.f32.mrb[2].mxu1  ;;  %1396 = vmatprep.mubr.f32.mxu1 %v6201_v47  ;;  %v6233_v11 = vpop.f32.mrb[3].mxu0  ;;  %1327 = vmatmul.mubr.f32.vlgmr.msra.gmra.mrb[16].mxu0 %v6198_v42  ;;  %v6298_v62 = vpack.c.bf16 %v1109_v55, %v1108_v54  ;;  %v1110_v54 = vld [vmem:[%s8133_s5 + $0x2c0] sm:$0xff]  ;;  %v1111_v55 = vld [vmem:[%s8133_s5 + $0x2c8] sm:$0xff] }
 0x116   : > { %8288 = vst [vmem:[#allocation12_spill] sm:$0xff] %v6230_v7  ;;  %8289 = vst [vmem:[#allocation13_spill] sm:$0xff] %v6233_v11  ;;  %v6242_v15 = vpop.f32.mrb[3].mxu1  ;;  %1397 = vmatmul.mubr.f32.vlgmr.msra.gmra.mrb[14].mxu1 %v6190_v29  ;;  %4804 = vmatpush3.bf16.msra.mxu0 %v6195_v41  ;;  %v6296_v7 = vpack.c.bf16 %v1123_v53, %v1122_v27  ;;  %v6313_v27 = vpack.c.bf16 %v1141_v12, %v1140_v3  ;;  %v1125_v53 = vld [vmem:[%s8133_s5 + $0x338] sm:$0xff]  ;;  %v1142_v3 = vld [vmem:[%s8133_s5 + $0x3c0] sm:$0xff] }
 0x117   : > { %8290 = vst [vmem:[#allocation14_spill] sm:$0xff] %v6242_v15  ;;  %4836 = vmatpush3.bf16.msra.mxu1 %v6203_v50  ;;  %4806 = vmatprep.subr.bf16.mxu0 %v6205_v51  ;;  %8294 = vst [vmem:[#allocation18_spill] sm:$0xff] %v6266_v40  ;;  %v6289_v15 = vpack.c.bf16 %v1091_v26, %v1090_v25  ;;  %v1093_v25 = vld [vmem:[%s8133_s5 + $0x238] sm:$0xff]  ;;  %v1143_v12 = vld [vmem:[%s8133_s5 + $0x3c8] sm:$0xff] }
 0x118   : > { %v6263_v28 = vpop.f32.mrb[4].mxu0  ;;  %4838 = vmatprep.subr.bf16.mxu1 %v6219_v63  ;;  %8298 = vst [vmem:[#allocation22_spill] sm:$0xff] %v6296_v7  ;;  %8299 = vst [vmem:[#allocation23_spill] sm:$0xff] %v6298_v62  ;;  %v1096_v63 = vld [vmem:[%s8133_s5 + $0x250] sm:$0xff]  ;;  %v1097_v51 = vld [vmem:[%s8133_s5 + $0x258] sm:$0xff] }
 0x119   : > { %v6277_v1 = vpop.f32.mrb[4].mxu1  ;;  %v630_v2 = vpop.f32.mrb[5].mxu0  ;;  %8296 = vst [vmem:[#allocation20_spill] sm:$0xff] %v6289_v15  ;;  %8301 = vst [vmem:[#allocation25_spill] sm:$0xff] %v6313_v27  ;;  %v1100_v41 = vld [vmem:[%s8133_s5 + $0x270] sm:$0xff]  ;;  %v1101_v47 = vld [vmem:[%s8133_s5 + $0x278] sm:$0xff] }
 0x11a   : > { %v6286_v13 = vadd.f32 %v630_v2, %v6172_v14  ;;  %v707_v30 = vpop.f32.mrb[5].mxu1  ;;  %4808 = vmatpush3.bf16.msra.mxu0 %v6246_v18  ;;  %v1092_v2 = vld [vmem:[%s8133_s5 + $0x230] sm:$0xff] }
 0x11b   : > { %v6292_v11 = vadd.f32 %v707_v30, %v6172_v14  ;;  %4840 = vmatpush3.bf16.msra.mxu1 %v6250_v19  ;;  %4810 = vmatprep.subr.bf16.mxu0 %v6252_v24  ;;  %v1124_v30 = vld [vmem:[%s8133_s5 + $0x330] sm:$0xff] }
 0x11c   : > { %8295 = vst [vmem:[#allocation19_spill] sm:$0xff] %v6286_v13  ;;  %v6309_v26 = vpop.f32.mrb[6].mxu0  ;;  %1466 = vmatprep.mubr.f32.mxu0 %v6286_v13  ;;  %4842 = vmatprep.subr.bf16.mxu1 %v6266_v40  ;;  %v6338_v40 = vpack.c.bf16 %v1093_v25, %v1092_v2  ;;  %v1126_v2 = vld [vmem:[%s8133_s5 + $0x340] sm:$0xff] }
 0x11d   : > { %8297 = vst [vmem:[#allocation21_spill] sm:$0xff] %v6292_v11  ;;  %8300 = vst [vmem:[#allocation24_spill] sm:$0xff] %v6309_v26  ;;  %v6324_v24 = vpop.f32.mrb[6].mxu1  ;;  %1536 = vmatprep.mubr.f32.mxu1 %v6292_v11  ;;  %v6327_v26 = vpop.f32.mrb[7].mxu0  ;;  %v1094_v11 = vld [vmem:[%s8133_s5 + $0x240] sm:$0xff] }
 0x11e   : > { %8302 = vst [vmem:[#allocation26_spill] sm:$0xff] %v6324_v24  ;;  %8303 = vst [vmem:[#allocation27_spill] sm:$0xff] %v6327_v26  ;;  %v6335_v13 = vpop.f32.mrb[7].mxu1  ;;  %4812 = vmatpush3.bf16.msra.mxu0 %v6289_v15  ;;  %v6342_v24 = vpack.c.bf16 %v1125_v53, %v1124_v30  ;;  %v6344_v26 = vpack.c.bf16 %v1111_v55, %v1110_v54  ;;  %v6358_v30 = vpack.c.bf16 %v1143_v12, %v1142_v3  ;;  %v1127_v53 = vld [vmem:[%s8133_s5 + $0x348] sm:$0xff]  ;;  %v1112_v54 = vld [vmem:[%s8133_s5 + $0x2d0] sm:$0xff] }
 0x11f   : > { %8304 = vst [vmem:[#allocation28_spill] sm:$0xff] %v6335_v13  ;;  %8305 = vst [vmem:[#allocation29_spill] sm:$0xff] %v6338_v40  ;;  %4844 = vmatpush3.bf16.msra.mxu1 %v6296_v7  ;;  %4814 = vmatprep.subr.bf16.mxu0 %v6298_v62  ;;  %v1095_v13 = vld [vmem:[%s8133_s5 + $0x248] sm:$0xff]  ;;  %v1113_v55 = vld [vmem:[%s8133_s5 + $0x2d8] sm:$0xff]  ;;  %v6386_v19 = vpack.c.bf16 %v1127_v53, %v1126_v2 }
 0x120   : > { %8306 = vst [vmem:[#allocation30_spill] sm:$0xff] %v6342_v24  ;;  %8307 = vst [vmem:[#allocation31_spill] sm:$0xff] %v6344_v26  ;;  %v6355_v25 = vpop.f32.mrb[8].mxu0  ;;  %4846 = vmatprep.subr.bf16.mxu1 %v6313_v27  ;;  %v1144_v3 = vld [vmem:[%s8133_s5 + $0x3d0] sm:$0xff]  ;;  %v1145_v12 = vld [vmem:[%s8133_s5 + $0x3d8] sm:$0xff]  ;;  %v6382_v15 = vpack.c.bf16 %v1095_v13, %v1094_v11  ;;  %v6388_v18 = vpack.c.bf16 %v1113_v55, %v1112_v54 }
 0x121   : > { %8308 = vst [vmem:[#allocation32_spill] sm:$0xff] %v6358_v30  ;;  %v6369_v62 = vpop.f32.mrb[8].mxu1  ;;  %v6371_v7 = vpop.f32.mrb[9].mxu0  ;;  %8310 = vst [vmem:[#allocation34_spill] sm:$0xff] %v6386_v19  ;;  %v1128_v11 = vld [vmem:[%s8133_s5 + $0x350] sm:$0xff]  ;;  %v6402_v2 = vpack.c.bf16 %v1145_v12, %v1144_v3  ;;  %v1129_v53 = vld [vmem:[%s8133_s5 + $0x358] sm:$0xff] }
 0x122   : > { %v6379_v27 = vpop.f32.mrb[9].mxu1  ;;  %4816 = vmatpush3.bf16.msra.mxu0 %v6338_v40  ;;  %8309 = vst [vmem:[#allocation33_spill] sm:$0xff] %v6382_v15  ;;  %8311 = vst [vmem:[#allocation35_spill] sm:$0xff] %v6388_v18  ;;  %v1114_v54 = vld [vmem:[%s8133_s5 + $0x2e0] sm:$0xff]  ;;  %v1115_v55 = vld [vmem:[%s8133_s5 + $0x2e8] sm:$0xff] }
 0x123   : > { %4848 = vmatpush3.bf16.msra.mxu1 %v6342_v24  ;;  %4818 = vmatprep.subr.bf16.mxu0 %v6344_v26  ;;  %8313 = vst [vmem:[#allocation37_spill] sm:$0xff] %v6402_v2  ;;  %v1146_v3 = vld [vmem:[%s8133_s5 + $0x3e0] sm:$0xff]  ;;  %v1147_v12 = vld [vmem:[%s8133_s5 + $0x3e8] sm:$0xff] }
 0x124   : > { %v6399_v13 = vpop.f32.mrb[10].mxu0  ;;  %4850 = vmatprep.subr.bf16.mxu1 %v6358_v30  ;;  %v6426_v30 = vpack.c.bf16 %v1097_v51, %v1096_v63  ;;  %v1098_v40 = vld [vmem:[%s8133_s5 + $0x260] sm:$0xff] }
 0x125   : > { %8312 = vst [vmem:[#allocation36_spill] sm:$0xff] %v6399_v13  ;;  %v6413_v26 = vpop.f32.mrb[10].mxu1  ;;  %v6415_v24 = vpop.f32.mrb[11].mxu0  ;;  %v1130_v51 = vld [vmem:[%s8133_s5 + $0x360] sm:$0xff] }
 0x126   : > { %8314 = vst [vmem:[#allocation38_spill] sm:$0xff] %v6413_v26  ;;  %8315 = vst [vmem:[#allocation39_spill] sm:$0xff] %v6415_v24  ;;  %v6423_v13 = vpop.f32.mrb[11].mxu1  ;;  %4820 = vmatpush3.bf16.msra.mxu0 %v6382_v15  ;;  %v6430_v26 = vpack.c.bf16 %v1129_v53, %v1128_v11  ;;  %v6432_v24 = vpack.c.bf16 %v1115_v55, %v1114_v54  ;;  %v6446_v11 = vpack.c.bf16 %v1147_v12, %v1146_v3  ;;  %v1131_v53 = vld [vmem:[%s8133_s5 + $0x368] sm:$0xff]  ;;  %v1116_v54 = vld [vmem:[%s8133_s5 + $0x2f0] sm:$0xff] }
 0x127   : > { %8316 = vst [vmem:[#allocation40_spill] sm:$0xff] %v6423_v13  ;;  %8317 = vst [vmem:[#allocation41_spill] sm:$0xff] %v6426_v30  ;;  %4852 = vmatpush3.bf16.msra.mxu1 %v6386_v19  ;;  %4822 = vmatprep.subr.bf16.mxu0 %v6388_v18  ;;  %v1099_v13 = vld [vmem:[%s8133_s5 + $0x268] sm:$0xff]  ;;  %v1117_v55 = vld [vmem:[%s8133_s5 + $0x2f8] sm:$0xff] }
 0x128   : > { %8318 = vst [vmem:[#allocation42_spill] sm:$0xff] %v6430_v26  ;;  %8319 = vst [vmem:[#allocation43_spill] sm:$0xff] %v6432_v24  ;;  %v6443_v63 = vpop.f32.mrb[12].mxu0  ;;  %4854 = vmatprep.subr.bf16.mxu1 %v6402_v2  ;;  %v1148_v3 = vld [vmem:[%s8133_s5 + $0x3f0] sm:$0xff]  ;;  %v1149_v12 = vld [vmem:[%s8133_s5 + $0x3f8] sm:$0xff]  ;;  %v6470_v15 = vpack.c.bf16 %v1099_v13, %v1098_v40  ;;  %v6476_v50 = vpack.c.bf16 %v1117_v55, %v1116_v54 }
 0x129   : > { %8320 = vst [vmem:[#allocation44_spill] sm:$0xff] %v6446_v11  ;;  %v6457_v18 = vpop.f32.mrb[12].mxu1  ;;  %v6459_v19 = vpop.f32.mrb[13].mxu0  ;;  %v1132_v40 = vld [vmem:[%s8133_s5 + $0x370] sm:$0xff]  ;;  %v1166_v54 = vld [vmem:[%s8133_s5 + $0x480] sm:$0xff]  ;;  %v1167_v55 = vld [vmem:[%s8133_s5 + $0x488] sm:$0xff] }
 0x12a   : > { %8321 = vst [vmem:[#allocation45_spill] sm:$0xff] %v6457_v18  ;;  %v6467_v2 = vpop.f32.mrb[13].mxu1  ;;  %4824 = vmatpush3.bf16.msra.mxu0 %v6426_v30  ;;  %v6474_v18 = vpack.c.bf16 %v1131_v53, %v1130_v51  ;;  %8323 = vst [vmem:[#allocation47_spill] sm:$0xff] %v6476_v50  ;;  %v6490_v51 = vpack.c.bf16 %v1149_v12, %v1148_v3  ;;  %v1133_v53 = vld [vmem:[%s8133_s5 + $0x378] sm:$0xff]  ;;  %v1199_v3 = vld [vmem:[%s8133_s5 + $0x588] sm:$0xff]  ;;  %v6510_v12 = vpack.c.bf16 %v1101_v47, %v1100_v41 }
 0x12b   : > { %4856 = vmatpush3.bf16.msra.mxu1 %v6430_v26  ;;  %4826 = vmatprep.subr.bf16.mxu0 %v6432_v24  ;;  %v6516_v26 = vpack.c.bf16 %v1167_v55, %v1166_v54  ;;  %v1151_v30 = vld [vmem:[%s8133_s5 + $0x408] sm:$0xff]  ;;  %v1182_v47 = vld [vmem:[%s8133_s5 + $0x500] sm:$0xff]  ;;  %v1169_v54 = vld [vmem:[%s8133_s5 + $0x498] sm:$0xff] }
 0x12c   : > { %8322 = vst [vmem:[#allocation46_spill] sm:$0xff] %v6474_v18  ;;  %v6487_v13 = vpop.f32.mrb[14].mxu0  ;;  %4858 = vmatprep.subr.bf16.mxu1 %v6446_v11  ;;  %8325 = vst [vmem:[#allocation49_spill] sm:$0xff] %v6490_v51  ;;  %v6514_v11 = vpack.c.bf16 %v1133_v53, %v1132_v40  ;;  %v1183_v40 = vld [vmem:[%s8133_s5 + $0x508] sm:$0xff]  ;;  %v1168_v53 = vld [vmem:[%s8133_s5 + $0x490] sm:$0xff] }
 0x12d   : > { %8324 = vst [vmem:[#allocation48_spill] sm:$0xff] %v6487_v13  ;;  %v6501_v24 = vpop.f32.mrb[15].mxu0  ;;  %v1198_v13 = vld [vmem:[%s8133_s5 + $0x580] sm:$0xff]  ;;  %8327 = vst [vmem:[#allocation51_spill] sm:$0xff] %v6510_v12  ;;  %v1200_v55 = vld [vmem:[%s8133_s5 + $0x590] sm:$0xff] }
 0x12e   : > { %8326 = vst [vmem:[#allocation50_spill] sm:$0xff] %v6501_v24  ;;  %4828 = vmatpush3.bf16.msra.mxu0 %v6470_v15  ;;  %8328 = vst [vmem:[#allocation52_spill] sm:$0xff] %v6514_v11  ;;  %v1150_v24 = vld [vmem:[%s8133_s5 + $0x400] sm:$0xff]  ;;  %v6525_v41 = vpack.c.bf16 %v1199_v3, %v1198_v13  ;;  %v1201_v3 = vld [vmem:[%s8133_s5 + $0x598] sm:$0xff] }
 0x12f   : > { %4860 = vmatpush3.bf16.msra.mxu1 %v6474_v18  ;;  %4830 = vmatprep.subr.bf16.mxu0 %v6476_v50  ;;  %8329 = vst [vmem:[#allocation53_spill] sm:$0xff] %v6516_v26  ;;  %v6540_v13 = vpack.c.bf16 %v1151_v30, %v1150_v24  ;;  %v6554_v50 = vpack.c.bf16 %v1183_v40, %v1182_v47  ;;  %v1152_v24 = vld [vmem:[%s8133_s5 + $0x410] sm:$0xff]  ;;  %v1153_v30 = vld [vmem:[%s8133_s5 + $0x418] sm:$0xff] }
 0x130   : > { %4862 = vmatprep.subr.bf16.mxu1 %v6490_v51  ;;  %8330 = vst [vmem:[#allocation54_spill] sm:$0xff] %v6525_v41  ;;  %v6550_v51 = vadd.f32 %v6263_v28, %v6172_v14  ;;  %v6567_v28 = vadd.f32 %v6277_v1, %v6172_v14  ;;  %v6570_v47 = vpack.c.bf16 %v1169_v54, %v1168_v53  ;;  %v1185_v40 = vld [vmem:[%s8133_s5 + $0x518] sm:$0xff]  ;;  %v1202_v54 = vld [vmem:[%s8133_s5 + $0x5a0] sm:$0xff] }
 0x131   : > { %8331 = vst [vmem:[#allocation55_spill] sm:$0xff] %v6540_v13  ;;  %8333 = vst [vmem:[#allocation57_spill] sm:$0xff] %v6554_v50  ;;  %v6583_v1 = vadd.f32 %v6371_v7, %v6172_v14  ;;  %v6586_v53 = vpack.c.bf16 %v1201_v3, %v1200_v55  ;;  %v6596_v18 = vadd.f32 %v6379_v27, %v6172_v14  ;;  %v1155_v27 = vld [vmem:[%s8133_s5 + $0x428] sm:$0xff] }
 0x132   : > { %4832 = vmatpush3.bf16.msra.mxu0 %v6510_v12  ;;  %8332 = vst [vmem:[#allocation56_spill] sm:$0xff] %v6550_v51  ;;  %v1184_v12 = vld [vmem:[%s8133_s5 + $0x510] sm:$0xff]  ;;  %8334 = vst [vmem:[#allocation58_spill] sm:$0xff] %v6570_v47  ;;  %v6600_v7 = vpack.c.bf16 %v1153_v30, %v1152_v24  ;;  %v1186_v24 = vld [vmem:[%s8133_s5 + $0x520] sm:$0xff] }
 0x133   : > { %4864 = vmatpush3.bf16.msra.mxu1 %v6514_v11  ;;  %4866 = vmatprep.subr.bf16.mxu0 %v6516_v26  ;;  %v1170_v26 = vld [vmem:[%s8133_s5 + $0x4a0] sm:$0xff]  ;;  %v1171_v11 = vld [vmem:[%s8133_s5 + $0x4a8] sm:$0xff]  ;;  %8335 = vst [vmem:[#allocation59_spill] sm:$0xff] %v6583_v1  ;;  %8336 = vst [vmem:[#allocation60_spill] sm:$0xff] %v6586_v53  ;;  %v6604_v55 = vpack.c.bf16 %v1185_v40, %v1184_v12 }
 0x134   : > { %4898 = vmatprep.subr.bf16.mxu1 %v6525_v41  ;;  %v1203_v41 = vld [vmem:[%s8133_s5 + $0x5a8] sm:$0xff]  ;;  %8337 = vst [vmem:[#allocation61_spill] sm:$0xff] %v6596_v18  ;;  %8338 = vst [vmem:[#allocation62_spill] sm:$0xff] %v6600_v7  ;;  %v6606_v3 = vpack.c.bf16 %v1171_v11, %v1170_v26  ;;  %v1172_v11 = vld [vmem:[%s8133_s5 + $0x4b0] sm:$0xff] }
 0x135   : > { %1467 = vmatmul.mubr.f32.vlgmr.msra.gmra.mrb[18].mxu0 %v6550_v51  ;;  %8339 = vst [vmem:[#allocation63_spill] sm:$0xff] %v6604_v55  ;;  %v1154_v51 = vld [vmem:[%s8133_s5 + $0x420] sm:$0xff]  ;;  %v6619_v12 = vpack.c.bf16 %v1203_v41, %v1202_v54  ;;  %v1187_v26 = vld [vmem:[%s8133_s5 + $0x528] sm:$0xff]  ;;  %v1173_v30 = vld [vmem:[%s8133_s5 + $0x4b8] sm:$0xff] }
 0x136   : > { %1537 = vmatmul.mubr.f32.vlgmr.msra.gmra.mrb[16].mxu1 %v6567_v28  ;;  %4868 = vmatpush3.bf16.msra.mxu0 %v6540_v13  ;;  %8340 = vst [vmem:[#allocation64_spill] sm:$0xff] %v6606_v3  ;;  %v1204_v40 = vld [vmem:[%s8133_s5 + $0x5b0] sm:$0xff]  ;;  %v1205_v41 = vld [vmem:[%s8133_s5 + $0x5b8] sm:$0xff]  ;;  %v6638_v54 = vpack.c.bf16 %v1155_v27, %v1154_v51 }
 0x137   : > { %1606 = vmatprep.mubr.f32.mxu0 %v6583_v1  ;;  %4900 = vmatpush3.bf16.msra.mxu1 %v6554_v50  ;;  %8341 = vst [vmem:[#allocation65_spill] sm:$0xff] %v6619_v12  ;;  %v6644_v50 = vpack.c.bf16 %v1173_v30, %v1172_v11  ;;  %v1157_v13 = vld [vmem:[%s8133_s5 + $0x438] sm:$0xff]  ;;  %v1188_v51 = vld [vmem:[%s8133_s5 + $0x530] sm:$0xff]  ;;  %v6656_v27 = vpack.c.bf16 %v1205_v41, %v1204_v40  ;;  %v1175_v11 = vld [vmem:[%s8133_s5 + $0x4c8] sm:$0xff] }
 0x138   : > { %1676 = vmatprep.mubr.f32.mxu1 %v6596_v18  ;;  %4870 = vmatprep.subr.bf16.mxu0 %v6570_v47  ;;  %8342 = vst [vmem:[#allocation66_spill] sm:$0xff] %v6638_v54  ;;  %v6642_v47 = vpack.c.bf16 %v1187_v26, %v1186_v24  ;;  %v1189_v24 = vld [vmem:[%s8133_s5 + $0x538] sm:$0xff]  ;;  %v1174_v26 = vld [vmem:[%s8133_s5 + $0x4c0] sm:$0xff]  ;;  %v1207_v40 = vld [vmem:[%s8133_s5 + $0x5c8] sm:$0xff] }
 0x139   : > { %4902 = vmatprep.subr.bf16.mxu1 %v6586_v53  ;;  %8344 = vst [vmem:[#allocation68_spill] sm:$0xff] %v6644_v50  ;;  %v1156_v53 = vld [vmem:[%s8133_s5 + $0x430] sm:$0xff]  ;;  %8345 = vst [vmem:[#allocation69_spill] sm:$0xff] %v6656_v27  ;;  %v1206_v30 = vld [vmem:[%s8133_s5 + $0x5c0] sm:$0xff] }
 0x13a   : > { %4872 = vmatpush3.bf16.msra.mxu0 %v6600_v7  ;;  %8343 = vst [vmem:[#allocation67_spill] sm:$0xff] %v6642_v47  ;;  %v6674_v41 = vpack.c.bf16 %v1157_v13, %v1156_v53  ;;  %v1159_v7 = vld [vmem:[%s8133_s5 + $0x448] sm:$0xff]  ;;  %v1190_v13 = vld [vmem:[%s8133_s5 + $0x540] sm:$0xff]  ;;  %v6692_v53 = vpack.c.bf16 %v1207_v40, %v1206_v30  ;;  %v1209_v30 = vld [vmem:[%s8133_s5 + $0x5d8] sm:$0xff] }
 0x13b   : > { %4904 = vmatpush3.bf16.msra.mxu1 %v6604_v55  ;;  %4874 = vmatprep.subr.bf16.mxu0 %v6606_v3  ;;  %v6680_v3 = vpack.c.bf16 %v1175_v11, %v1174_v26  ;;  %v1158_v55 = vld [vmem:[%s8133_s5 + $0x440] sm:$0xff]  ;;  %v1177_v26 = vld [vmem:[%s8133_s5 + $0x4d8] sm:$0xff]  ;;  %v1208_v11 = vld [vmem:[%s8133_s5 + $0x5d0] sm:$0xff] }
 0x13c   : > { %4906 = vmatprep.subr.bf16.mxu1 %v6619_v12  ;;  %8346 = vst [vmem:[#allocation70_spill] sm:$0xff] %v6674_v41  ;;  %v6678_v12 = vpack.c.bf16 %v1189_v24, %v1188_v51  ;;  %8349 = vst [vmem:[#allocation73_spill] sm:$0xff] %v6692_v53  ;;  %v1191_v51 = vld [vmem:[%s8133_s5 + $0x548] sm:$0xff]  ;;  %v1176_v24 = vld [vmem:[%s8133_s5 + $0x4d0] sm:$0xff]  ;;  %v6710_v40 = vpack.c.bf16 %v1159_v7, %v1158_v55  ;;  %v6728_v55 = vpack.c.bf16 %v1209_v30, %v1208_v11 }
 0x13d   : > { %8348 = vst [vmem:[#allocation72_spill] sm:$0xff] %v6680_v3  ;;  %v1192_v7 = vld [vmem:[%s8133_s5 + $0x550] sm:$0xff]  ;;  %v1211_v11 = vld [vmem:[%s8133_s5 + $0x5e8] sm:$0xff] }
 0x13e   : > { %4876 = vmatpush3.bf16.msra.mxu0 %v6638_v54  ;;  %8347 = vst [vmem:[#allocation71_spill] sm:$0xff] %v6678_v12  ;;  %8350 = vst [vmem:[#allocation74_spill] sm:$0xff] %v6710_v40  ;;  %v1161_v54 = vld [vmem:[%s8133_s5 + $0x458] sm:$0xff] }
 0x13f   : > { %4908 = vmatpush3.bf16.msra.mxu1 %v6642_v47  ;;  %4878 = vmatprep.subr.bf16.mxu0 %v6644_v50  ;;  %v6716_v50 = vpack.c.bf16 %v1177_v26, %v1176_v24  ;;  %v1160_v47 = vld [vmem:[%s8133_s5 + $0x450] sm:$0xff]  ;;  %8353 = vst [vmem:[#allocation77_spill] sm:$0xff] %v6728_v55  ;;  %v1179_v24 = vld [vmem:[%s8133_s5 + $0x4e8] sm:$0xff]  ;;  %v1210_v26 = vld [vmem:[%s8133_s5 + $0x5e0] sm:$0xff] }
 0x140   : > { %4910 = vmatprep.subr.bf16.mxu1 %v6656_v27  ;;  %v6714_v27 = vpack.c.bf16 %v1191_v51, %v1190_v13  ;;  %v1193_v13 = vld [vmem:[%s8133_s5 + $0x558] sm:$0xff]  ;;  %v1178_v51 = vld [vmem:[%s8133_s5 + $0x4e0] sm:$0xff]  ;;  %v6746_v30 = vpack.c.bf16 %v1161_v54, %v1160_v47  ;;  %v6764_v54 = vpack.c.bf16 %v1211_v11, %v1210_v26 }
 0x141   : > { %8352 = vst [vmem:[#allocation76_spill] sm:$0xff] %v6716_v50  ;;  %v1194_v47 = vld [vmem:[%s8133_s5 + $0x560] sm:$0xff]  ;;  %v1213_v26 = vld [vmem:[%s8133_s5 + $0x5f8] sm:$0xff] }
 0x142   : > { %4880 = vmatpush3.bf16.msra.mxu0 %v6674_v41  ;;  %8351 = vst [vmem:[#allocation75_spill] sm:$0xff] %v6714_v27  ;;  %8354 = vst [vmem:[#allocation78_spill] sm:$0xff] %v6746_v30  ;;  %v1163_v41 = vld [vmem:[%s8133_s5 + $0x468] sm:$0xff] }
 0x143   : > { %4912 = vmatpush3.bf16.msra.mxu1 %v6678_v12  ;;  %4882 = vmatprep.subr.bf16.mxu0 %v6680_v3  ;;  %v6752_v3 = vpack.c.bf16 %v1179_v24, %v1178_v51  ;;  %v1162_v12 = vld [vmem:[%s8133_s5 + $0x460] sm:$0xff]  ;;  %8357 = vst [vmem:[#allocation81_spill] sm:$0xff] %v6764_v54  ;;  %v1181_v51 = vld [vmem:[%s8133_s5 + $0x4f8] sm:$0xff]  ;;  %v1212_v24 = vld [vmem:[%s8133_s5 + $0x5f0] sm:$0xff] }
 0x144   : > { %4914 = vmatprep.subr.bf16.mxu1 %v6692_v53  ;;  %v6750_v53 = vpack.c.bf16 %v1193_v13, %v1192_v7  ;;  %v1195_v7 = vld [vmem:[%s8133_s5 + $0x568] sm:$0xff]  ;;  %v1180_v13 = vld [vmem:[%s8133_s5 + $0x4f0] sm:$0xff]  ;;  %v6782_v11 = vpack.c.bf16 %v1163_v41, %v1162_v12  ;;  %v6800_v41 = vpack.c.bf16 %v1213_v26, %v1212_v24 }
 0x145   : > { %8356 = vst [vmem:[#allocation80_spill] sm:$0xff] %v6752_v3  ;;  %v1196_v12 = vld [vmem:[%s8133_s5 + $0x570] sm:$0xff] }
 0x146   : > { %4884 = vmatpush3.bf16.msra.mxu0 %v6710_v40  ;;  %8355 = vst [vmem:[#allocation79_spill] sm:$0xff] %v6750_v53  ;;  %8358 = vst [vmem:[#allocation82_spill] sm:$0xff] %v6782_v11  ;;  %v1165_v40 = vld [vmem:[%s8133_s5 + $0x478] sm:$0xff] }
 0x147   : > { %4916 = vmatpush3.bf16.msra.mxu1 %v6714_v27  ;;  %4886 = vmatprep.subr.bf16.mxu0 %v6716_v50  ;;  %v6788_v50 = vpack.c.bf16 %v1181_v51, %v1180_v13  ;;  %v1164_v27 = vld [vmem:[%s8133_s5 + $0x470] sm:$0xff]  ;;  %8361 = vst [vmem:[#allocation85_spill] sm:$0xff] %v6800_v41  ;;  %v1231_v13 = vld [vmem:[%s8133_s5 + $0x688] sm:$0xff] }
 0x148   : > { %4918 = vmatprep.subr.bf16.mxu1 %v6728_v55  ;;  %v6786_v55 = vpack.c.bf16 %v1195_v7, %v1194_v47  ;;  %v1197_v47 = vld [vmem:[%s8133_s5 + $0x578] sm:$0xff]  ;;  %v1230_v7 = vld [vmem:[%s8133_s5 + $0x680] sm:$0xff]  ;;  %v6812_v51 = vpack.c.bf16 %v1165_v40, %v1164_v27  ;;  %v1247_v40 = vld [vmem:[%s8133_s5 + $0x708] sm:$0xff] }
 0x149   : > { %8360 = vst [vmem:[#allocation84_spill] sm:$0xff] %v6788_v50  ;;  %v6816_v24 = vpack.c.bf16 %v1197_v47, %v1196_v12  ;;  %v6818_v26 = vpack.c.bf16 %v1231_v13, %v1230_v7  ;;  %v1246_v27 = vld [vmem:[%s8133_s5 + $0x700] sm:$0xff]  ;;  %v1232_v12 = vld [vmem:[%s8133_s5 + $0x690] sm:$0xff]  ;;  %v1233_v47 = vld [vmem:[%s8133_s5 + $0x698] sm:$0xff]  ;;  %v6844_v13 = vadd.f32 %v6355_v25, %v6172_v14  ;;  %v6861_v25 = vadd.f32 %v6369_v62, %v6172_v14 }
 0x14a   : > { %4888 = vmatpush3.bf16.msra.mxu0 %v6746_v30  ;;  %8359 = vst [vmem:[#allocation83_spill] sm:$0xff] %v6786_v55  ;;  %8362 = vst [vmem:[#allocation86_spill] sm:$0xff] %v6812_v51  ;;  %v6877_v62 = vadd.f32 %v6459_v19, %v6172_v14  ;;  %v1218_v19 = vld [vmem:[%s8133_s5 + $0x620] sm:$0xff] }
 0x14b   : > { %4920 = vmatpush3.bf16.msra.mxu1 %v6750_v53  ;;  %4890 = vmatprep.subr.bf16.mxu0 %v6752_v3  ;;  %8363 = vst [vmem:[#allocation87_spill] sm:$0xff] %v6816_v24  ;;  %8364 = vst [vmem:[#allocation88_spill] sm:$0xff] %v6818_v26  ;;  %v1215_v3 = vld [vmem:[%s8133_s5 + $0x608] sm:$0xff] }
 0x14c   : > { %4922 = vmatprep.subr.bf16.mxu1 %v6764_v54  ;;  %v1214_v54 = vld [vmem:[%s8133_s5 + $0x600] sm:$0xff]  ;;  %8366 = vst [vmem:[#allocation90_spill] sm:$0xff] %v6844_v13  ;;  %8368 = vst [vmem:[#allocation92_spill] sm:$0xff] %v6861_v25 }
 0x14d   : > { %v6840_v7 = vpack.c.bf16 %v1215_v3, %v1214_v54  ;;  %v1248_v3 = vld [vmem:[%s8133_s5 + $0x710] sm:$0xff]  ;;  %v8200_v54 = vmov 0.0|0.0   ;;  %8370 = vst [vmem:[#allocation94_spill] sm:$0xff] %v6877_v62 }
 0x14e   : > { %4892 = vmatpush3.bf16.msra.mxu0 %v6782_v11 }
 0x14f   : > { %4924 = vmatpush3.bf16.msra.mxu1 %v6786_v55  ;;  %4894 = vmatprep.subr.bf16.mxu0 %v6788_v50  ;;  %8365 = vst [vmem:[#allocation89_spill] sm:$0xff] %v6840_v7  ;;  %v1216_v50 = vld [vmem:[%s8133_s5 + $0x610] sm:$0xff]  ;;  %v1221_v55 = vld [vmem:[%s8133_s5 + $0x638] sm:$0xff] }
 0x150   : > { %4926 = vmatprep.subr.bf16.mxu1 %v6800_v41  ;;  %v6848_v41 = vpack.c.bf16 %v1247_v40, %v1246_v27  ;;  %v6864_v27 = vpack.c.bf16 %v1233_v47, %v1232_v12  ;;  %v1249_v40 = vld [vmem:[%s8133_s5 + $0x718] sm:$0xff] }
 0x151   : > { %v6886_v47 = vpack.c.bf16 %v1249_v40, %v1248_v3  ;;  %v1237_v3 = vld [vmem:[%s8133_s5 + $0x6b8] sm:$0xff]  ;;  %v8375_v40 = vmov 0.0  }
 0x152   : > { %4896 = vmatpush3.bf16.msra.mxu0 %v6812_v51  ;;  %8367 = vst [vmem:[#allocation91_spill] sm:$0xff] %v6848_v41  ;;  %v1217_v51 = vld [vmem:[%s8133_s5 + $0x618] sm:$0xff]  ;;  %8369 = vst [vmem:[#allocation93_spill] sm:$0xff] %v6864_v27 }
 0x153   : > { %4928 = vmatpush3.bf16.msra.mxu1 %v6816_v24  ;;  %4930 = vmatprep.subr.bf16.mxu0 %v6818_v26  ;;  %v1234_v26 = vld [vmem:[%s8133_s5 + $0x6a0] sm:$0xff]  ;;  %v1235_v24 = vld [vmem:[%s8133_s5 + $0x6a8] sm:$0xff]  ;;  %v6882_v12 = vpack.c.bf16 %v1217_v51, %v1216_v50  ;;  %8372 = vst [vmem:[#allocation96_spill] sm:$0xff] %v6886_v47  ;;  %v8374_v51 = vmov 0.0|0.0  }
 0x154   : > { %4961 = vmatprep.subr.bf16.mxu1 %v8200_v54  ;;  %v6888_v54 = vpack.c.bf16 %v1235_v24, %v1234_v26  ;;  %v1250_v50 = vld [vmem:[%s8133_s5 + $0x720] sm:$0xff]  ;;  %v1251_v24 = vld [vmem:[%s8133_s5 + $0x728] sm:$0xff]  ;;  %v1236_v26 = vld [vmem:[%s8133_s5 + $0x6b0] sm:$0xff] }
 0x155   : > { %1607 = vmatmul.mubr.f32.vlgmr.msra.gmra.mrb[20].mxu0 %v6844_v13  ;;  %8371 = vst [vmem:[#allocation95_spill] sm:$0xff] %v6882_v12 }
 0x156   : > { %1677 = vmatmul.mubr.f32.vlgmr.msra.gmra.mrb[18].mxu1 %v6861_v25  ;;  %4932 = vmatpush3.bf16.msra.mxu0 %v6840_v7  ;;  %8373 = vst [vmem:[#allocation97_spill] sm:$0xff] %v6888_v54  ;;  %v1219_v25 = vld [vmem:[%s8133_s5 + $0x628] sm:$0xff]  ;;  %v6919_v7 = vpack.c.bf16 %v1237_v3, %v1236_v26 }
 0x157   : > { %1746 = vmatprep.mubr.f32.mxu0 %v6877_v62  ;;  %4963 = vmatpush3.bf16.msra.mxu1 %v6848_v41  ;;  %v6917_v41 = vpack.c.bf16 %v1251_v24, %v1250_v50  ;;  %v1220_v62 = vld [vmem:[%s8133_s5 + $0x630] sm:$0xff]  ;;  %v1238_v50 = vld [vmem:[%s8133_s5 + $0x6c0] sm:$0xff]  ;;  %v1239_v24 = vld [vmem:[%s8133_s5 + $0x6c8] sm:$0xff] }
 0x158   : > { %4934 = vmatprep.subr.bf16.mxu0 %v6864_v27  ;;  %4964 = vmatprep.subr.bf16.mxu1 %v8374_v51  ;;  %v6913_v27 = vpack.c.bf16 %v1219_v25, %v1218_v19  ;;  %8378 = vst [vmem:[#allocation100_spill] sm:$0xff] %v6919_v7  ;;  %v1252_v25 = vld [vmem:[%s8133_s5 + $0x730] sm:$0xff]  ;;  %v1253_v19 = vld [vmem:[%s8133_s5 + $0x738] sm:$0xff]  ;;  %v6941_v26 = vpack.c.bf16 %v1221_v55, %v1220_v62  ;;  %v1254_v55 = vld [vmem:[%s8133_s5 + $0x740] sm:$0xff] }
 0x159   : > { %4629 = vmatprep.mubr.msk.f32.mxu1 %vm5597_vm1, %v8375_v40  ;;  %8377 = vst [vmem:[#allocation99_spill] sm:$0xff] %v6917_v41  ;;  %v6945_v3 = vpack.c.bf16 %v1253_v19, %v1252_v25  ;;  %v1255_v62 = vld [vmem:[%s8133_s5 + $0x748] sm:$0xff]  ;;  %v1240_v25 = vld [vmem:[%s8133_s5 + $0x6d0] sm:$0xff]  ;;  %v1241_v19 = vld [vmem:[%s8133_s5 + $0x6d8] sm:$0xff] }
 0x15a   : > { %4936 = vmatpush3.bf16.msra.mxu0 %v6882_v12  ;;  %8376 = vst [vmem:[#allocation98_spill] sm:$0xff] %v6913_v27  ;;  %8379 = vst [vmem:[#allocation101_spill] sm:$0xff] %v6941_v26  ;;  %v1223_v12 = vld [vmem:[%s8133_s5 + $0x648] sm:$0xff] }
 0x15b   : > { %4966 = vmatpush3.bf16.msra.mxu1 %v6886_v47  ;;  %4938 = vmatprep.subr.bf16.mxu0 %v6888_v54  ;;  %8380 = vst [vmem:[#allocation102_spill] sm:$0xff] %v6945_v3  ;;  %v6947_v54 = vpack.c.bf16 %v1239_v24, %v1238_v50  ;;  %v1222_v47 = vld [vmem:[%s8133_s5 + $0x640] sm:$0xff]  ;;  %v6973_v24 = vpack.c.bf16 %v1255_v62, %v1254_v55  ;;  %v1243_v62 = vld [vmem:[%s8133_s5 + $0x6e8] sm:$0xff] }
 0x15c   : > { %4967 = vmatprep.subr.bf16.mxu1 %v8374_v51  ;;  %v6969_v50 = vpack.c.bf16 %v1223_v12, %v1222_v47  ;;  %v1256_v12 = vld [vmem:[%s8133_s5 + $0x750] sm:$0xff]  ;;  %v1257_v47 = vld [vmem:[%s8133_s5 + $0x758] sm:$0xff]  ;;  %v1242_v55 = vld [vmem:[%s8133_s5 + $0x6e0] sm:$0xff] }
 0x15d   : > { %8381 = vst [vmem:[#allocation103_spill] sm:$0xff] %v6947_v54  ;;  %8383 = vst [vmem:[#allocation105_spill] sm:$0xff] %v6973_v24 }
 0x15e   : > { %4940 = vmatpush3.bf16.msra.mxu0 %v6913_v27  ;;  %8382 = vst [vmem:[#allocation104_spill] sm:$0xff] %v6969_v50  ;;  %v1225_v27 = vld [vmem:[%s8133_s5 + $0x658] sm:$0xff] }
 0x15f   : > { %4969 = vmatpush3.bf16.msra.mxu1 %v6917_v41  ;;  %4942 = vmatprep.subr.bf16.mxu0 %v6919_v7  ;;  %v6975_v7 = vpack.c.bf16 %v1241_v19, %v1240_v25  ;;  %v1224_v41 = vld [vmem:[%s8133_s5 + $0x650] sm:$0xff]  ;;  %v7001_v19 = vpack.c.bf16 %v1257_v47, %v1256_v12  ;;  %v1245_v47 = vld [vmem:[%s8133_s5 + $0x6f8] sm:$0xff] }
 0x160   : > { %4970 = vmatprep.subr.bf16.mxu1 %v8374_v51  ;;  %v6997_v25 = vpack.c.bf16 %v1225_v27, %v1224_v41  ;;  %v1258_v41 = vld [vmem:[%s8133_s5 + $0x760] sm:$0xff]  ;;  %v1259_v27 = vld [vmem:[%s8133_s5 + $0x768] sm:$0xff]  ;;  %v1244_v12 = vld [vmem:[%s8133_s5 + $0x6f0] sm:$0xff] }
 0x161   : > { %8384 = vst [vmem:[#allocation106_spill] sm:$0xff] %v6975_v7  ;;  %8386 = vst [vmem:[#allocation108_spill] sm:$0xff] %v7001_v19 }
 0x162   : > { %4944 = vmatpush3.bf16.msra.mxu0 %v6941_v26  ;;  %8385 = vst [vmem:[#allocation107_spill] sm:$0xff] %v6997_v25  ;;  %v1227_v26 = vld [vmem:[%s8133_s5 + $0x668] sm:$0xff] }
 0x163   : > { %4972 = vmatpush3.bf16.msra.mxu1 %v6945_v3  ;;  %4946 = vmatprep.subr.bf16.mxu0 %v6947_v54  ;;  %v7003_v54 = vpack.c.bf16 %v1243_v62, %v1242_v55  ;;  %v1226_v3 = vld [vmem:[%s8133_s5 + $0x660] sm:$0xff]  ;;  %v7029_v62 = vpack.c.bf16 %v1259_v27, %v1258_v41 }
 0x164   : > { %4973 = vmatprep.subr.bf16.mxu1 %v8374_v51  ;;  %v7025_v55 = vpack.c.bf16 %v1227_v26, %v1226_v3  ;;  %v1260_v26 = vld [vmem:[%s8133_s5 + $0x770] sm:$0xff]  ;;  %v1261_v3 = vld [vmem:[%s8133_s5 + $0x778] sm:$0xff] }
 0x165   : > { %8387 = vst [vmem:[#allocation109_spill] sm:$0xff] %v7003_v54  ;;  %8389 = vst [vmem:[#allocation111_spill] sm:$0xff] %v7029_v62  ;;  %v7051_v27 = vpack.c.bf16 %v1261_v3, %v1260_v26  ;;  %v1822_v26 = vld [vmem:[%s8134_s6] sm:$0xff]  ;;  %v1837_v3 = vld [vmem:[%s8134_s6 + $0x78] sm:$0xff] }
 0x166   : > { %4948 = vmatpush3.bf16.msra.mxu0 %v6969_v50  ;;  %8388 = vst [vmem:[#allocation110_spill] sm:$0xff] %v7025_v55  ;;  %v1229_v50 = vld [vmem:[%s8133_s5 + $0x678] sm:$0xff] }
 0x167   : > { %4975 = vmatpush3.bf16.msra.mxu1 %v6973_v24  ;;  %4950 = vmatprep.subr.bf16.mxu0 %v6975_v7  ;;  %v7031_v7 = vpack.c.bf16 %v1245_v47, %v1244_v12  ;;  %v1228_v24 = vld [vmem:[%s8133_s5 + $0x670] sm:$0xff]  ;;  %8392 = vst [vmem:[#allocation114_spill] sm:$0xff] %v7051_v27  ;;  %v7057_v12 = vadd.f32 %v6443_v63, %v6172_v14  ;;  %v1838_v63 = vld [vmem:[%s8134_s6 + $0x80] sm:$0xff] }
 0x168   : > { %4976 = vmatprep.subr.bf16.mxu1 %v8374_v51  ;;  %v7047_v41 = vpack.c.bf16 %v1229_v50, %v1228_v24  ;;  %v7062_v50 = vadd.f32 %v6467_v2, %v6172_v14  ;;  %v1823_v24 = vld [vmem:[%s8134_s6 + $0x8] sm:$0xff]  ;;  %v1825_v14 = vld [vmem:[%s8134_s6 + $0x18] sm:$0xff]  ;;  %v1840_v47 = vld [vmem:[%s8134_s6 + $0x90] sm:$0xff] }
 0x169   : > { %8390 = vst [vmem:[#allocation112_spill] sm:$0xff] %v7031_v7  ;;  %8393 = vst [vmem:[#allocation115_spill] sm:$0xff] %v7057_v12  ;;  %v7077_v2 = vpack.c.bf16 %v1838_v63, %v1823_v24  ;;  %v1824_v24 = vld [vmem:[%s8134_s6 + $0x10] sm:$0xff]  ;;  %v1839_v63 = vld [vmem:[%s8134_s6 + $0x88] sm:$0xff] }
 0x16a   : > { %4952 = vmatpush3.bf16.msra.mxu0 %v6997_v25  ;;  %8391 = vst [vmem:[#allocation113_spill] sm:$0xff] %v7047_v41  ;;  %8394 = vst [vmem:[#allocation116_spill] sm:$0xff] %v7062_v50 }
 0x16b   : > { %4978 = vmatpush3.bf16.msra.mxu1 %v7001_v19  ;;  %4954 = vmatprep.subr.bf16.mxu0 %v7003_v54  ;;  %8395 = vst [vmem:[#allocation117_spill] sm:$0xff] %v7077_v2 }
 0x16c   : > { %4979 = vmatprep.subr.bf16.mxu1 %v8374_v51 }
 0x16e   : > { %4956 = vmatpush3.bf16.msra.mxu0 %v7025_v55 }
 0x16f   : > { %4981 = vmatpush3.bf16.msra.mxu1 %v7029_v62  ;;  %4958 = vmatprep.subr.bf16.mxu0 %v7031_v7  ;;  %v7102_v7 = vpack.c.bf16 %v1839_v63, %v1824_v24  ;;  %v1852_v63 = vld [vmem:[%s8134_s6 + $0xf0] sm:$0xff]  ;;  %v1854_v62 = vld [vmem:[%s8134_s6 + $0x100] sm:$0xff] }
 0x170   : > { %4982 = vmatprep.subr.bf16.mxu1 %v8374_v51 }
 0x171   : > { %8398 = vst [vmem:[#allocation120_spill] sm:$0xff] %v7102_v7 }
 0x172   : > { %4960 = vmatpush3.bf16.msra.mxu0 %v7047_v41  ;;  %v7090_v41 = vpack.c.bf16 %v1837_v3, %v1822_v26  ;;  %v1870_v26 = vld [vmem:[%s8134_s6 + $0x180] sm:$0xff] }
 0x173   : > { %4984 = vmatpush3.bf16.msra.mxu1 %v7051_v27  ;;  %v7088_v27 = vpack.c.bf16 %v1840_v47, %v1825_v14  ;;  %4986 = vmatprep.subr.bf16.mxu0 %v7077_v2  ;;  %v1868_v14 = vld [vmem:[%s8134_s6 + $0x170] sm:$0xff]  ;;  %v1855_v47 = vld [vmem:[%s8134_s6 + $0x108] sm:$0xff] }
 0x174   : > { %8397 = vst [vmem:[#allocation119_spill] sm:$0xff] %v7090_v41  ;;  %v7117_v24 = vpack.c.bf16 %v1870_v26, %v1855_v47  ;;  %v1867_v2 = vld [vmem:[%s8134_s6 + $0x168] sm:$0xff]  ;;  %v1898_v47 = vld [vmem:[%s8134_s6 + $0x260] sm:$0xff] }
 0x175   : > { %1747 = vmatmul.mubr.f32.vlgmr.msra.gmra.mrb[22].mxu0 %v7057_v12  ;;  %8396 = vst [vmem:[#allocation118_spill] sm:$0xff] %v7088_v27  ;;  %5002 = vmatprep.subr.bf16.mxu1 %v7088_v27  ;;  %v7129_v27 = vpack.c.bf16 %v1867_v2, %v1852_v63  ;;  %v1885_v63 = vld [vmem:[%s8134_s6 + $0x1f8] sm:$0xff] }
 0x176   : > { %4630 = vmatmul.mubr.f32.vlgmr.msra.gmra.mrb[20].mxu1 %v7062_v50  ;;  %2010 = vmatprep.mubr.f32.mxu0 %v8375_v40  ;;  %v1853_v50 = vld [vmem:[%s8134_s6 + $0xf8] sm:$0xff]  ;;  %8400 = vst [vmem:[#allocation122_spill] sm:$0xff] %v7117_v24 }
 0x177   : > { %2081 = vmatprep.mubr.f32.mxu1 %v8375_v40  ;;  %4988 = vmatpush1.bf16.msra.mxu0 %v7090_v41  ;;  %v7115_v3 = vpack.c.bf16 %v1868_v14, %v1853_v50  ;;  %8401 = vst [vmem:[#allocation123_spill] sm:$0xff] %v7129_v27  ;;  %v1869_v50 = vld [vmem:[%s8134_s6 + $0x178] sm:$0xff]  ;;  %v1883_v14 = vld [vmem:[%s8134_s6 + $0x1e8] sm:$0xff] }
 0x178   : > { %5004 = vmatpush1.bf16.msra.mxu1 %v7102_v7  ;;  %v7142_v26 = vpack.c.bf16 %v1869_v50, %v1854_v62  ;;  %v7144_v2 = vpack.c.bf16 %v1898_v47, %v1883_v14  ;;  %v1900_v7 = vld [vmem:[%s8134_s6 + $0x270] sm:$0xff]  ;;  %v1882_v62 = vld [vmem:[%s8134_s6 + $0x1e0] sm:$0xff]  ;;  %v1897_v50 = vld [vmem:[%s8134_s6 + $0x258] sm:$0xff] }
 0x179   : > { %8399 = vst [vmem:[#allocation121_spill] sm:$0xff] %v7115_v3  ;;  %4990 = vmatprep.subr.bf16.mxu0 %v7115_v3  ;;  %5006 = vmatprep.subr.bf16.mxu1 %v7117_v24  ;;  %v7152_v41 = vpack.c.bf16 %v1900_v7, %v1885_v63  ;;  %v1884_v7 = vld [vmem:[%s8134_s6 + $0x1f0] sm:$0xff]  ;;  %v7167_v14 = vpack.c.bf16 %v1897_v50, %v1882_v62  ;;  %v1899_v47 = vld [vmem:[%s8134_s6 + $0x268] sm:$0xff] }
 0x17a   : > { %8402 = vst [vmem:[#allocation124_spill] sm:$0xff] %v7142_v26  ;;  %8403 = vst [vmem:[#allocation125_spill] sm:$0xff] %v7144_v2  ;;  %v7172_v63 = vpack.c.bf16 %v1899_v47, %v1884_v7  ;;  %v1915_v62 = vld [vmem:[%s8134_s6 + $0x2e8] sm:$0xff]  ;;  %v1930_v7 = vld [vmem:[%s8134_s6 + $0x360] sm:$0xff] }
 0x17b   : > { %8404 = vst [vmem:[#allocation126_spill] sm:$0xff] %v7152_v41  ;;  %4992 = vmatpush1.bf16.msra.mxu0 %v7129_v27  ;;  %8405 = vst [vmem:[#allocation127_spill] sm:$0xff] %v7167_v14  ;;  %v1912_v47 = vld [vmem:[%s8134_s6 + $0x2d0] sm:$0xff] }
 0x17c   : > { %5008 = vmatpush1.bf16.msra.mxu1 %v7142_v26  ;;  %4994 = vmatprep.subr.bf16.mxu0 %v7144_v2  ;;  %8406 = vst [vmem:[#allocation128_spill] sm:$0xff] %v7172_v63  ;;  %v1928_v2 = vld [vmem:[%s8134_s6 + $0x350] sm:$0xff]  ;;  %v7196_v26 = vpack.c.bf16 %v1930_v7, %v1915_v62  ;;  %v1842_v62 = vld [vmem:[%s8134_s6 + $0xa0] sm:$0xff]  ;;  %v1829_v7 = vld [vmem:[%s8134_s6 + $0x38] sm:$0xff] }
 0x17d   : > { %5010 = vmatprep.subr.bf16.mxu1 %v7152_v41  ;;  %v1913_v41 = vld [vmem:[%s8134_s6 + $0x2d8] sm:$0xff] }
 0x17e   : > { %v7185_v50 = vpack.c.bf16 %v1928_v2, %v1913_v41  ;;  %8408 = vst [vmem:[#allocation130_spill] sm:$0xff] %v7196_v26  ;;  %v1914_v41 = vld [vmem:[%s8134_s6 + $0x2e0] sm:$0xff]  ;;  %v1929_v2 = vld [vmem:[%s8134_s6 + $0x358] sm:$0xff] }
 0x17f   : > { %4996 = vmatpush1.bf16.msra.mxu0 %v7167_v14  ;;  %v1927_v14 = vld [vmem:[%s8134_s6 + $0x348] sm:$0xff] }
 0x180   : > { %5012 = vmatpush1.bf16.msra.mxu1 %v7172_v63  ;;  %8407 = vst [vmem:[#allocation129_spill] sm:$0xff] %v7185_v50  ;;  %v7198_v27 = vpack.c.bf16 %v1927_v14, %v1912_v47  ;;  %4998 = vmatprep.subr.bf16.mxu0 %v7185_v50  ;;  %v7207_v63 = vpack.c.bf16 %v1929_v2, %v1914_v41  ;;  %v1827_v14 = vld [vmem:[%s8134_s6 + $0x28] sm:$0xff]  ;;  %v1844_v41 = vld [vmem:[%s8134_s6 + $0xb0] sm:$0xff] }
 0x181   : > { %5014 = vmatprep.subr.bf16.mxu1 %v7196_v26  ;;  %v7221_v47 = vpack.c.bf16 %v1842_v62, %v1827_v14  ;;  %v7226_v2 = vpack.c.bf16 %v1844_v41, %v1829_v7 }
 0x182   : > { %8409 = vst [vmem:[#allocation131_spill] sm:$0xff] %v7198_v27  ;;  %8410 = vst [vmem:[#allocation132_spill] sm:$0xff] %v7207_v63 }
 0x183   : > { %5000 = vmatpush1.bf16.msra.mxu0 %v7198_v27  ;;  %8411 = vst [vmem:[#allocation133_spill] sm:$0xff] %v7221_v47  ;;  %8412 = vst [vmem:[#allocation134_spill] sm:$0xff] %v7226_v2 }
 0x184   : > { %5016 = vmatpush1.bf16.msra.mxu1 %v7207_v63  ;;  %5018 = vmatprep.subr.bf16.mxu0 %v7221_v47 }
 0x185   : > { %5034 = vmatprep.subr.bf16.mxu1 %v7226_v2 }
 0x1e8   : > { %v4080_v27 = vpop.f32.mrb[16].mxu0 }
 0x1e9   : > { %v4115_v26 = vpop.f32.mrb[14].mxu1  ;;  %v4081_v50 = vpop.f32.mrb[17].mxu0 }
 0x1ea   : > { %v4082_v24 = vadd.f32 %v4081_v50, %v4080_v27  ;;  %v4116_v3 = vpop.f32.mrb[15].mxu1 }
 0x1eb   : > { %v4117_v12 = vadd.f32 %v4116_v3, %v4115_v26 }
 0x1ed   : > { %v1399_v55 = vadd.f32 %v4117_v12, %v4082_v24  ;;  %v1826_v12 = vld [vmem:[%s8134_s6 + $0x20] sm:$0xff] }
 0x208   : > { %v4150_v63 = vpop.f32.mrb[18].mxu0 }
 0x209   : > { %v4185_v14 = vpop.f32.mrb[16].mxu1  ;;  %v4151_v62 = vpop.f32.mrb[19].mxu0 }
 0x20a   : > { %v4152_v54 = vadd.f32 %v4151_v62, %v4150_v63  ;;  %v4186_v19 = vpop.f32.mrb[17].mxu1 }
 0x20b   : > { %v4187_v25 = vadd.f32 %v4186_v19, %v4185_v14  ;;  %v1828_v19 = vld [vmem:[%s8134_s6 + $0x30] sm:$0xff] }
 0x20c   : > { %v1469_v13 = vadd.f32 %v4152_v54, %v1399_v55  ;;  %v1841_v54 = vld [vmem:[%s8134_s6 + $0x98] sm:$0xff]  ;;  %v1874_v55 = vld [vmem:[%s8134_s6 + $0x1a0] sm:$0xff] }
 0x20d   : > { %v7254_v26 = vpack.c.bf16 %v1841_v54, %v1826_v12  ;;  %v1904_v12 = vld [vmem:[%s8134_s6 + $0x290] sm:$0xff] }
 0x20e   : > { %v1539_v7 = vadd.f32 %v4187_v25, %v1469_v13 }
 0x228   : > { %v4220_v41 = vpop.f32.mrb[20].mxu0 }
 0x229   : > { %v4255_v11 = vpop.f32.mrb[18].mxu1  ;;  %v4221_v47 = vpop.f32.mrb[21].mxu0 }
 0x22a   : > { %v4222_v53 = vadd.f32 %v4221_v47, %v4220_v41  ;;  %v4256_v2 = vpop.f32.mrb[19].mxu1  ;;  %v1856_v47 = vld [vmem:[%s8134_s6 + $0x110] sm:$0xff]  ;;  %v1873_v41 = vld [vmem:[%s8134_s6 + $0x198] sm:$0xff] }
 0x22b   : > { %v4257_v30 = vadd.f32 %v4256_v2, %v4255_v11  ;;  %v1859_v11 = vld [vmem:[%s8134_s6 + $0x128] sm:$0xff] }
 0x22c   : > { %v1609_v18 = vadd.f32 %v4222_v53, %v1539_v7  ;;  %v1857_v53 = vld [vmem:[%s8134_s6 + $0x118] sm:$0xff]  ;;  %v1871_v2 = vld [vmem:[%s8134_s6 + $0x188] sm:$0xff]  ;;  %v7268_v7 = vpack.c.bf16 %v1874_v55, %v1859_v11 }
 0x22d   : > { %v7294_v54 = vpack.c.bf16 %v1871_v2, %v1856_v47  ;;  %v1903_v11 = vld [vmem:[%s8134_s6 + $0x288] sm:$0xff]  ;;  %v1917_v55 = vld [vmem:[%s8134_s6 + $0x2f8] sm:$0xff]  ;;  %v1934_v2 = vld [vmem:[%s8134_s6 + $0x380] sm:$0xff] }
 0x22e   : > { %v1679_v1 = vadd.f32 %v4257_v30, %v1609_v18  ;;  %v1843_v18 = vld [vmem:[%s8134_s6 + $0xa8] sm:$0xff]  ;;  %v1872_v30 = vld [vmem:[%s8134_s6 + $0x190] sm:$0xff] }
 0x22f   : > { %v7256_v63 = vpack.c.bf16 %v1843_v18, %v1828_v19  ;;  %v7266_v62 = vpack.c.bf16 %v1872_v30, %v1857_v53  ;;  %v1901_v19 = vld [vmem:[%s8134_s6 + $0x278] sm:$0xff]  ;;  %v1888_v30 = vld [vmem:[%s8134_s6 + $0x210] sm:$0xff]  ;;  %v1919_v47 = vld [vmem:[%s8134_s6 + $0x308] sm:$0xff] }
 0x248   : > { %v4290_v27 = vpop.f32.mrb[22].mxu0 }
 0x249   : > { %v1818_v50 = vpop.f32.mrb[20].mxu1  ;;  %v4291_v3 = vpop.f32.mrb[23].mxu0 }
 0x24a   : > { %v4292_v13 = vadd.f32 %v4291_v3, %v4290_v27  ;;  %v4631_v25 = vpop.f32.mrb[21].mxu1  ;;  %v1887_v27 = vld [vmem:[%s8134_s6 + $0x208] sm:$0xff]  ;;  %v1889_v3 = vld [vmem:[%s8134_s6 + $0x218] sm:$0xff] }
 0x24b   : > { %v1886_v25 = vld [vmem:[%s8134_s6 + $0x200] sm:$0xff]  ;;  %v7308_v53 = vpack.c.bf16 %v1904_v12, %v1889_v3  ;;  %v7346_v12 = vpack.c.bf16 %v1934_v2, %v1919_v47 }
 0x24c   : > { %v1749_v24 = vadd.f32 %v4292_v13, %v1679_v1  ;;  %v1858_v1 = vld [vmem:[%s8134_s6 + $0x120] sm:$0xff] }
 0x24d   : > { %v7296_v13 = vpack.c.bf16 %v1873_v41, %v1858_v1  ;;  %8415 = vst [vmem:[#allocation137_spill] sm:$0xff] %v7308_v53  ;;  %v7332_v1 = vpack.c.bf16 %v1901_v19, %v1886_v25  ;;  %v7334_v41 = vpack.c.bf16 %v1903_v11, %v1888_v30  ;;  %8419 = vst [vmem:[#allocation141_spill] sm:$0xff] %v7346_v12  ;;  %v1918_v25 = vld [vmem:[%s8134_s6 + $0x300] sm:$0xff]  ;;  %v1933_v19 = vld [vmem:[%s8134_s6 + $0x378] sm:$0xff] }
 0x24e   : > { %v7264_v14 = vadd.f32 %v1818_v50, %v1749_v24  ;;  %v1902_v50 = vld [vmem:[%s8134_s6 + $0x280] sm:$0xff]  ;;  %v1932_v24 = vld [vmem:[%s8134_s6 + $0x370] sm:$0xff]  ;;  %v1831_v30 = vld [vmem:[%s8134_s6 + $0x48] sm:$0xff]  ;;  %v7370_v2 = vpack.c.bf16 %v1933_v19, %v1918_v25 }
 0x24f   : > { %8413 = vst [vmem:[#allocation135_spill] sm:$0xff] %v7296_v13  ;;  %v7306_v18 = vpack.c.bf16 %v1902_v50, %v1887_v27  ;;  %8416 = vst [vmem:[#allocation138_spill] sm:$0xff] %v7332_v1  ;;  %v1916_v27 = vld [vmem:[%s8134_s6 + $0x2f0] sm:$0xff]  ;;  %v1931_v50 = vld [vmem:[%s8134_s6 + $0x368] sm:$0xff]  ;;  %v7344_v3 = vpack.c.bf16 %v1932_v24, %v1917_v55 }
 0x250   : > { %4023 = vmatmul.mubr.msk.f32.vlgmr.msra.gmra.mrb[24].mxu0 %vm1942_vm2, %v7264_v14  ;;  %4024 = vmatmul.mubr.msk.f32.vlgmr.msra.gmra.mrb[22].mxu1 %vm1942_vm2, %v7264_v14  ;;  %8417 = vst [vmem:[#allocation139_spill] sm:$0xff] %v7334_v41  ;;  %v1846_v11 = vld [vmem:[%s8134_s6 + $0xc0] sm:$0xff]  ;;  %v1833_v55 = vld [vmem:[%s8134_s6 + $0x58] sm:$0xff]  ;;  %v1848_v24 = vld [vmem:[%s8134_s6 + $0xd0] sm:$0xff]  ;;  %v7368_v47 = vpack.c.bf16 %v1931_v50, %v1916_v27 }
 0x251   : > { %5020 = vmatpush1.bf16.msra.mxu0 %v7254_v26  ;;  %5036 = vmatpush1.bf16.msra.mxu1 %v7256_v63  ;;  %8414 = vst [vmem:[#allocation136_spill] sm:$0xff] %v7306_v18  ;;  %8418 = vst [vmem:[#allocation140_spill] sm:$0xff] %v7344_v3  ;;  %v1832_v27 = vld [vmem:[%s8134_s6 + $0x50] sm:$0xff]  ;;  %v1847_v50 = vld [vmem:[%s8134_s6 + $0xc8] sm:$0xff] }
 0x252   : > { %5022 = vmatprep.subr.bf16.mxu0 %v7266_v62  ;;  %5038 = vmatprep.subr.bf16.mxu1 %v7268_v7  ;;  %8420 = vst [vmem:[#allocation142_spill] sm:$0xff] %v7368_v47  ;;  %8421 = vst [vmem:[#allocation143_spill] sm:$0xff] %v7370_v2  ;;  %v1861_v25 = vld [vmem:[%s8134_s6 + $0x138] sm:$0xff]  ;;  %v1876_v19 = vld [vmem:[%s8134_s6 + $0x1b0] sm:$0xff] }
 0x253   : > { %2152 = vmatprep.mubr.f32.mxu0 %v8375_v40  ;;  %2223 = vmatprep.mubr.f32.mxu1 %v8375_v40 }
 0x255   : > { %5024 = vmatpush1.bf16.msra.mxu0 %v7294_v54  ;;  %5040 = vmatpush1.bf16.msra.mxu1 %v7296_v13  ;;  %v7380_v13 = vpack.c.bf16 %v1846_v11, %v1831_v30  ;;  %v1863_v30 = vld [vmem:[%s8134_s6 + $0x148] sm:$0xff]  ;;  %v1878_v11 = vld [vmem:[%s8134_s6 + $0x1c0] sm:$0xff] }
 0x256   : > { %5026 = vmatprep.subr.bf16.mxu0 %v7306_v18  ;;  %5042 = vmatprep.subr.bf16.mxu1 %v7308_v53  ;;  %v1830_v53 = vld [vmem:[%s8134_s6 + $0x40] sm:$0xff]  ;;  %v1845_v18 = vld [vmem:[%s8134_s6 + $0xb8] sm:$0xff] }
 0x257   : > { %8422 = vst [vmem:[#allocation144_spill] sm:$0xff] %v7380_v13 }
 0x259   : > { %5028 = vmatpush1.bf16.msra.mxu0 %v7332_v1  ;;  %5044 = vmatpush1.bf16.msra.mxu1 %v7334_v41  ;;  %v7382_v1 = vpack.c.bf16 %v1848_v24, %v1833_v55  ;;  %v7404_v55 = vpack.c.bf16 %v1845_v18, %v1830_v53  ;;  %v7406_v24 = vpack.c.bf16 %v1847_v50, %v1832_v27  ;;  %v1862_v18 = vld [vmem:[%s8134_s6 + $0x140] sm:$0xff]  ;;  %v1877_v53 = vld [vmem:[%s8134_s6 + $0x1b8] sm:$0xff]  ;;  %v1891_v27 = vld [vmem:[%s8134_s6 + $0x228] sm:$0xff] }
 0x25a   : > { %5030 = vmatprep.subr.bf16.mxu0 %v7344_v3  ;;  %5046 = vmatprep.subr.bf16.mxu1 %v7346_v12  ;;  %v1860_v12 = vld [vmem:[%s8134_s6 + $0x130] sm:$0xff]  ;;  %v1875_v3 = vld [vmem:[%s8134_s6 + $0x1a8] sm:$0xff]  ;;  %v7416_v41 = vpack.c.bf16 %v1876_v19, %v1861_v25  ;;  %v1906_v50 = vld [vmem:[%s8134_s6 + $0x2a0] sm:$0xff] }
 0x25b   : > { %8423 = vst [vmem:[#allocation145_spill] sm:$0xff] %v7382_v1  ;;  %8424 = vst [vmem:[#allocation146_spill] sm:$0xff] %v7404_v55  ;;  %v1893_v25 = vld [vmem:[%s8134_s6 + $0x238] sm:$0xff]  ;;  %v1908_v19 = vld [vmem:[%s8134_s6 + $0x2b0] sm:$0xff] }
 0x25c   : > { %8425 = vst [vmem:[#allocation147_spill] sm:$0xff] %v7406_v24  ;;  %8426 = vst [vmem:[#allocation148_spill] sm:$0xff] %v7416_v41 }
 0x25d   : > { %5032 = vmatpush1.bf16.msra.mxu0 %v7368_v47  ;;  %5048 = vmatpush1.bf16.msra.mxu1 %v7370_v2  ;;  %v7418_v47 = vpack.c.bf16 %v1878_v11, %v1863_v30  ;;  %v7444_v30 = vpack.c.bf16 %v1875_v3, %v1860_v12  ;;  %v7446_v11 = vpack.c.bf16 %v1877_v53, %v1862_v18  ;;  %v1892_v3 = vld [vmem:[%s8134_s6 + $0x230] sm:$0xff]  ;;  %v1907_v12 = vld [vmem:[%s8134_s6 + $0x2a8] sm:$0xff]  ;;  %v1921_v18 = vld [vmem:[%s8134_s6 + $0x318] sm:$0xff] }
 0x25e   : > { %5050 = vmatprep.subr.bf16.mxu0 %v7380_v13  ;;  %5066 = vmatprep.subr.bf16.mxu1 %v7382_v1  ;;  %v1890_v1 = vld [vmem:[%s8134_s6 + $0x220] sm:$0xff]  ;;  %v1905_v13 = vld [vmem:[%s8134_s6 + $0x298] sm:$0xff]  ;;  %v7456_v2 = vpack.c.bf16 %v1906_v50, %v1891_v27  ;;  %v1936_v53 = vld [vmem:[%s8134_s6 + $0x390] sm:$0xff] }
 0x25f   : > { %8427 = vst [vmem:[#allocation149_spill] sm:$0xff] %v7418_v47  ;;  %8428 = vst [vmem:[#allocation150_spill] sm:$0xff] %v7446_v11  ;;  %v1923_v27 = vld [vmem:[%s8134_s6 + $0x328] sm:$0xff]  ;;  %v1938_v50 = vld [vmem:[%s8134_s6 + $0x3a0] sm:$0xff] }
 0x260   : > { %4025 = vmatmul.mubr.msk.f32.vlgmr.msra.gmra.mrb[26].mxu0 %vm1942_vm2, %v7264_v14  ;;  %4026 = vmatmul.mubr.msk.f32.vlgmr.msra.gmra.mrb[24].mxu1 %vm1942_vm2, %v7264_v14 }
 0x261   : > { %5052 = vmatpush1.bf16.msra.mxu0 %v7404_v55  ;;  %5068 = vmatpush1.bf16.msra.mxu1 %v7406_v24  ;;  %v7458_v55 = vpack.c.bf16 %v1908_v19, %v1893_v25  ;;  %v7482_v25 = vpack.c.bf16 %v1905_v13, %v1890_v1  ;;  %v7484_v19 = vpack.c.bf16 %v1907_v12, %v1892_v3  ;;  %v1922_v13 = vld [vmem:[%s8134_s6 + $0x320] sm:$0xff]  ;;  %v1937_v1 = vld [vmem:[%s8134_s6 + $0x398] sm:$0xff]  ;;  %v1835_v3 = vld [vmem:[%s8134_s6 + $0x68] sm:$0xff] }
 0x262   : > { %5054 = vmatprep.subr.bf16.mxu0 %v7416_v41  ;;  %5070 = vmatprep.subr.bf16.mxu1 %v7418_v47  ;;  %v1920_v47 = vld [vmem:[%s8134_s6 + $0x310] sm:$0xff]  ;;  %v7491_v41 = vpack.c.bf16 %v1936_v53, %v1921_v18  ;;  %v7493_v24 = vpack.c.bf16 %v1938_v50, %v1923_v27  ;;  %v1850_v12 = vld [vmem:[%s8134_s6 + $0xe0] sm:$0xff]  ;;  %v7514_v53 = vpack.c.bf16 %v1937_v1, %v1922_v13  ;;  %v1865_v13 = vld [vmem:[%s8134_s6 + $0x158] sm:$0xff] }
 0x263   : > { %2294 = vmatprep.mubr.f32.mxu0 %v8375_v40  ;;  %2365 = vmatprep.mubr.f32.mxu1 %v8375_v40  ;;  %8429 = vst [vmem:[#allocation151_spill] sm:$0xff] %v7482_v25  ;;  %v1834_v27 = vld [vmem:[%s8134_s6 + $0x60] sm:$0xff]  ;;  %v7521_v50 = vpack.c.bf16 %v1850_v12, %v1835_v3  ;;  %v1880_v1 = vld [vmem:[%s8134_s6 + $0x1d0] sm:$0xff] }
 0x264   : > { %8430 = vst [vmem:[#allocation152_spill] sm:$0xff] %v7491_v41  ;;  %8431 = vst [vmem:[#allocation153_spill] sm:$0xff] %v7493_v24 }
 0x265   : > { %5056 = vmatpush1.bf16.msra.mxu0 %v7444_v30  ;;  %5072 = vmatpush1.bf16.msra.mxu1 %v7446_v11  ;;  %v1935_v11 = vld [vmem:[%s8134_s6 + $0x388] sm:$0xff]  ;;  %8433 = vst [vmem:[#allocation155_spill] sm:$0xff] %v7514_v53  ;;  %8434 = vst [vmem:[#allocation156_spill] sm:$0xff] %v7521_v50 }
 0x266   : > { %5058 = vmatprep.subr.bf16.mxu0 %v7456_v2  ;;  %5074 = vmatprep.subr.bf16.mxu1 %v7458_v55  ;;  %v7512_v18 = vpack.c.bf16 %v1935_v11, %v1920_v47  ;;  %v1836_v47 = vld [vmem:[%s8134_s6 + $0x70] sm:$0xff]  ;;  %v1851_v11 = vld [vmem:[%s8134_s6 + $0xe8] sm:$0xff] }
 0x267   : > { %v7542_v12 = vpack.c.bf16 %v1851_v11, %v1836_v47  ;;  %v1895_v47 = vld [vmem:[%s8134_s6 + $0x248] sm:$0xff]  ;;  %v1910_v11 = vld [vmem:[%s8134_s6 + $0x2c0] sm:$0xff] }
 0x268   : > { %8432 = vst [vmem:[#allocation154_spill] sm:$0xff] %v7512_v18 }
 0x269   : > { %5060 = vmatpush1.bf16.msra.mxu0 %v7482_v25  ;;  %5076 = vmatpush1.bf16.msra.mxu1 %v7484_v19  ;;  %v1849_v25 = vld [vmem:[%s8134_s6 + $0xd8] sm:$0xff]  ;;  %8436 = vst [vmem:[#allocation158_spill] sm:$0xff] %v7542_v12 }
 0x26a   : > { %5062 = vmatprep.subr.bf16.mxu0 %v7491_v41  ;;  %5078 = vmatprep.subr.bf16.mxu1 %v7493_v24  ;;  %v7540_v3 = vpack.c.bf16 %v1849_v25, %v1834_v27  ;;  %v1864_v24 = vld [vmem:[%s8134_s6 + $0x150] sm:$0xff]  ;;  %v7549_v41 = vpack.c.bf16 %v1880_v1, %v1865_v13  ;;  %v1866_v25 = vld [vmem:[%s8134_s6 + $0x160] sm:$0xff]  ;;  %v1881_v27 = vld [vmem:[%s8134_s6 + $0x1d8] sm:$0xff] }
 0x26b   : > { %v7574_v1 = vpack.c.bf16 %v1881_v27, %v1866_v25  ;;  %v1925_v25 = vld [vmem:[%s8134_s6 + $0x338] sm:$0xff]  ;;  %v1940_v27 = vld [vmem:[%s8134_s6 + $0x3b0] sm:$0xff] }
 0x26c   : > { %8435 = vst [vmem:[#allocation157_spill] sm:$0xff] %v7540_v3  ;;  %8437 = vst [vmem:[#allocation159_spill] sm:$0xff] %v7549_v41 }
 0x26d   : > { %5064 = vmatpush1.bf16.msra.mxu0 %v7512_v18  ;;  %5080 = vmatpush1.bf16.msra.mxu1 %v7514_v53  ;;  %v1879_v18 = vld [vmem:[%s8134_s6 + $0x1c8] sm:$0xff]  ;;  %v7581_v53 = vpack.c.bf16 %v1910_v11, %v1895_v47 }
 0x26e   : > { %5082 = vmatprep.subr.bf16.mxu0 %v7521_v50  ;;  %5097 = vmatprep.subr.bf16.mxu1 %v8374_v51  ;;  %v7572_v13 = vpack.c.bf16 %v1879_v18, %v1864_v24  ;;  %v1894_v50 = vld [vmem:[%s8134_s6 + $0x240] sm:$0xff]  ;;  %v1896_v24 = vld [vmem:[%s8134_s6 + $0x250] sm:$0xff]  ;;  %v1911_v18 = vld [vmem:[%s8134_s6 + $0x2c8] sm:$0xff] }
 0x26f   : > { %v7605_v11 = vpack.c.bf16 %v1911_v18, %v1896_v24 }
 0x270   : > { %4027 = vmatmul.mubr.msk.f32.vlgmr.msra.gmra.mrb[28].mxu0 %vm1942_vm2, %v7264_v14  ;;  %4028 = vmatmul.mubr.msk.f32.vlgmr.msra.gmra.mrb[26].mxu1 %vm1942_vm2, %v7264_v14  ;;  %8438 = vst [vmem:[#allocation160_spill] sm:$0xff] %v7572_v13 }
 0x271   : > { %5084 = vmatpush1.bf16.msra.mxu0 %v7540_v3  ;;  %5099 = vmatpush3.bf16.msra.mxu1 %v7542_v12  ;;  %v1909_v3 = vld [vmem:[%s8134_s6 + $0x2b8] sm:$0xff]  ;;  %v7612_v12 = vpack.c.bf16 %v1940_v27, %v1925_v25  ;;  %v8459_v25 = vld [vmem:[#allocation34_spill] sm:$0xff] }
 0x272   : > { %5086 = vmatprep.subr.bf16.mxu0 %v7549_v41  ;;  %5100 = vmatprep.subr.bf16.mxu1 %v8374_v51  ;;  %v7603_v47 = vpack.c.bf16 %v1909_v3, %v1894_v50  ;;  %v1924_v41 = vld [vmem:[%s8134_s6 + $0x330] sm:$0xff]  ;;  %v1926_v50 = vld [vmem:[%s8134_s6 + $0x340] sm:$0xff]  ;;  %v1941_v3 = vld [vmem:[%s8134_s6 + $0x3b8] sm:$0xff] }
 0x273   : > { %2436 = vmatprep.mubr.f32.mxu0 %v8375_v40  ;;  %4648 = vmatprep.mubr.msk.f32.mxu1 %vm5597_vm1, %v8375_v40  ;;  %v7627_v18 = vpack.c.bf16 %v1941_v3, %v1926_v50  ;;  %v8460_v27 = vld [vmem:[#allocation35_spill] sm:$0xff]  ;;  %v8461_v50 = vld [vmem:[#allocation37_spill] sm:$0xff] }
 0x274   : > { %v8462_v3 = vld [vmem:[#allocation41_spill] sm:$0xff] }
 0x275   : > { %5088 = vmatpush1.bf16.msra.mxu0 %v7572_v13  ;;  %5102 = vmatpush3.bf16.msra.mxu1 %v7574_v1  ;;  %v1939_v13 = vld [vmem:[%s8134_s6 + $0x3a8] sm:$0xff] }
 0x276   : > { %5090 = vmatprep.subr.bf16.mxu0 %v7581_v53  ;;  %5103 = vmatprep.subr.bf16.mxu1 %v8374_v51  ;;  %v7625_v24 = vpack.c.bf16 %v1939_v13, %v1924_v41  ;;  %v8457_v41 = vld [vmem:[#allocation32_spill] sm:$0xff]  ;;  %v8458_v13 = vld [vmem:[#allocation33_spill] sm:$0xff] }
 0x279   : > { %5092 = vmatpush1.bf16.msra.mxu0 %v7603_v47  ;;  %5105 = vmatpush3.bf16.msra.mxu1 %v7605_v11 }
 0x27a   : > { %5094 = vmatprep.subr.bf16.mxu0 %v7612_v12  ;;  %5106 = vmatprep.subr.bf16.mxu1 %v8374_v51 }
 0x27d   : > { %5096 = vmatpush1.bf16.msra.mxu0 %v7625_v24  ;;  %5108 = vmatpush3.bf16.msra.mxu1 %v7627_v18 }
 0x27e   : > { %5110 = vmatprep.subr.bf16.mxu0 %v5849_v21  ;;  %5142 = vmatprep.subr.bf16.mxu1 %v5853_v22 }
 0x280   : > { %4029 = vmatmul.mubr.msk.f32.vlgmr.msra.gmra.mrb[30].mxu0 %vm1942_vm2, %v7264_v14  ;;  %4649 = vmatmul.mubr.msk.f32.vlgmr.msra.gmra.mrb[28].mxu1 %vm1942_vm2, %v7264_v14  ;;  %v8456_v14 = vld [vmem:[#allocation31_spill] sm:$0xff] }
 0x281   : > { %5112 = vmatpush3.bf16.msra.mxu0 %v5892_v32  ;;  %5144 = vmatpush3.bf16.msra.mxu1 %v5894_v33 }
 0x282   : > { %5114 = vmatprep.subr.bf16.mxu0 %v5902_v36  ;;  %5146 = vmatprep.subr.bf16.mxu1 %v5904_v37 }
 0x285   : > { %5116 = vmatpush3.bf16.msra.mxu0 %v5931_v44  ;;  %5148 = vmatpush3.bf16.msra.mxu1 %v5933_v45  ;;  %v8439_v45 = vld [vmem:[#allocation7_spill] sm:$0xff] }
 0x286   : > { %5118 = vmatprep.subr.bf16.mxu0 %v5943_v48  ;;  %5150 = vmatprep.subr.bf16.mxu1 %v5945_v49 }
 0x289   : > { %5120 = vmatpush3.bf16.msra.mxu0 %v5969_v56  ;;  %5152 = vmatpush3.bf16.msra.mxu1 %v5971_v57 }
 0x28a   : > { %5122 = vmatprep.subr.bf16.mxu0 %v5981_v60  ;;  %5154 = vmatprep.subr.bf16.mxu1 %v5983_v61  ;;  %v8440_v61 = vld [vmem:[#allocation6_spill] sm:$0xff] }
 0x28d   : > { %5124 = vmatpush3.bf16.msra.mxu0 %v6005_v4  ;;  %5156 = vmatpush3.bf16.msra.mxu1 %v6007_v5  ;;  %v8441_v4 = vld [vmem:[#allocation8_spill] sm:$0xff]  ;;  %v8442_v5 = vld [vmem:[#allocation9_spill] sm:$0xff] }
 0x28e   : > { %5126 = vmatprep.subr.bf16.mxu0 %v6017_v8  ;;  %5158 = vmatprep.subr.bf16.mxu1 %v6019_v9  ;;  %v8443_v8 = vld [vmem:[#allocation11_spill] sm:$0xff] }
 0x28f   : > { %v8444_v9 = vld [vmem:[#allocation15_spill] sm:$0xff] }
 0x291   : > { %5128 = vmatpush3.bf16.msra.mxu0 %v6041_v16  ;;  %5160 = vmatpush3.bf16.msra.mxu1 %v6043_v17  ;;  %v8445_v16 = vld [vmem:[#allocation16_spill] sm:$0xff]  ;;  %v8446_v17 = vld [vmem:[#allocation17_spill] sm:$0xff] }
 0x292   : > { %5130 = vmatprep.subr.bf16.mxu0 %v6053_v20  ;;  %5162 = vmatprep.subr.bf16.mxu1 %v6055_v23  ;;  %v8447_v20 = vld [vmem:[#allocation18_spill] sm:$0xff] }
 0x295   : > { %5132 = vmatpush3.bf16.msra.mxu0 %v6077_v31  ;;  %5164 = vmatpush3.bf16.msra.mxu1 %v6079_v34  ;;  %v8448_v34 = vld [vmem:[#allocation20_spill] sm:$0xff] }
 0x296   : > { %5134 = vmatprep.subr.bf16.mxu0 %v6086_v38  ;;  %5166 = vmatprep.subr.bf16.mxu1 %v6088_v39  ;;  %v8449_v38 = vld [vmem:[#allocation22_spill] sm:$0xff] }
 0x299   : > { %5136 = vmatpush3.bf16.msra.mxu0 %v6101_v43  ;;  %5168 = vmatpush3.bf16.msra.mxu1 %v6103_v46  ;;  %v8450_v46 = vld [vmem:[#allocation23_spill] sm:$0xff] }
 0x29a   : > { %5138 = vmatprep.subr.bf16.mxu0 %v6118_v52  ;;  %5170 = vmatprep.subr.bf16.mxu1 %v6129_v58  ;;  %v8451_v52 = vld [vmem:[#allocation25_spill] sm:$0xff]  ;;  %v8452_v58 = vld [vmem:[#allocation19_spill] sm:$0xff] }
 0x29d   : > { %5140 = vmatpush3.bf16.msra.mxu0 %v6131_v59  ;;  %5172 = vmatpush3.bf16.msra.mxu1 %v6140_v0  ;;  %v8453_v0 = vld [vmem:[#allocation21_spill] sm:$0xff] }
 0x29e   : > { %5174 = vmatprep.subr.bf16.mxu0 %v6154_v6  ;;  %5206 = vmatprep.subr.bf16.mxu1 %v6159_v10 }
 0x323   : > { %v2012_v21 = vpop.f32.mrb[24].mxu0  ;;  %v2083_v22 = vpop.f32.mrb[22].mxu1 }
 0x324   : > { %v7672_v32 = vsub.f32 %v6198_v42, %v2012_v21  ;;  %v7675_v33 = vsub.f32 %v6190_v29, %v2083_v22  ;;  %v2014_v36 = vpop.f32.mrb[25].mxu0  ;;  %v2085_v37 = vpop.f32.mrb[23].mxu1  ;;  %v8455_v42 = vld [vmem:[#allocation30_spill] sm:$0xff]  ;;  %v8464_v22 = vld [vmem:[#allocation43_spill] sm:$0xff] }
 0x325   : > { %v7678_v44 = vsub.f32 %v6193_v35, %v2014_v36  ;;  %v7681_v48 = vsub.f32 %v8439_v45, %v2085_v37  ;;  %v8454_v35 = vld [vmem:[#allocation29_spill] sm:$0xff]  ;;  %v8463_v21 = vld [vmem:[#allocation42_spill] sm:$0xff]  ;;  %v8465_v36 = vld [vmem:[#allocation44_spill] sm:$0xff] }
 0x326   : > { %v2528_v57 = vmul.f32 %v7672_v32, %v7672_v32  ;;  %v2530_v60 = vmul.f32 %v7675_v33, %v7675_v33 }
 0x327   : > { %v2529_v49 = vmul.f32 %v7678_v44, %v7678_v44  ;;  %v2531_v56 = vmul.f32 %v7681_v48, %v7681_v48 }
 0x329   : > { %2607 = vmatprep.mubr.f32.mxu0 %v2529_v49  ;;  %2677 = vmatprep.mubr.f32.mxu1 %v2531_v56  ;;  %v8466_v49 = vld [vmem:[#allocation46_spill] sm:$0xff]  ;;  %v8467_v56 = vld [vmem:[#allocation56_spill] sm:$0xff] }
 0x32a   : > { %2608 = vmatmul.mubr.f32.vlgmr.msra.gmra.mrb[32].mxu0 %v2528_v57  ;;  %2678 = vmatmul.mubr.f32.vlgmr.msra.gmra.mrb[30].mxu1 %v2530_v60 }
 0x32b   : > { %5176 = vmatpush3.bf16.msra.mxu0 %v8440_v61  ;;  %5208 = vmatpush3.bf16.msra.mxu1 %v8441_v4 }
 0x32c   : > { %5178 = vmatprep.subr.bf16.mxu0 %v8442_v5  ;;  %5210 = vmatprep.subr.bf16.mxu1 %v8443_v8  ;;  %v8468_v5 = vld [vmem:[#allocation47_spill] sm:$0xff]  ;;  %v8469_v8 = vld [vmem:[#allocation49_spill] sm:$0xff] }
 0x32f   : > { %5180 = vmatpush3.bf16.msra.mxu0 %v8444_v9  ;;  %5212 = vmatpush3.bf16.msra.mxu1 %v8445_v16  ;;  %v8470_v9 = vld [vmem:[#allocation59_spill] sm:$0xff] }
 0x330   : > { %5182 = vmatprep.subr.bf16.mxu0 %v8446_v17  ;;  %5214 = vmatprep.subr.bf16.mxu1 %v8447_v20  ;;  %v8471_v17 = vld [vmem:[#allocation61_spill] sm:$0xff] }
 0x333   : > { %v2154_v23 = vpop.f32.mrb[26].mxu0  ;;  %v2225_v31 = vpop.f32.mrb[24].mxu1  ;;  %5184 = vmatpush3.bf16.msra.mxu0 %v8448_v34  ;;  %5216 = vmatpush3.bf16.msra.mxu1 %v8449_v38  ;;  %v8473_v34 = vld [vmem:[#allocation52_spill] sm:$0xff]  ;;  %v8475_v38 = vld [vmem:[#allocation54_spill] sm:$0xff] }
 0x334   : > { %v2156_v39 = vpop.f32.mrb[27].mxu0  ;;  %v2227_v43 = vpop.f32.mrb[25].mxu1  ;;  %5186 = vmatprep.subr.bf16.mxu0 %v8450_v46  ;;  %5218 = vmatprep.subr.bf16.mxu1 %v8451_v52  ;;  %v7728_v57 = vsub.f32 %v8467_v56, %v2154_v23  ;;  %v7731_v60 = vsub.f32 %v6567_v28, %v2225_v31  ;;  %v8474_v31 = vld [vmem:[#allocation53_spill] sm:$0xff]  ;;  %v8476_v46 = vld [vmem:[#allocation55_spill] sm:$0xff] }
 0x335   : > { %v7704_v59 = vsub.f32 %v8452_v58, %v2156_v39  ;;  %v7707_v6 = vsub.f32 %v8453_v0, %v2227_v43  ;;  %v8477_v52 = vld [vmem:[#allocation57_spill] sm:$0xff]  ;;  %v8478_v58 = vld [vmem:[#allocation58_spill] sm:$0xff]  ;;  %v8479_v0 = vld [vmem:[#allocation60_spill] sm:$0xff] }
 0x336   : > { %v2532_v28 = vmul.f32 %v7728_v57, %v7728_v57  ;;  %v2534_v23 = vmul.f32 %v7731_v60, %v7731_v60  ;;  %v8491_v56 = vld [vmem:[#allocation73_spill] sm:$0xff] }
 0x337   : > { %v2533_v10 = vmul.f32 %v7704_v59, %v7704_v59  ;;  %v2535_v29 = vmul.f32 %v7707_v6, %v7707_v6  ;;  %5188 = vmatpush3.bf16.msra.mxu0 %v8454_v35  ;;  %5220 = vmatpush3.bf16.msra.mxu1 %v8455_v42  ;;  %v8482_v35 = vld [vmem:[#allocation64_spill] sm:$0xff]  ;;  %v8483_v42 = vld [vmem:[#allocation65_spill] sm:$0xff] }
 0x338   : > { %5190 = vmatprep.subr.bf16.mxu0 %v8456_v14  ;;  %5222 = vmatprep.subr.bf16.mxu1 %v8457_v41 }
 0x339   : > { %2747 = vmatprep.mubr.f32.mxu0 %v2533_v10  ;;  %2817 = vmatprep.mubr.f32.mxu1 %v2535_v29  ;;  %v8480_v10 = vld [vmem:[#allocation62_spill] sm:$0xff]  ;;  %v8481_v29 = vld [vmem:[#allocation63_spill] sm:$0xff] }
 0x33b   : > { %5192 = vmatpush3.bf16.msra.mxu0 %v8458_v13  ;;  %5224 = vmatpush3.bf16.msra.mxu1 %v8459_v25  ;;  %v8484_v13 = vld [vmem:[#allocation66_spill] sm:$0xff]  ;;  %v8485_v25 = vld [vmem:[#allocation67_spill] sm:$0xff] }
 0x33c   : > { %5194 = vmatprep.subr.bf16.mxu0 %v8460_v27  ;;  %5226 = vmatprep.subr.bf16.mxu1 %v8461_v50 }
 0x33f   : > { %5196 = vmatpush3.bf16.msra.mxu0 %v8462_v3  ;;  %5228 = vmatpush3.bf16.msra.mxu1 %v8463_v21  ;;  %v8486_v3 = vld [vmem:[#allocation68_spill] sm:$0xff]  ;;  %v8487_v21 = vld [vmem:[#allocation69_spill] sm:$0xff] }
 0x340   : > { %5198 = vmatprep.subr.bf16.mxu0 %v8464_v22  ;;  %5230 = vmatprep.subr.bf16.mxu1 %v8465_v36  ;;  %v8488_v22 = vld [vmem:[#allocation70_spill] sm:$0xff]  ;;  %v8489_v36 = vld [vmem:[#allocation71_spill] sm:$0xff] }
 0x343   : > { %v2296_v37 = vpop.f32.mrb[28].mxu0  ;;  %v2367_v45 = vpop.f32.mrb[26].mxu1  ;;  %5200 = vmatpush3.bf16.msra.mxu0 %v6470_v15  ;;  %5232 = vmatpush3.bf16.msra.mxu1 %v8466_v49  ;;  %v8472_v15 = vld [vmem:[#allocation51_spill] sm:$0xff]  ;;  %v8490_v49 = vld [vmem:[#allocation72_spill] sm:$0xff] }
 0x344   : > { %v2298_v61 = vpop.f32.mrb[29].mxu0  ;;  %v2369_v4 = vpop.f32.mrb[27].mxu1  ;;  %5202 = vmatprep.subr.bf16.mxu0 %v8468_v5  ;;  %5234 = vmatprep.subr.bf16.mxu1 %v8469_v8  ;;  %v8494_v5 = vld [vmem:[#allocation76_spill] sm:$0xff]  ;;  %v8495_v8 = vld [vmem:[#allocation77_spill] sm:$0xff] }
 0x345   : > { %v7736_v16 = vsub.f32 %v8470_v9, %v2298_v61  ;;  %v7739_v20 = vsub.f32 %v8471_v17, %v2369_v4  ;;  %v8492_v61 = vld [vmem:[#allocation74_spill] sm:$0xff]  ;;  %v8493_v4 = vld [vmem:[#allocation75_spill] sm:$0xff] }
 0x346   : > { %v8496_v9 = vld [vmem:[#allocation78_spill] sm:$0xff]  ;;  %v8497_v17 = vld [vmem:[#allocation79_spill] sm:$0xff] }
 0x347   : > { %5204 = vmatpush3.bf16.msra.mxu0 %v8472_v15  ;;  %5236 = vmatpush3.bf16.msra.mxu1 %v8473_v34  ;;  %v2537_v39 = vmul.f32 %v7736_v16, %v7736_v16  ;;  %v2539_v43 = vmul.f32 %v7739_v20, %v7739_v20  ;;  %v8498_v15 = vld [vmem:[#allocation80_spill] sm:$0xff]  ;;  %v8499_v34 = vld [vmem:[#allocation81_spill] sm:$0xff] }
 0x348   : > { %5238 = vmatprep.subr.bf16.mxu0 %v8474_v31  ;;  %5270 = vmatprep.subr.bf16.mxu1 %v8475_v38  ;;  %v8502_v38 = vld [vmem:[#allocation83_spill] sm:$0xff] }
 0x34a   : > { %2748 = vmatmul.mubr.f32.vlgmr.msra.gmra.mrb[34].mxu0 %v2532_v28  ;;  %2818 = vmatmul.mubr.f32.vlgmr.msra.gmra.mrb[32].mxu1 %v2534_v23  ;;  %v8500_v28 = vld [vmem:[#allocation82_spill] sm:$0xff] }
 0x34b   : > { %5240 = vmatpush3.bf16.msra.mxu0 %v8476_v46  ;;  %2887 = vmatprep.mubr.f32.mxu0 %v2537_v39  ;;  %v8501_v23 = vld [vmem:[#allocation90_spill] sm:$0xff]  ;;  %v8503_v39 = vld [vmem:[#allocation84_spill] sm:$0xff] }
 0x34c   : > { %5272 = vmatpush3.bf16.msra.mxu1 %v8477_v52  ;;  %2957 = vmatprep.mubr.f32.mxu1 %v2539_v43  ;;  %v7783_v31 = vsub.f32 %v8501_v23, %v2296_v37  ;;  %v8504_v43 = vld [vmem:[#allocation92_spill] sm:$0xff]  ;;  %v8505_v52 = vld [vmem:[#allocation85_spill] sm:$0xff]  ;;  %v8529_v23 = vld [vmem:[#allocation115_spill] sm:$0xff] }
 0x34d   : > { %5242 = vmatprep.subr.bf16.mxu0 %v8478_v58  ;;  %5274 = vmatprep.subr.bf16.mxu1 %v8479_v0  ;;  %v7788_v46 = vsub.f32 %v8504_v43, %v2367_v45  ;;  %v8506_v58 = vld [vmem:[#allocation94_spill] sm:$0xff]  ;;  %v8509_v37 = vld [vmem:[#allocation88_spill] sm:$0xff] }
 0x34e   : > { %v8531_v43 = vld [vmem:[#allocation112_spill] sm:$0xff] }
 0x34f   : > { %5244 = vmatpush3.bf16.msra.mxu0 %v8480_v10  ;;  %v8507_v10 = vld [vmem:[#allocation86_spill] sm:$0xff] }
 0x350   : > { %5276 = vmatpush3.bf16.msra.mxu1 %v8481_v29  ;;  %5246 = vmatprep.subr.bf16.mxu0 %v8482_v35  ;;  %v2536_v29 = vmul.f32 %v7783_v31, %v7783_v31  ;;  %v8508_v35 = vld [vmem:[#allocation87_spill] sm:$0xff] }
 0x351   : > { %5278 = vmatprep.subr.bf16.mxu1 %v8483_v42  ;;  %v2538_v42 = vmul.f32 %v7788_v46, %v7788_v46 }
 0x353   : > { %v7761_v14 = vpop.f32.mrb[30].mxu0  ;;  %v7763_v41 = vpop.f32.mrb[28].mxu1  ;;  %5248 = vmatpush3.bf16.msra.mxu0 %v8484_v13  ;;  %v8510_v13 = vld [vmem:[#allocation89_spill] sm:$0xff] }
 0x354   : > { %5280 = vmatpush3.bf16.msra.mxu1 %v8485_v25  ;;  %v2440_v27 = vpop.f32.mrb[31].mxu0  ;;  %v4650_v50 = vpop.f32.mrb[29].mxu1  ;;  %5250 = vmatprep.subr.bf16.mxu0 %v8486_v3  ;;  %v8511_v25 = vld [vmem:[#allocation91_spill] sm:$0xff]  ;;  %v8514_v3 = vld [vmem:[#allocation96_spill] sm:$0xff] }
 0x355   : > { %5282 = vmatprep.subr.bf16.mxu1 %v8487_v21  ;;  %v7792_v0 = vsub.f32 %v8506_v58, %v2440_v27  ;;  %v8512_v27 = vld [vmem:[#allocation93_spill] sm:$0xff]  ;;  %v8513_v50 = vld [vmem:[#allocation95_spill] sm:$0xff] }
 0x356   : > { %v8515_v21 = vld [vmem:[#allocation97_spill] sm:$0xff] }
 0x357   : > { %5252 = vmatpush3.bf16.msra.mxu0 %v8488_v22  ;;  %v2541_v45 = vmul.f32 %v7792_v0, %v7792_v0  ;;  %v8516_v22 = vld [vmem:[#allocation98_spill] sm:$0xff] }
 0x358   : > { %5284 = vmatpush3.bf16.msra.mxu1 %v8489_v36  ;;  %5254 = vmatprep.subr.bf16.mxu0 %v8490_v49  ;;  %v8517_v36 = vld [vmem:[#allocation99_spill] sm:$0xff]  ;;  %v8518_v49 = vld [vmem:[#allocation100_spill] sm:$0xff] }
 0x359   : > { %5286 = vmatprep.subr.bf16.mxu1 %v8491_v56  ;;  %v8519_v56 = vld [vmem:[#allocation101_spill] sm:$0xff] }
 0x35b   : > { %5256 = vmatpush3.bf16.msra.mxu0 %v8492_v61  ;;  %v8520_v61 = vld [vmem:[#allocation102_spill] sm:$0xff] }
 0x35c   : > { %5288 = vmatpush3.bf16.msra.mxu1 %v8493_v4  ;;  %5258 = vmatprep.subr.bf16.mxu0 %v8494_v5  ;;  %v8521_v4 = vld [vmem:[#allocation103_spill] sm:$0xff]  ;;  %v8522_v5 = vld [vmem:[#allocation104_spill] sm:$0xff] }
 0x35d   : > { %5290 = vmatprep.subr.bf16.mxu1 %v8495_v8  ;;  %v8523_v8 = vld [vmem:[#allocation105_spill] sm:$0xff] }
 0x35f   : > { %5260 = vmatpush3.bf16.msra.mxu0 %v8496_v9  ;;  %v8524_v9 = vld [vmem:[#allocation106_spill] sm:$0xff] }
 0x360   : > { %5292 = vmatpush3.bf16.msra.mxu1 %v8497_v17  ;;  %5262 = vmatprep.subr.bf16.mxu0 %v8498_v15  ;;  %v8525_v17 = vld [vmem:[#allocation107_spill] sm:$0xff]  ;;  %v8526_v15 = vld [vmem:[#allocation108_spill] sm:$0xff] }
 0x361   : > { %5294 = vmatprep.subr.bf16.mxu1 %v8499_v34  ;;  %v8527_v34 = vld [vmem:[#allocation109_spill] sm:$0xff] }
 0x363   : > { %5264 = vmatpush3.bf16.msra.mxu0 %v8500_v28  ;;  %v8528_v28 = vld [vmem:[#allocation110_spill] sm:$0xff] }
 0x364   : > { %5296 = vmatpush3.bf16.msra.mxu1 %v8502_v38  ;;  %5266 = vmatprep.subr.bf16.mxu0 %v8503_v39  ;;  %v7833_v38 = vsub.f32 %v8529_v23, %v7761_v14  ;;  %v8530_v39 = vld [vmem:[#allocation111_spill] sm:$0xff] }
 0x365   : > { %5298 = vmatprep.subr.bf16.mxu1 %v8505_v52  ;;  %v8532_v52 = vld [vmem:[#allocation116_spill] sm:$0xff] }
 0x366   : > { %v7839_v58 = vsub.f32 %v8532_v52, %v7763_v41  ;;  %v8537_v41 = vld [vmem:[#allocation119_spill] sm:$0xff] }
 0x367   : > { %5268 = vmatpush3.bf16.msra.mxu0 %v8507_v10  ;;  %v8533_v10 = vld [vmem:[#allocation113_spill] sm:$0xff] }
 0x368   : > { %5300 = vmatpush3.bf16.msra.mxu1 %v8508_v35  ;;  %5302 = vmatprep.subr.bf16.mxu0 %v8509_v37  ;;  %v8534_v35 = vld [vmem:[#allocation114_spill] sm:$0xff]  ;;  %v8535_v37 = vld [vmem:[#allocation117_spill] sm:$0xff]  ;;  %v2542_v14 = vmul.f32 %v7839_v58, %v7839_v58 }
 0x369   : > { %5333 = vmatprep.subr.bf16.mxu1 %v8374_v51 }
 0x36a   : > { %2888 = vmatmul.mubr.f32.vlgmr.msra.gmra.mrb[36].mxu0 %v2536_v29  ;;  %v2540_v29 = vmul.f32 %v7833_v38, %v7833_v38 }
 0x36b   : > { %2958 = vmatmul.mubr.f32.vlgmr.msra.gmra.mrb[34].mxu1 %v2538_v42  ;;  %5304 = vmatpush3.bf16.msra.mxu0 %v8510_v13  ;;  %v8536_v42 = vld [vmem:[#allocation118_spill] sm:$0xff]  ;;  %v8539_v13 = vld [vmem:[#allocation121_spill] sm:$0xff] }
 0x36c   : > { %3027 = vmatprep.mubr.f32.mxu0 %v2541_v45  ;;  %5335 = vmatpush3.bf16.msra.mxu1 %v8511_v25  ;;  %v8538_v45 = vld [vmem:[#allocation120_spill] sm:$0xff]  ;;  %v8540_v25 = vld [vmem:[#allocation122_spill] sm:$0xff] }
 0x36d   : > { %5306 = vmatprep.subr.bf16.mxu0 %v8512_v27  ;;  %5336 = vmatprep.subr.bf16.mxu1 %v8374_v51  ;;  %v8541_v27 = vld [vmem:[#allocation123_spill] sm:$0xff] }
 0x36e   : > { %4683 = vmatprep.mubr.msk.f32.mxu1 %vm5597_vm1, %v8375_v40 }
 0x36f   : > { %5308 = vmatpush3.bf16.msra.mxu0 %v8513_v50  ;;  %v8542_v50 = vld [vmem:[#allocation124_spill] sm:$0xff] }
 0x370   : > { %5338 = vmatpush3.bf16.msra.mxu1 %v8514_v3  ;;  %5310 = vmatprep.subr.bf16.mxu0 %v8515_v21  ;;  %v8543_v3 = vld [vmem:[#allocation125_spill] sm:$0xff]  ;;  %v8544_v21 = vld [vmem:[#allocation126_spill] sm:$0xff] }
 0x371   : > { %5339 = vmatprep.subr.bf16.mxu1 %v8374_v51 }
 0x373   : > { %5312 = vmatpush3.bf16.msra.mxu0 %v8516_v22  ;;  %v8545_v22 = vld [vmem:[#allocation127_spill] sm:$0xff] }
 0x374   : > { %5341 = vmatpush3.bf16.msra.mxu1 %v8517_v36  ;;  %5314 = vmatprep.subr.bf16.mxu0 %v8518_v49  ;;  %v8546_v36 = vld [vmem:[#allocation128_spill] sm:$0xff]  ;;  %v8547_v49 = vld [vmem:[#allocation129_spill] sm:$0xff] }
 0x375   : > { %5342 = vmatprep.subr.bf16.mxu1 %v8374_v51 }
 0x377   : > { %5316 = vmatpush3.bf16.msra.mxu0 %v8519_v56  ;;  %v8548_v56 = vld [vmem:[#allocation130_spill] sm:$0xff] }
 0x378   : > { %5344 = vmatpush3.bf16.msra.mxu1 %v8520_v61  ;;  %5318 = vmatprep.subr.bf16.mxu0 %v8521_v4  ;;  %v8549_v61 = vld [vmem:[#allocation131_spill] sm:$0xff]  ;;  %v8550_v4 = vld [vmem:[#allocation132_spill] sm:$0xff] }
 0x379   : > { %5345 = vmatprep.subr.bf16.mxu1 %v8374_v51 }
 0x37b   : > { %5320 = vmatpush3.bf16.msra.mxu0 %v8522_v5  ;;  %v8551_v5 = vld [vmem:[#allocation133_spill] sm:$0xff] }
 0x37c   : > { %5347 = vmatpush3.bf16.msra.mxu1 %v8523_v8  ;;  %5322 = vmatprep.subr.bf16.mxu0 %v8524_v9  ;;  %v8552_v8 = vld [vmem:[#allocation134_spill] sm:$0xff] }
 0x37d   : > { %5348 = vmatprep.subr.bf16.mxu1 %v8374_v51 }
 0x37f   : > { %5324 = vmatpush3.bf16.msra.mxu0 %v8525_v17 }
 0x380   : > { %5350 = vmatpush3.bf16.msra.mxu1 %v8526_v15  ;;  %5326 = vmatprep.subr.bf16.mxu0 %v8527_v34 }
 0x381   : > { %5351 = vmatprep.subr.bf16.mxu1 %v8374_v51 }
 0x383   : > { %5328 = vmatpush3.bf16.msra.mxu0 %v8528_v28 }
 0x384   : > { %5353 = vmatpush3.bf16.msra.mxu1 %v8530_v39  ;;  %5330 = vmatprep.subr.bf16.mxu0 %v8531_v43 }
 0x385   : > { %5354 = vmatprep.subr.bf16.mxu1 %v8374_v51 }
 0x387   : > { %5332 = vmatpush3.bf16.msra.mxu0 %v8533_v10 }
 0x388   : > { %5356 = vmatpush3.bf16.msra.mxu1 %v8534_v35  ;;  %5358 = vmatprep.subr.bf16.mxu0 %v8535_v37 }
 0x389   : > { %5374 = vmatprep.subr.bf16.mxu1 %v8536_v42 }
 0x38a   : > { %3028 = vmatmul.mubr.f32.vlgmr.msra.gmra.mrb[38].mxu0 %v2540_v29 }
 0x38b   : > { %4684 = vmatmul.mubr.f32.vlgmr.msra.gmra.mrb[36].mxu1 %v2542_v14  ;;  %5360 = vmatpush1.bf16.msra.mxu0 %v8537_v41 }
 0x38c   : > { %5376 = vmatpush1.bf16.msra.mxu1 %v8538_v45  ;;  %5362 = vmatprep.subr.bf16.mxu0 %v8539_v13 }
 0x38d   : > { %5378 = vmatprep.subr.bf16.mxu1 %v8540_v25  ;;  %3171 = vmatprep.mubr.f32.mxu0 %v8375_v40 }
 0x38e   : > { %3242 = vmatprep.mubr.f32.mxu1 %v8375_v40 }
 0x38f   : > { %5364 = vmatpush1.bf16.msra.mxu0 %v8541_v27 }
 0x390   : > { %5380 = vmatpush1.bf16.msra.mxu1 %v8542_v50  ;;  %5366 = vmatprep.subr.bf16.mxu0 %v8543_v3 }
 0x391   : > { %5382 = vmatprep.subr.bf16.mxu1 %v8544_v21 }
 0x393   : > { %5368 = vmatpush1.bf16.msra.mxu0 %v8545_v22 }
 0x394   : > { %5384 = vmatpush1.bf16.msra.mxu1 %v8546_v36  ;;  %5370 = vmatprep.subr.bf16.mxu0 %v8547_v49 }
 0x395   : > { %5386 = vmatprep.subr.bf16.mxu1 %v8548_v56 }
 0x397   : > { %5372 = vmatpush1.bf16.msra.mxu0 %v8549_v61 }
 0x398   : > { %5388 = vmatpush1.bf16.msra.mxu1 %v8550_v4  ;;  %5390 = vmatprep.subr.bf16.mxu0 %v8551_v5 }
 0x399   : > { %5406 = vmatprep.subr.bf16.mxu1 %v8552_v8 }
 0x3fd   : > { %v4351_v9 = vpop.f32.mrb[32].mxu0  ;;  %v4386_v17 = vpop.f32.mrb[30].mxu1 }
 0x3fe   : > { %v4352_v15 = vpop.f32.mrb[33].mxu0  ;;  %v4387_v34 = vpop.f32.mrb[31].mxu1 }
 0x3ff   : > { %v4353_v28 = vadd.f32 %v4352_v15, %v4351_v9  ;;  %v4388_v23 = vadd.f32 %v4387_v34, %v4386_v17  ;;  %v8553_v17 = vld [vmem:[#allocation135_spill] sm:$0xff]  ;;  %v8554_v15 = vld [vmem:[#allocation136_spill] sm:$0xff]  ;;  %v8555_v34 = vld [vmem:[#allocation137_spill] sm:$0xff] }
 0x401   : > { %v2610_v39 = vadd.f32 1e-05, %v4353_v28  ;;  %v8556_v28 = vld [vmem:[#allocation138_spill] sm:$0xff] }
 0x403   : > { %v2680_v43 = vadd.f32 %v4388_v23, %v2610_v39  ;;  %v8561_v23 = vld [vmem:[#allocation143_spill] sm:$0xff]  ;;  %v8562_v39 = vld [vmem:[#allocation144_spill] sm:$0xff] }
 0x41d   : > { %v4421_v52 = vpop.f32.mrb[34].mxu0  ;;  %v4456_v10 = vpop.f32.mrb[32].mxu1 }
 0x41e   : > { %v4422_v29 = vpop.f32.mrb[35].mxu0  ;;  %v4457_v35 = vpop.f32.mrb[33].mxu1 }
 0x41f   : > { %v4423_v37 = vadd.f32 %v4422_v29, %v4421_v52  ;;  %v4458_v14 = vadd.f32 %v4457_v35, %v4456_v10  ;;  %v8565_v52 = vld [vmem:[#allocation147_spill] sm:$0xff]  ;;  %v8566_v10 = vld [vmem:[#allocation148_spill] sm:$0xff]  ;;  %v8567_v29 = vld [vmem:[#allocation149_spill] sm:$0xff] }
 0x420   : > { %v8568_v35 = vld [vmem:[#allocation150_spill] sm:$0xff] }
 0x421   : > { %v2750_v42 = vadd.f32 %v4423_v37, %v2680_v43  ;;  %v8564_v43 = vld [vmem:[#allocation146_spill] sm:$0xff]  ;;  %v8569_v37 = vld [vmem:[#allocation151_spill] sm:$0xff] }
 0x423   : > { %v2820_v41 = vadd.f32 %v4458_v14, %v2750_v42  ;;  %v8570_v14 = vld [vmem:[#allocation152_spill] sm:$0xff]  ;;  %v8571_v42 = vld [vmem:[#allocation153_spill] sm:$0xff] }
 0x43d   : > { %v4491_v45 = vpop.f32.mrb[36].mxu0 }
 0x43e   : > { %v4526_v13 = vpop.f32.mrb[34].mxu1  ;;  %v4492_v25 = vpop.f32.mrb[37].mxu0 }
 0x43f   : > { %v4493_v27 = vadd.f32 %v4492_v25, %v4491_v45  ;;  %v4527_v50 = vpop.f32.mrb[35].mxu1  ;;  %v8573_v45 = vld [vmem:[#allocation155_spill] sm:$0xff] }
 0x440   : > { %v4528_v3 = vadd.f32 %v4527_v50, %v4526_v13  ;;  %v8574_v13 = vld [vmem:[#allocation156_spill] sm:$0xff] }
 0x441   : > { %v2890_v21 = vadd.f32 %v4493_v27, %v2820_v41  ;;  %v8572_v41 = vld [vmem:[#allocation154_spill] sm:$0xff] }
 0x443   : > { %v2960_v22 = vadd.f32 %v4528_v3, %v2890_v21 }
 0x45d   : > { %v4561_v36 = vpop.f32.mrb[38].mxu0 }
 0x45e   : > { %v3099_v49 = vpop.f32.mrb[36].mxu1  ;;  %v4562_v56 = vpop.f32.mrb[39].mxu0 }
 0x45f   : > { %v4563_v61 = vadd.f32 %v4562_v56, %v4561_v36  ;;  %v4685_v4 = vpop.f32.mrb[37].mxu1 }
 0x461   : > { %v3030_v5 = vadd.f32 %v4563_v61, %v2960_v22 }
 0x463   : > { %v3100_v8 = vadd.f32 %v3099_v49, %v3030_v5 }
 0x465   : > { %5528 = vrsqrt.f32 %v3100_v8 }
 0x46f   : > { %v5529_v9 = vpop.eup %5528 }
 0x470   : > { %4031 = vmatmul.mubr.msk.f32.vlgmr.msra.gmra.mrb[40].mxu0 %vm1942_vm2, %v5529_v9  ;;  %4032 = vmatmul.mubr.msk.f32.vlgmr.msra.gmra.mrb[38].mxu1 %vm1942_vm2, %v5529_v9 }
 0x471   : > { %5392 = vmatpush1.bf16.msra.mxu0 %v7254_v26  ;;  %5408 = vmatpush1.bf16.msra.mxu1 %v7256_v63  ;;  %v8557_v26 = vld [vmem:[#allocation139_spill] sm:$0xff]  ;;  %v8558_v63 = vld [vmem:[#allocation140_spill] sm:$0xff] }
 0x472   : > { %5394 = vmatprep.subr.bf16.mxu0 %v7266_v62  ;;  %5410 = vmatprep.subr.bf16.mxu1 %v7268_v7  ;;  %v8559_v62 = vld [vmem:[#allocation141_spill] sm:$0xff]  ;;  %v8560_v7 = vld [vmem:[#allocation142_spill] sm:$0xff] }
 0x473   : > { %3313 = vmatprep.mubr.f32.mxu0 %v8375_v40  ;;  %3384 = vmatprep.mubr.f32.mxu1 %v8375_v40 }
 0x475   : > { %5396 = vmatpush1.bf16.msra.mxu0 %v7294_v54  ;;  %5412 = vmatpush1.bf16.msra.mxu1 %v8553_v17  ;;  %v8563_v54 = vld [vmem:[#allocation145_spill] sm:$0xff] }
 0x476   : > { %5398 = vmatprep.subr.bf16.mxu0 %v8554_v15  ;;  %5414 = vmatprep.subr.bf16.mxu1 %v8555_v34 }
 0x479   : > { %5400 = vmatpush1.bf16.msra.mxu0 %v8556_v28  ;;  %5416 = vmatpush1.bf16.msra.mxu1 %v8557_v26 }
 0x47a   : > { %5402 = vmatprep.subr.bf16.mxu0 %v8558_v63  ;;  %5418 = vmatprep.subr.bf16.mxu1 %v8559_v62  ;;  %v7974_v63 = vpop.permute.xlu0 %398 }
 0x47d   : > { %5404 = vmatpush1.bf16.msra.mxu0 %v8560_v7  ;;  %5420 = vmatpush1.bf16.msra.mxu1 %v8561_v23 }
 0x47e   : > { %5422 = vmatprep.subr.bf16.mxu0 %v8562_v39  ;;  %5438 = vmatprep.subr.bf16.mxu1 %v8563_v54  ;;  %v8580_v39 = vld [vmem:[#allocation12_spill] sm:$0xff] }
 0x480   : > { %4033 = vmatmul.mubr.msk.f32.vlgmr.msra.gmra.mrb[42].mxu0 %vm1942_vm2, %v5529_v9  ;;  %4034 = vmatmul.mubr.msk.f32.vlgmr.msra.gmra.mrb[40].mxu1 %vm1942_vm2, %v5529_v9 }
 0x481   : > { %5424 = vmatpush1.bf16.msra.mxu0 %v8564_v43  ;;  %5440 = vmatpush1.bf16.msra.mxu1 %v8565_v52  ;;  %v8581_v52 = vld [vmem:[#allocation13_spill] sm:$0xff] }
 0x482   : > { %5426 = vmatprep.subr.bf16.mxu0 %v8566_v10  ;;  %5442 = vmatprep.subr.bf16.mxu1 %v8567_v29  ;;  %v483_v10 = vadd.f32 %v8581_v52, %v7974_v63  ;;  %v8582_v29 = vld [vmem:[#allocation14_spill] sm:$0xff] }
 0x483   : > { %3455 = vmatprep.mubr.f32.mxu0 %v8375_v40  ;;  %3526 = vmatprep.mubr.f32.mxu1 %v8375_v40 }
 0x485   : > { %5428 = vmatpush1.bf16.msra.mxu0 %v7444_v30  ;;  %5444 = vmatpush1.bf16.msra.mxu1 %v8568_v35  ;;  %v8577_v30 = vld [vmem:[#allocation159_spill] sm:$0xff]  ;;  %v560_v35 = vadd.f32 %v8582_v29, %v7974_v63  ;;  %v3690_v29 = vld [vmem:[%s8131_s3 + $0x8] sm:$0xff] }
 0x486   : > { %5430 = vmatprep.subr.bf16.mxu0 %v7456_v2  ;;  %5446 = vmatprep.subr.bf16.mxu1 %v7458_v55  ;;  %v8575_v2 = vld [vmem:[#allocation157_spill] sm:$0xff]  ;;  %v8576_v55 = vld [vmem:[#allocation158_spill] sm:$0xff] }
 0x489   : > { %5432 = vmatpush1.bf16.msra.mxu0 %v8569_v37  ;;  %5448 = vmatpush1.bf16.msra.mxu1 %v7484_v19  ;;  %v8578_v19 = vld [vmem:[#allocation160_spill] sm:$0xff] }
 0x48a   : > { %5434 = vmatprep.subr.bf16.mxu0 %v8570_v14  ;;  %5450 = vmatprep.subr.bf16.mxu1 %v8571_v42 }
 0x48d   : > { %5436 = vmatpush1.bf16.msra.mxu0 %v8572_v41  ;;  %5452 = vmatpush1.bf16.msra.mxu1 %v8573_v45 }
 0x48e   : > { %5454 = vmatprep.subr.bf16.mxu0 %v8574_v13  ;;  %5469 = vmatprep.subr.bf16.mxu1 %v8374_v51 }
 0x490   : > { %4035 = vmatmul.mubr.msk.f32.vlgmr.msra.gmra.mrb[44].mxu0 %vm1942_vm2, %v5529_v9  ;;  %4036 = vmatmul.mubr.msk.f32.vlgmr.msra.gmra.mrb[42].mxu1 %vm1942_vm2, %v5529_v9 }
 0x491   : > { %5456 = vmatpush1.bf16.msra.mxu0 %v8575_v2  ;;  %5471 = vmatpush3.bf16.msra.mxu1 %v8576_v55 }
 0x492   : > { %5458 = vmatprep.subr.bf16.mxu0 %v8577_v30  ;;  %5472 = vmatprep.subr.bf16.mxu1 %v8374_v51 }
 0x493   : > { %3597 = vmatprep.mubr.f32.mxu0 %v8375_v40  ;;  %4702 = vmatprep.mubr.msk.f32.mxu1 %vm5597_vm1, %v8375_v40  ;;  %v3693_v40 = vlaneseq }
 0x495   : > { %5460 = vmatpush1.bf16.msra.mxu0 %v8578_v19  ;;  %5474 = vmatpush3.bf16.msra.mxu1 %v7574_v1 }
 0x496   : > { %5462 = vmatprep.subr.bf16.mxu0 %v7581_v53  ;;  %5475 = vmatprep.subr.bf16.mxu1 %v8374_v51  ;;  %v7929_v53 = vshrl.u32 %v3693_v40, 7 }
 0x498   : > { %v7932_v1 = vsub.s32 0, %v7929_v53  ;;  %v7989_v2 = vsub.s32 4, %v7929_v53  ;;  %v7992_v55 = vsub.s32 6, %v7929_v53  ;;  %v7997_v30 = vsub.s32 5, %v7929_v53 }
 0x499   : > { %5464 = vmatpush1.bf16.msra.mxu0 %v7603_v47  ;;  %5477 = vmatpush3.bf16.msra.mxu1 %v7605_v11  ;;  %v7935_v47 = vsub.s32 2, %v7929_v53  ;;  %v7946_v11 = vsub.s32 3, %v7929_v53  ;;  %v3723_v19 = vsub.s32 7, %v7929_v53 }
 0x49a   : > { %5466 = vmatprep.subr.bf16.mxu0 %v7612_v12  ;;  %5478 = vmatprep.subr.bf16.mxu1 %v8374_v51  ;;  %v7940_v51 = vld [vmem:[%s8131_s3] sm:$0xff]  ;;  %v7943_v12 = vsub.s32 1, %v7929_v53 }
 0x49b   : > { %v3704_v25 = vrot.slane %v7940_v51, %v7935_v47  ;;  %v3708_v21 = vrot.slane %v7940_v51, %v7946_v11  ;;  %v3712_v40 = vrot.slane %v7940_v51, %v7989_v2 }
 0x49c   : > { %v3700_v3 = vrot.slane %v7940_v51, %v7943_v12 }
 0x49d   : > { %5468 = vmatpush1.bf16.msra.mxu0 %v7625_v24  ;;  %5480 = vmatpush3.bf16.msra.mxu1 %v7627_v18  ;;  %v7951_v24 = vld [vmem:[%s8132_s4] sm:$0xff]  ;;  %v3696_v18 = vrot.slane %v7940_v51, %v7932_v1 }
 0x49e   : > { %v3790_v36 = vrot.slane %v7951_v24, %v7932_v1  ;;  %v3798_v56 = vrot.slane %v7951_v24, %v7935_v47  ;;  %v3794_v8 = vrot.slane %v7951_v24, %v7943_v12 }
 0x4a0   : > { %4037 = vmatmul.mubr.msk.f32.vlgmr.msra.gmra.mrb[46].mxu0 %vm1942_vm2, %v5529_v9  ;;  %4703 = vmatmul.mubr.msk.f32.vlgmr.msra.gmra.mrb[44].mxu1 %vm1942_vm2, %v5529_v9 }
 0x543   : > { %v3173_v27 = vpop.f32.mrb[40].mxu0  ;;  %v3244_v50 = vpop.f32.mrb[38].mxu1 }
 0x544   : > { %v3674_v22 = vmul.f32 %v3173_v27, %v7672_v32  ;;  %v3676_v49 = vmul.f32 %v3244_v50, %v7675_v33  ;;  %v3175_v61 = vpop.f32.mrb[41].mxu0  ;;  %v3246_v4 = vpop.f32.mrb[39].mxu1  ;;  %v3802_v32 = vrot.slane %v7951_v24, %v7946_v11  ;;  %v3716_v50 = vrot.slane %v7940_v51, %v7997_v30 }
 0x545   : > { %v3675_v5 = vmul.f32 %v3175_v61, %v7678_v44  ;;  %v3677_v9 = vmul.f32 %v3246_v4, %v7681_v48  ;;  %v8579_v44 = vld [vmem:[#allocation10_spill] sm:$0xff]  ;;  %v558_v48 = vadd.f32 %v8580_v39, %v7974_v63  ;;  %v3810_v4 = vrot.slane %v7951_v24, %v7997_v30 }
 0x546   : > { %v3768_v17 = vmul.f32 %v3696_v18, %v3674_v22  ;;  %v3770_v15 = vmul.f32 %v3704_v25, %v3676_v49  ;;  %v481_v23 = vadd.f32 %v8579_v44, %v7974_v63  ;;  %v3720_v18 = vrot.slane %v7940_v51, %v7992_v55  ;;  %v8586_v44 = vld [vmem:[#allocation28_spill] sm:$0xff] }
 0x547   : > { %v3769_v34 = vmul.f32 %v3700_v3, %v3675_v5  ;;  %v3771_v33 = vmul.f32 %v3708_v21, %v3677_v9  ;;  %v3724_v3 = vrot.slane %v7940_v51, %v3723_v19  ;;  %v3806_v22 = vrot.slane %v7951_v24, %v7989_v2 }
 0x548   : > { %v3862_v28 = vadd.f32 %v3790_v36, %v3768_v17  ;;  %v3864_v26 = vadd.f32 %v3798_v56, %v3770_v15  ;;  %v3814_v36 = vrot.slane %v7951_v24, %v7992_v55  ;;  %v3818_v51 = vrot.slane %v7951_v24, %v3723_v19 }
 0x549   : > { %v3863_v62 = vadd.f32 %v3794_v8, %v3769_v34  ;;  %v3865_v7 = vadd.f32 %v3802_v32, %v3771_v33 }
 0x54a   : > { %v3877_v54 = vmax.f32 %v3862_v28, 0.0  ;;  %v3879_v43 = vmax.f32 %v3864_v26, 0.0  ;;  %v8584_v28 = vld [vmem:[#allocation26_spill] sm:$0xff] }
 0x54b   : > { %v3878_v37 = vmax.f32 %v3863_v62, 0.0  ;;  %v3880_v14 = vmax.f32 %v3865_v7, 0.0  ;;  %v8585_v62 = vld [vmem:[#allocation27_spill] sm:$0xff] }
 0x54c   : > { %v3892_v42 = vadd.f32 %v3877_v54, %v481_v23  ;;  %v3894_v41 = vadd.f32 %v3879_v43, %v558_v48  ;;  %v637_v7 = vadd.f32 %v8585_v62, %v7974_v63  ;;  %v714_v23 = vadd.f32 %v8586_v44, %v7974_v63 }
 0x54d   : > { %v3893_v45 = vadd.f32 %v3878_v37, %v483_v10  ;;  %v3895_v13 = vadd.f32 %v3880_v14, %v560_v35  ;;  %v3784_v35 = vld [vmem:[%s8132_s4 + $0x8] sm:$0xff]  ;;  %v3728_v37 = vrot.slane %v3690_v29, %v7932_v1  ;;  %v3736_v14 = vrot.slane %v3690_v29, %v7935_v47 }
 0x54e   : > { %3907 = vst [vmem:[%s7984_s14] sm:$0xff] %v3892_v42  ;;  %3909 = vst [vmem:[%s7984_s14 + $0x10] sm:$0xff] %v3894_v41 }
 0x54f   : > { %3908 = vst [vmem:[%s7984_s14 + $0x8] sm:$0xff] %v3893_v45  ;;  %3910 = vst [vmem:[%s7984_s14 + $0x18] sm:$0xff] %v3895_v13  ;;  %v3732_v45 = vrot.slane %v3690_v29, %v7943_v12  ;;  %v3740_v13 = vrot.slane %v3690_v29, %v7946_v11 }
 0x553   : > { %v3315_v25 = vpop.f32.mrb[42].mxu0  ;;  %v3386_v27 = vpop.f32.mrb[40].mxu1 }
 0x554   : > { %v3678_v21 = vmul.f32 %v3315_v25, %v7728_v57  ;;  %v3680_v53 = vmul.f32 %v3386_v27, %v7731_v60  ;;  %v3317_v49 = vpop.f32.mrb[43].mxu0  ;;  %v3388_v56 = vpop.f32.mrb[41].mxu1  ;;  %v3830_v25 = vrot.slane %v3784_v35, %v7935_v47 }
 0x555   : > { %v3679_v61 = vmul.f32 %v3317_v49, %v7704_v59  ;;  %v3681_v5 = vmul.f32 %v3388_v56, %v7707_v6  ;;  %v8583_v59 = vld [vmem:[#allocation24_spill] sm:$0xff]  ;;  %v712_v6 = vadd.f32 %v8584_v28, %v7974_v63  ;;  %v3752_v28 = vrot.slane %v3690_v29, %v7992_v55 }
 0x556   : > { %v3772_v57 = vmul.f32 %v3712_v40, %v3678_v21  ;;  %v3774_v8 = vmul.f32 %v3720_v18, %v3680_v53  ;;  %v635_v33 = vadd.f32 %v8583_v59, %v7974_v63  ;;  %v3822_v40 = vrot.slane %v3784_v35, %v7932_v1 }
 0x557   : > { %v3773_v9 = vmul.f32 %v3716_v50, %v3679_v61  ;;  %v3775_v32 = vmul.f32 %v3724_v3, %v3681_v5  ;;  %v3826_v21 = vrot.slane %v3784_v35, %v7943_v12  ;;  %v3834_v53 = vrot.slane %v3784_v35, %v7946_v11  ;;  %v8588_v12 = vld [vmem:[#allocation38_spill] sm:$0xff] }
 0x558   : > { %v3866_v17 = vadd.f32 %v3806_v22, %v3772_v57  ;;  %v3868_v60 = vadd.f32 %v3814_v36, %v3774_v8  ;;  %v8590_v8 = vld [vmem:[#allocation40_spill] sm:$0xff] }
 0x559   : > { %v3867_v15 = vadd.f32 %v3810_v4, %v3773_v9  ;;  %v3869_v34 = vadd.f32 %v3818_v51, %v3775_v32  ;;  %v8587_v4 = vld [vmem:[#allocation36_spill] sm:$0xff]  ;;  %v8589_v51 = vld [vmem:[#allocation39_spill] sm:$0xff]  ;;  %v868_v9 = vadd.f32 %v8590_v8, %v7974_v63 }
 0x55a   : > { %v3881_v26 = vmax.f32 %v3866_v17, 0.0  ;;  %v3883_v24 = vmax.f32 %v3868_v60, 0.0  ;;  %v791_v57 = vadd.f32 %v8589_v51, %v7974_v63 }
 0x55b   : > { %v3882_v39 = vmax.f32 %v3867_v15, 0.0  ;;  %v3884_v48 = vmax.f32 %v3869_v34, 0.0 }
 0x55c   : > { %v3896_v54 = vadd.f32 %v3881_v26, %v635_v33  ;;  %v3898_v43 = vadd.f32 %v3883_v24, %v712_v6  ;;  %v3744_v33 = vrot.slane %v3690_v29, %v7989_v2  ;;  %v3748_v24 = vrot.slane %v3690_v29, %v7997_v30 }
 0x55d   : > { %v3897_v52 = vadd.f32 %v3882_v39, %v637_v7  ;;  %v3899_v10 = vadd.f32 %v3884_v48, %v714_v23  ;;  %v3838_v7 = vrot.slane %v3784_v35, %v7989_v2  ;;  %v3846_v23 = vrot.slane %v3784_v35, %v7992_v55  ;;  %v8592_v55 = vld [vmem:[#allocation48_spill] sm:$0xff] }
 0x55e   : > { %3911 = vst [vmem:[%s7984_s14 + $0x20] sm:$0xff] %v3896_v54  ;;  %3913 = vst [vmem:[%s7984_s14 + $0x30] sm:$0xff] %v3898_v43  ;;  %v3842_v43 = vrot.slane %v3784_v35, %v7997_v30  ;;  %v8593_v35 = vld [vmem:[#allocation50_spill] sm:$0xff] }
 0x55f   : > { %3912 = vst [vmem:[%s7984_s14 + $0x28] sm:$0xff] %v3897_v52  ;;  %3914 = vst [vmem:[%s7984_s14 + $0x38] sm:$0xff] %v3899_v10 }
 0x563   : > { %v3457_v42 = vpop.f32.mrb[44].mxu0  ;;  %v3528_v41 = vpop.f32.mrb[42].mxu1 }
 0x564   : > { %v3682_v19 = vmul.f32 %v3457_v42, %v7783_v31  ;;  %v3684_v18 = vmul.f32 %v3528_v41, %v7788_v46  ;;  %v3459_v27 = vpop.f32.mrb[45].mxu0  ;;  %v3530_v50 = vpop.f32.mrb[43].mxu1  ;;  %v945_v41 = vadd.f32 %v8593_v35, %v7974_v63 }
 0x565   : > { %v3683_v3 = vmul.f32 %v3459_v27, %v7736_v16  ;;  %v3685_v22 = vmul.f32 %v3530_v50, %v7739_v20  ;;  %v789_v16 = vadd.f32 %v8587_v4, %v7974_v63  ;;  %v866_v20 = vadd.f32 %v8588_v12, %v7974_v63 }
 0x566   : > { %v3776_v36 = vmul.f32 %v3728_v37, %v3682_v19  ;;  %v3778_v49 = vmul.f32 %v3736_v14, %v3684_v18 }
 0x567   : > { %v3777_v56 = vmul.f32 %v3732_v45, %v3683_v3  ;;  %v3779_v31 = vmul.f32 %v3740_v13, %v3685_v22 }
 0x568   : > { %v3870_v61 = vadd.f32 %v3822_v40, %v3776_v36  ;;  %v3872_v1 = vadd.f32 %v3830_v25, %v3778_v49 }
 0x569   : > { %v3871_v46 = vadd.f32 %v3826_v21, %v3777_v56  ;;  %v3873_v47 = vadd.f32 %v3834_v53, %v3779_v31 }
 0x56a   : > { %v3885_v5 = vmax.f32 %v3870_v61, 0.0  ;;  %v3887_v11 = vmax.f32 %v3872_v1, 0.0 }
 0x56b   : > { %v3886_v32 = vmax.f32 %v3871_v46, 0.0  ;;  %v3888_v17 = vmax.f32 %v3873_v47, 0.0 }
 0x56c   : > { %v3900_v60 = vadd.f32 %v3885_v5, %v789_v16  ;;  %v3902_v15 = vadd.f32 %v3887_v11, %v866_v20 }
 0x56d   : > { %v3901_v34 = vadd.f32 %v3886_v32, %v791_v57  ;;  %v3903_v59 = vadd.f32 %v3888_v17, %v868_v9 }
 0x56e   : > { %3915 = vst [vmem:[%s7984_s14 + $0x40] sm:$0xff] %v3900_v60  ;;  %3917 = vst [vmem:[%s7984_s14 + $0x50] sm:$0xff] %v3902_v15 }
 0x56f   : > { %3916 = vst [vmem:[%s7984_s14 + $0x48] sm:$0xff] %v3901_v34  ;;  %3918 = vst [vmem:[%s7984_s14 + $0x58] sm:$0xff] %v3903_v59 }
 0x573   : > { %v3599_v6 = vpop.f32.mrb[46].mxu0  ;;  %v3670_v26 = vpop.f32.mrb[44].mxu1 }
 0x574   : > { %v3686_v62 = vmul.f32 %v3599_v6, %v7833_v38  ;;  %v3688_v44 = vmul.f32 %v3670_v26, %v7839_v58  ;;  %v3601_v39 = vpop.f32.mrb[47].mxu0  ;;  %v4704_v48 = vpop.f32.mrb[45].mxu1  ;;  %v8591_v58 = vld [vmem:[#allocation45_spill] sm:$0xff] }
 0x575   : > { %v3687_v54 = vmul.f32 %v3601_v39, %v7792_v0  ;;  %v1019_v2 = vadd.f32 %v8591_v58, %v7974_v63  ;;  %v943_v0 = vadd.f32 %v8592_v55, %v7974_v63 }
 0x576   : > { %v3780_v52 = vmul.f32 %v3744_v33, %v3686_v62  ;;  %v3782_v10 = vmul.f32 %v3752_v28, %v3688_v44 }
 0x577   : > { %v3781_v37 = vmul.f32 %v3748_v24, %v3687_v54 }
 0x578   : > { %v3874_v14 = vadd.f32 %v3838_v7, %v3780_v52  ;;  %v3876_v29 = vadd.f32 %v3846_v23, %v3782_v10 }
 0x579   : > { %v3875_v38 = vadd.f32 %v3842_v43, %v3781_v37 }
 0x57a   : > { %v3889_v42 = vmax.f32 %v3874_v14, 0.0  ;;  %v3891_v30 = vmax.f32 %v3876_v29, 0.0 }
 0x57b   : > { %v3890_v45 = vmax.f32 %v3875_v38, 0.0 }
 0x57c   : > { %v3904_v13 = vadd.f32 %v3889_v42, %v943_v0  ;;  %v3906_v19 = vadd.f32 %v3891_v30, %v1019_v2 }
 0x57d   : > { %v3905_v40 = vadd.f32 %v3890_v45, %v945_v41 }
 0x57e   : > { %3919 = vst [vmem:[%s7984_s14 + $0x60] sm:$0xff] %v3904_v13  ;;  %3921 = vst [vmem:[%s7984_s14 + $0x70] sm:$0xff] %v3906_v19 }
 0x57f   : > { %3920 = vst [vmem:[%s7984_s14 + $0x68] sm:$0xff] %v3905_v40 }
 0x580   : > { %5543 = shalt.err (!%p5540_p5)
}
 0x581   : > { %s5544_s20 = scalar_lea.hbm %s8081_s23, 1920  ;;  %s5548_s17 = scalar_lea.hbm %s8135_s7, 3840 }
 0x582   : > { %p5545_p7 = scmp.ne.s32.totalorder %s8081_s23, %s5544_s20  ;;  %p5549_p12 = scmp.lt.u32.totalorder %s8081_s23, %s8135_s7 }
 0x583   : > { %p5550_p13 = scmp.lt.u32.totalorder %s5548_s17, %s5544_s20  ;;  %p5552_p1 = scmp.lt.u32.totalorder %s5544_s20, %s8081_s23 }
 0x584   : > { %p5546_p10 = pnand %p5545_p7, %p5677_p6 }
 0x585   : > { %p5551_p0 = por %p5550_p13, %p5549_p12 }
 0x586   : > { %p5547_p11 = pneg %p5546_p10 }
 0x587   : > { %p5553_p2 = por %p5552_p1, %p5551_p0 }
 0x589   : > { %p5554_p3 = pnand %p5553_p2, %p5547_p11 }
 0x58b   : > { %5557 = shalt.err (!%p5554_p3)
}
 0x58c   : > { %5484 = dma.vmem_to_hbm [thread:$0]  (%p5677_p6), %s8083_s21, 1920, %s8081_s23, %s3923_s29  }
 0x58d PF: > { %s3949_s22 = sand.u32 1, %s5580_s24   ;;  %p5487_p4 = pnand %p4004_p9, %p5681_p8 }
 0x58e   : > { %s3950_s28 = scalar_lea.sflag [#allocation4], %s3949_s22 }
 0x58f   : > { %5575 = dma.done.wait (!%p5487_p4), %s3950_s28, 1920  }
 0x590   : > { %5577 = vsyncadd (!%p5487_p4), %s3950_s28, 4294965376  ;;  %p17_p5 = scmp.ge.s32.totalorder %s5662_s30, 4   ;;  %s8594_s24 = smov %s5584_s25 }
 0x591   : > { %s8595_s25 = smov %s5588_s26  ;;  %s8596_s26 = smov %s5675_s10 }
 0x592   : > { %s8597_s27 = smov %s5662_s30  ;;  %19 = sbr.rel (!%p17_p5) target bundleno = 3 (0x3), region = 111 }
 0x599   :  { %3955 = vsyncpa [#allocation4], 1 }
 0x59a   :  { %3957 = vsyncpa [#allocation4 + $0x1], 1 }

</bundles_post_ra>
